<compile_context>
chip_gen: v6e
topology: v6e:2x2x1
jax: 0.10.0
libtpu: 0.0.40
codegen_flags: <defaults>
</compile_context>

<pallas_src>
import math
from functools import partial

import jax
import jax.numpy as jnp
from jax import lax
from jax.experimental import pallas as pl
from jax.experimental.pallas import tpu as pltpu


def _layernorm(x, g, b, eps=1e-5):
    # Single-pass: E[x] and E[x^2] together, var = E[x^2] - mu^2 (one XLU reduction pair).
    mu = jnp.mean(x, axis=-1, keepdims=True)
    mu2 = jnp.mean(x * x, axis=-1, keepdims=True)
    var = mu2 - mu * mu
    return (x - mu) * lax.rsqrt(var + eps) * g + b


def _layernorm_ref(x, g, b, eps=1e-5):
    # Two-pass reference form (mathematically identical), used by the pure-JAX reference.
    mu = jnp.mean(x, axis=-1, keepdims=True)
    var = jnp.mean((x - mu) ** 2, axis=-1, keepdims=True)
    return (x - mu) * lax.rsqrt(var + eps) * g + b


def _gelu_tanh(x):
    # matches torch.nn.GELU(approximate='tanh')
    c = math.sqrt(2.0 / math.pi)
    return 0.5 * x * (1.0 + jnp.tanh(c * (x + 0.044715 * x * x * x)))


def gpt_forward_kernel(n_layers, n_heads, tail,
                       x_ref,
                       qkvw_ref, qkvb_ref, ow_ref, ob_ref,
                       w1_ref, b1_ref, w2_ref, b2_ref,
                       lng_ref, lnb_ref, lmw_ref, lmb_ref,
                       o_ref):
    T, C = x_ref.shape
    H = n_heads
    D = C // H
    g = lng_ref[...]       # (1, C) shared (frozen) LayerNorm gamma
    beta = lnb_ref[...]    # (1, C) shared (frozen) LayerNorm beta

    # Additive causal bias, hoisted once before the layer loop (kept (T,T) f32;
    # broadcasts over the head axis for free on the VPU).
    rows = lax.broadcasted_iota(jnp.int32, (T, T), 0)
    cols = lax.broadcasted_iota(jnp.int32, (T, T), 1)
    mask_bias = jnp.where(rows >= cols, 0.0, -1e30).astype(jnp.float32)

    x = x_ref[...]                                             # (T, C) f32
    for l in range(n_layers):                                  # static unroll (toy size)
        # ---- self attention: x = x + Wo(softmax(QK^T * scale + bias) V) ----
        xl = _layernorm(x, g, beta)
        # One fused lane-dense QKV projection (1/sqrt(D) pre-folded into Q slice).
        qkv = jnp.dot(xl.astype(jnp.bfloat16), qkvw_ref[l],
                      preferred_element_type=jnp.float32) + qkvb_ref[l]   # (T, 3C) f32
        # Split heads only for the tiny per-head attention matmuls.
        q = qkv[:, 0 * C:1 * C].reshape(T, H, D).transpose(1, 0, 2)       # (H, T, D)
        k = qkv[:, 1 * C:2 * C].reshape(T, H, D).transpose(1, 0, 2)
        v = qkv[:, 2 * C:3 * C].reshape(T, H, D).transpose(1, 0, 2)

        att = jnp.einsum('htd,hsd->hts', q.astype(jnp.bfloat16),
                         k.astype(jnp.bfloat16),
                         preferred_element_type=jnp.float32) + mask_bias  # (H, T, T) f32
        m = jnp.max(att, axis=-1, keepdims=True)
        e = jnp.exp(att - m)
        p = e * pl.reciprocal(jnp.sum(e, axis=-1, keepdims=True), approx=True)

        yh = jnp.einsum('hts,hsd->htd', p.astype(jnp.bfloat16),
                        v.astype(jnp.bfloat16),
                        preferred_element_type=jnp.float32)               # (H, T, D) f32
        # Reassemble heads to (T, C) and do ONE fused out-projection.
        y = yh.transpose(1, 0, 2).reshape(T, C)
        y = jnp.dot(y.astype(jnp.bfloat16), ow_ref[l],
                    preferred_element_type=jnp.float32) + ob_ref[l]
        x = x + y

        # ---- MLP: x = x + W2 gelu(W1 ln(x) + b1) + b2 ----
        xl = _layernorm(x, g, beta)
        h1 = jnp.dot(xl.astype(jnp.bfloat16), w1_ref[l],
                     preferred_element_type=jnp.float32) + b1_ref[l]
        h1 = _gelu_tanh(h1)
        h2 = jnp.dot(h1.astype(jnp.bfloat16), w2_ref[l],
                     preferred_element_type=jnp.float32) + b2_ref[l]
        x = x + h2

    # ---- final LN + lm_head on the trailing rows only (lane-dense (tail, Vp) store) ----
    x = _layernorm(x, g, beta)
    x_tail = x[T - tail:, :]                                   # static sublane slice
    o_ref[...] = jnp.dot(x_tail.astype(jnp.bfloat16), lmw_ref[...],
                         preferred_element_type=jnp.float32) + lmb_ref[...]


def prepare_params(raw, n_layers, n_heads, lane=128):
    """Reshape/scale the raw GPT params into the kernel's (lane-dense, fused) layout.

    - qkv kept fused: weights (L, C, 3C) bf16, biases (L, 1, 3C) f32,
      with 1/sqrt(D) folded into the Q columns
    - out_proj kept fused (L, C, C) bf16
    - lm_head padded to a 128-lane-dense vocab
    - all matmul weights stored bf16 (MXU operands); biases / LN stay f32
    """
    C = raw["ln_g"].shape[-1]
    D = C // n_heads
    V = raw["lm_w"].shape[1]
    Vp = ((V + lane - 1) // lane) * lane
    scale = 1.0 / math.sqrt(D)
    bf16 = jnp.bfloat16

    qkv_w = jnp.asarray(raw["qkv_w"]).at[:, :, 0:C].multiply(scale)
    qkv_b = jnp.asarray(raw["qkv_b"]).at[:, :, 0:C].multiply(scale)

    return {
        "qkv_w": qkv_w.astype(bf16),
        "qkv_b": qkv_b.astype(jnp.float32),
        "out_w": raw["out_w"].astype(bf16),
        "out_b": raw["out_b"].astype(jnp.float32),
        "w1": raw["w1"].astype(bf16),
        "b1": raw["b1"].astype(jnp.float32),
        "w2": raw["w2"].astype(bf16),
        "b2": raw["b2"].astype(jnp.float32),
        "ln_g": raw["ln_g"].astype(jnp.float32),
        "ln_b": raw["ln_b"].astype(jnp.float32),
        "lm_w": jnp.pad(raw["lm_w"], ((0, 0), (0, Vp - V))).astype(bf16),
        "lm_b": jnp.pad(raw["lm_b"], ((0, 0), (0, Vp - V))).astype(jnp.float32),
        "vocab_size": V,
    }


def gpt_forward(x_emb, prep, n_layers, n_heads):
    """x_emb: (T, C) f32 = wte[idx] + wpe[:T]; returns (1, V) last-token logits."""
    T, C = x_emb.shape
    H, D = n_heads, C // n_heads
    V = prep["vocab_size"]
    Vp = prep["lm_w"].shape[1]
    tail = min(8, T)   # trailing sublane tile: lm_head only on the last `tail` rows

    kernel = partial(gpt_forward_kernel, n_layers, n_heads, tail)
    vmem = pl.BlockSpec(memory_space=pltpu.MemorySpace.VMEM)

    args = (x_emb.astype(jnp.float32),
            prep["qkv_w"], prep["qkv_b"], prep["out_w"], prep["out_b"],
            prep["w1"], prep["b1"], prep["w2"], prep["b2"],
            prep["ln_g"], prep["ln_b"], prep["lm_w"], prep["lm_b"])

    # Advisory cost estimate for the XLA scheduler around this custom call.
    flops_per_layer = 2 * T * C * C * (3 + 1 + 4) + 4 * H * T * T * D
    flops = n_layers * flops_per_layer + 2 * tail * C * Vp
    transcendentals = n_layers * (H * T * T + 2 * T * C + H * T) + (2 * n_layers + 1) * T
    bytes_accessed = int(sum(a.size * a.dtype.itemsize for a in args) + tail * Vp * 4)

    logits_tail = pl.pallas_call(
        kernel,
        out_shape=jax.ShapeDtypeStruct((tail, Vp), jnp.float32),
        in_specs=[vmem] * len(args),
        out_specs=vmem,
        cost_estimate=pl.CostEstimate(flops=int(flops),
                                      transcendentals=int(transcendentals),
                                      bytes_accessed=bytes_accessed),
    )(*args)
    # Last-token logits, valid vocab columns only (matches `lm_head(x)[-1]`).
    return logits_tail[tail - 1:tail, :V]


def reference_forward(x_emb, raw, n_layers, n_heads):
    """Pure-JAX f32 reference mirroring the PyTorch forward (last-token logits, (1, V))."""
    T, C = x_emb.shape
    D = C // n_heads
    g, beta = raw["ln_g"], raw["ln_b"]
    causal = jnp.tril(jnp.ones((T, T), dtype=bool))
    x = x_emb
    for l in range(n_layers):
        xl = _layernorm_ref(x, g, beta)
        qkv = xl @ raw["qkv_w"][l] + raw["qkv_b"][l]
        q, k, v = jnp.split(qkv, 3, axis=1)
        q = q.reshape(T, n_heads, D).transpose(1, 0, 2)
        k = k.reshape(T, n_heads, D).transpose(1, 0, 2)
        v = v.reshape(T, n_heads, D).transpose(1, 0, 2)
        att = jnp.einsum('htd,hsd->hts', q, k) / math.sqrt(D)
        att = jnp.where(causal[None], att, -jnp.inf)
        att = jax.nn.softmax(att, axis=-1)
        y = jnp.einsum('hts,hsd->htd', att, v).transpose(1, 0, 2).reshape(T, C)
        x = x + (y @ raw["out_w"][l] + raw["out_b"][l])
        xl = _layernorm_ref(x, g, beta)
        h1 = _gelu_tanh(xl @ raw["w1"][l] + raw["b1"][l])
        x = x + (h1 @ raw["w2"][l] + raw["b2"][l])
    x = _layernorm_ref(x, g, beta)
    return x[T - 1:T, :] @ raw["lm_w"] + raw["lm_b"]


if __name__ == "__main__":
    # Small shapes consistent with the module (5 layers, 4 heads).
    vocab_size = 16        # len(tokens)
    context_length = 16
    n_layers = 5
    n_heads = 4
    n_embd = 32
    T = 8                  # current sequence length (T <= context_length)

    key = jax.random.PRNGKey(0)
    ks = jax.random.split(key, 16)

    def init(k, shape, scale=0.02):
        return (scale * jax.random.normal(k, shape)).astype(jnp.float32)

    wte = init(ks[0], (vocab_size, n_embd), 1.0)          # nn.Embedding ~ N(0,1)
    wpe = init(ks[1], (context_length, n_embd), 1.0)

    raw_params = {
        "qkv_w": init(ks[2], (n_layers, n_embd, 3 * n_embd)),
        "qkv_b": init(ks[3], (n_layers, 1, 3 * n_embd)),
        "out_w": init(ks[4], (n_layers, n_embd, n_embd)),
        "out_b": init(ks[5], (n_layers, 1, n_embd)),
        "w1":    init(ks[6], (n_layers, n_embd, 2 * n_embd)),
        "b1":    init(ks[7], (n_layers, 1, 2 * n_embd)),
        "w2":    init(ks[8], (n_layers, 2 * n_embd, n_embd)),
        "b2":    init(ks[9], (n_layers, 1, n_embd)),
        "ln_g":  jnp.ones((1, n_embd), jnp.float32),      # shared frozen LayerNorm
        "ln_b":  jnp.zeros((1, n_embd), jnp.float32),
        "lm_w":  init(ks[10], (n_embd, vocab_size)),
        "lm_b":  init(ks[11], (1, vocab_size)),
    }

    prep = prepare_params(raw_params, n_layers, n_heads)

    idx = jax.random.randint(ks[12], (T,), 0, vocab_size)  # token indices (T,)
    x_emb = wte[idx] + wpe[:T]                              # embedding gather = JAX glue

    logits = gpt_forward(x_emb, prep, n_layers, n_heads)
    logits = jax.block_until_ready(logits)

    ref = reference_forward(x_emb, raw_params, n_layers, n_heads)
    assert logits.shape == (1, vocab_size)
    # Kernel uses bf16 MXU operands + approx reciprocal in softmax; compare against the
    # f32 reference with a tolerance comfortably above bf16 rounding but far below the
    # logit scale.
    assert jnp.allclose(logits, ref, atol=5e-3, rtol=5e-3), "mismatch vs JAX reference"
    print("KERNEL_OK")
</pallas_src>

<mosaic_0001>
module attributes {stable_mosaic.version = 11 : i64} {
  func.func @gpt_forward_kernel(%arg0: memref<8x32xf32, #tpu.memory_space<vmem>>, %arg1: memref<5x32x96xbf16, #tpu.memory_space<vmem>>, %arg2: memref<5x1x96xf32, #tpu.memory_space<vmem>>, %arg3: memref<5x32x32xbf16, #tpu.memory_space<vmem>>, %arg4: memref<5x1x32xf32, #tpu.memory_space<vmem>>, %arg5: memref<5x32x64xbf16, #tpu.memory_space<vmem>>, %arg6: memref<5x1x64xf32, #tpu.memory_space<vmem>>, %arg7: memref<5x64x32xbf16, #tpu.memory_space<vmem>>, %arg8: memref<5x1x32xf32, #tpu.memory_space<vmem>>, %arg9: memref<1x32xf32, #tpu.memory_space<vmem>>, %arg10: memref<1x32xf32, #tpu.memory_space<vmem>>, %arg11: memref<32x128xbf16, #tpu.memory_space<vmem>>, %arg12: memref<1x128xf32, #tpu.memory_space<vmem>>, %arg13: memref<8x128xf32, #tpu.memory_space<vmem>>) attributes {dimension_semantics = [], scalar_prefetch = 0 : i64, scratch_operands = 0 : i64, tpu.core_type = #tpu.core_type<tc>} {
    %c0 = arith.constant 0 : index
    %c0_0 = arith.constant 0 : index
    %0 = vector.load %arg9[%c0, %c0_0] : memref<1x32xf32, #tpu.memory_space<vmem>>, vector<1x32xf32>
    %c0_1 = arith.constant 0 : index
    %c0_2 = arith.constant 0 : index
    %1 = vector.load %arg10[%c0_1, %c0_2] : memref<1x32xf32, #tpu.memory_space<vmem>>, vector<1x32xf32>
    %2 = tpu.iota {dimensions = array<i32: 0>} : vector<8x8xi32>
    %3 = tpu.iota {dimensions = array<i32: 1>} : vector<8x8xi32>
    %4 = arith.cmpi sge, %2, %3 : vector<8x8xi32>
    %cst = arith.constant 0.000000e+00 : f32
    %cst_3 = arith.constant -1.000000e+30 : f32
    %5 = vector.broadcast %cst : f32 to vector<8x8xf32>
    %6 = vector.broadcast %cst_3 : f32 to vector<8x8xf32>
    %7 = arith.select %4, %5, %6 : vector<8x8xi1>, vector<8x8xf32>
    %c0_4 = arith.constant 0 : index
    %c0_5 = arith.constant 0 : index
    %8 = vector.load %arg0[%c0_4, %c0_5] : memref<8x32xf32, #tpu.memory_space<vmem>>, vector<8x32xf32>
    %cst_6 = arith.constant dense<0.000000e+00> : vector<8xf32>
    %9 = vector.multi_reduction <add>, %8, %cst_6 [1] : vector<8x32xf32> to vector<8xf32>
    %10 = vector.shape_cast %9 : vector<8xf32> to vector<8x1xf32>
    %cst_7 = arith.constant 3.200000e+01 : f32
    %11 = vector.broadcast %cst_7 : f32 to vector<8x1xf32>
    %12 = arith.divf %10, %11 : vector<8x1xf32>
    %13 = arith.mulf %8, %8 : vector<8x32xf32>
    %cst_8 = arith.constant dense<0.000000e+00> : vector<8xf32>
    %14 = vector.multi_reduction <add>, %13, %cst_8 [1] : vector<8x32xf32> to vector<8xf32>
    %15 = vector.shape_cast %14 : vector<8xf32> to vector<8x1xf32>
    %cst_9 = arith.constant 3.200000e+01 : f32
    %16 = vector.broadcast %cst_9 : f32 to vector<8x1xf32>
    %17 = arith.divf %15, %16 : vector<8x1xf32>
    %18 = arith.mulf %12, %12 : vector<8x1xf32>
    %19 = arith.subf %17, %18 : vector<8x1xf32>
    %20 = vector.broadcast %12 : vector<8x1xf32> to vector<8x32xf32>
    %21 = arith.subf %8, %20 : vector<8x32xf32>
    %cst_10 = arith.constant 9.99999974E-6 : f32
    %22 = vector.broadcast %cst_10 : f32 to vector<8x1xf32>
    %23 = arith.addf %19, %22 : vector<8x1xf32>
    %24 = math.rsqrt %23 : vector<8x1xf32>
    %25 = vector.broadcast %24 : vector<8x1xf32> to vector<8x32xf32>
    %26 = arith.mulf %21, %25 : vector<8x32xf32>
    %27 = vector.broadcast %0 : vector<1x32xf32> to vector<8x32xf32>
    %28 = arith.mulf %26, %27 : vector<8x32xf32>
    %29 = vector.broadcast %1 : vector<1x32xf32> to vector<8x32xf32>
    %30 = arith.addf %28, %29 : vector<8x32xf32>
    %31 = arith.truncf %30 : vector<8x32xf32> to vector<8x32xbf16>
    %c0_11 = arith.constant 0 : index
    %c0_12 = arith.constant 0 : index
    %c0_13 = arith.constant 0 : index
    %32 = vector.load %arg1[%c0_11, %c0_12, %c0_13] : memref<5x32x96xbf16, #tpu.memory_space<vmem>>, vector<1x32x96xbf16>
    %33 = vector.shape_cast %32 : vector<1x32x96xbf16> to vector<32x96xbf16>
    %cst_14 = arith.constant dense<0.000000e+00> : vector<8x96xf32>
    %34 = tpu.matmul %31, %33, %cst_14 {dimension_numbers = #tpu.dot_dimension_numbers<[1], [0], [0], [1], [0, 0, 1, 1], [], []>} : vector<8x32xbf16>, vector<32x96xbf16>, vector<8x96xf32> -> vector<8x96xf32>
    %c0_15 = arith.constant 0 : index
    %c0_16 = arith.constant 0 : index
    %c0_17 = arith.constant 0 : index
    %35 = vector.load %arg2[%c0_15, %c0_16, %c0_17] : memref<5x1x96xf32, #tpu.memory_space<vmem>>, vector<1x1x96xf32>
    %36 = vector.shape_cast %35 : vector<1x1x96xf32> to vector<1x96xf32>
    %37 = vector.broadcast %36 : vector<1x96xf32> to vector<8x96xf32>
    %38 = arith.addf %34, %37 : vector<8x96xf32>
    %39 = vector.extract_strided_slice %38 {offsets = [0, 0], sizes = [8, 32], strides = [1, 1]} : vector<8x96xf32> to vector<8x32xf32>
    %40 = vector.shape_cast %39 : vector<8x32xf32> to vector<8x4x8xf32>
    %41 = tpu.transpose %40, [1, 0, 2] : vector<8x4x8xf32> -> vector<4x8x8xf32>
    %42 = vector.extract_strided_slice %38 {offsets = [0, 32], sizes = [8, 32], strides = [1, 1]} : vector<8x96xf32> to vector<8x32xf32>
    %43 = vector.shape_cast %42 : vector<8x32xf32> to vector<8x4x8xf32>
    %44 = tpu.transpose %43, [1, 0, 2] : vector<8x4x8xf32> -> vector<4x8x8xf32>
    %45 = vector.extract_strided_slice %38 {offsets = [0, 64], sizes = [8, 32], strides = [1, 1]} : vector<8x96xf32> to vector<8x32xf32>
    %46 = vector.shape_cast %45 : vector<8x32xf32> to vector<8x4x8xf32>
    %47 = tpu.transpose %46, [1, 0, 2] : vector<8x4x8xf32> -> vector<4x8x8xf32>
    %48 = arith.truncf %41 : vector<4x8x8xf32> to vector<4x8x8xbf16>
    %49 = arith.truncf %44 : vector<4x8x8xf32> to vector<4x8x8xbf16>
    "tpu.trace_start"() <{level = 10 : i32, message = "htd,hsd->hts"}> : () -> ()
    %cst_18 = arith.constant dense<0.000000e+00> : vector<4x8x8xf32>
    %50 = tpu.matmul %48, %49, %cst_18 {dimension_numbers = #tpu.dot_dimension_numbers<[2], [2], [1], [1], [0, 0, 0, 1, 1, 1], [0], [0]>} : vector<4x8x8xbf16>, vector<4x8x8xbf16>, vector<4x8x8xf32> -> vector<4x8x8xf32>
    "tpu.trace_stop"() : () -> ()
    %51 = vector.shape_cast %7 : vector<8x8xf32> to vector<1x8x8xf32>
    %52 = vector.broadcast %51 : vector<1x8x8xf32> to vector<4x8x8xf32>
    %53 = arith.addf %50, %52 : vector<4x8x8xf32>
    %cst_19 = arith.constant dense<0xFF800000> : vector<4x8xf32>
    %54 = vector.multi_reduction <maximumf>, %53, %cst_19 [2] : vector<4x8x8xf32> to vector<4x8xf32>
    %55 = vector.shape_cast %54 : vector<4x8xf32> to vector<4x8x1xf32>
    %56 = vector.broadcast %55 : vector<4x8x1xf32> to vector<4x8x8xf32>
    %57 = arith.subf %53, %56 : vector<4x8x8xf32>
    %58 = math.exp %57 : vector<4x8x8xf32>
    %cst_20 = arith.constant dense<0.000000e+00> : vector<4x8xf32>
    %59 = vector.multi_reduction <add>, %58, %cst_20 [2] : vector<4x8x8xf32> to vector<4x8xf32>
    %60 = vector.shape_cast %59 : vector<4x8xf32> to vector<4x8x1xf32>
    %61 = tpu.reciprocal %60 {approx = true} : vector<4x8x1xf32> -> vector<4x8x1xf32>
    %62 = vector.broadcast %61 : vector<4x8x1xf32> to vector<4x8x8xf32>
    %63 = arith.mulf %58, %62 : vector<4x8x8xf32>
    %64 = arith.truncf %63 : vector<4x8x8xf32> to vector<4x8x8xbf16>
    %65 = arith.truncf %47 : vector<4x8x8xf32> to vector<4x8x8xbf16>
    "tpu.trace_start"() <{level = 10 : i32, message = "hts,hsd->htd"}> : () -> ()
    %cst_21 = arith.constant dense<0.000000e+00> : vector<4x8x8xf32>
    %66 = tpu.matmul %64, %65, %cst_21 {dimension_numbers = #tpu.dot_dimension_numbers<[2], [1], [1], [2], [0, 0, 0, 1, 1, 2], [0], [0]>} : vector<4x8x8xbf16>, vector<4x8x8xbf16>, vector<4x8x8xf32> -> vector<4x8x8xf32>
    "tpu.trace_stop"() : () -> ()
    %67 = tpu.transpose %66, [1, 0, 2] : vector<4x8x8xf32> -> vector<8x4x8xf32>
    %68 = vector.shape_cast %67 : vector<8x4x8xf32> to vector<8x32xf32>
    %69 = arith.truncf %68 : vector<8x32xf32> to vector<8x32xbf16>
    %c0_22 = arith.constant 0 : index
    %c0_23 = arith.constant 0 : index
    %c0_24 = arith.constant 0 : index
    %70 = vector.load %arg3[%c0_22, %c0_23, %c0_24] : memref<5x32x32xbf16, #tpu.memory_space<vmem>>, vector<1x32x32xbf16>
    %71 = vector.shape_cast %70 : vector<1x32x32xbf16> to vector<32x32xbf16>
    %cst_25 = arith.constant dense<0.000000e+00> : vector<8x32xf32>
    %72 = tpu.matmul %69, %71, %cst_25 {dimension_numbers = #tpu.dot_dimension_numbers<[1], [0], [0], [1], [0, 0, 1, 1], [], []>} : vector<8x32xbf16>, vector<32x32xbf16>, vector<8x32xf32> -> vector<8x32xf32>
    %c0_26 = arith.constant 0 : index
    %c0_27 = arith.constant 0 : index
    %c0_28 = arith.constant 0 : index
    %73 = vector.load %arg4[%c0_26, %c0_27, %c0_28] : memref<5x1x32xf32, #tpu.memory_space<vmem>>, vector<1x1x32xf32>
    %74 = vector.shape_cast %73 : vector<1x1x32xf32> to vector<1x32xf32>
    %75 = vector.broadcast %74 : vector<1x32xf32> to vector<8x32xf32>
    %76 = arith.addf %72, %75 : vector<8x32xf32>
    %77 = arith.addf %8, %76 : vector<8x32xf32>
    %cst_29 = arith.constant dense<0.000000e+00> : vector<8xf32>
    %78 = vector.multi_reduction <add>, %77, %cst_29 [1] : vector<8x32xf32> to vector<8xf32>
    %79 = vector.shape_cast %78 : vector<8xf32> to vector<8x1xf32>
    %cst_30 = arith.constant 3.200000e+01 : f32
    %80 = vector.broadcast %cst_30 : f32 to vector<8x1xf32>
    %81 = arith.divf %79, %80 : vector<8x1xf32>
    %82 = arith.mulf %77, %77 : vector<8x32xf32>
    %cst_31 = arith.constant dense<0.000000e+00> : vector<8xf32>
    %83 = vector.multi_reduction <add>, %82, %cst_31 [1] : vector<8x32xf32> to vector<8xf32>
    %84 = vector.shape_cast %83 : vector<8xf32> to vector<8x1xf32>
    %cst_32 = arith.constant 3.200000e+01 : f32
    %85 = vector.broadcast %cst_32 : f32 to vector<8x1xf32>
    %86 = arith.divf %84, %85 : vector<8x1xf32>
    %87 = arith.mulf %81, %81 : vector<8x1xf32>
    %88 = arith.subf %86, %87 : vector<8x1xf32>
    %89 = vector.broadcast %81 : vector<8x1xf32> to vector<8x32xf32>
    %90 = arith.subf %77, %89 : vector<8x32xf32>
    %cst_33 = arith.constant 9.99999974E-6 : f32
    %91 = vector.broadcast %cst_33 : f32 to vector<8x1xf32>
    %92 = arith.addf %88, %91 : vector<8x1xf32>
    %93 = math.rsqrt %92 : vector<8x1xf32>
    %94 = vector.broadcast %93 : vector<8x1xf32> to vector<8x32xf32>
    %95 = arith.mulf %90, %94 : vector<8x32xf32>
    %96 = vector.broadcast %0 : vector<1x32xf32> to vector<8x32xf32>
    %97 = arith.mulf %95, %96 : vector<8x32xf32>
    %98 = vector.broadcast %1 : vector<1x32xf32> to vector<8x32xf32>
    %99 = arith.addf %97, %98 : vector<8x32xf32>
    %100 = arith.truncf %99 : vector<8x32xf32> to vector<8x32xbf16>
    %c0_34 = arith.constant 0 : index
    %c0_35 = arith.constant 0 : index
    %c0_36 = arith.constant 0 : index
    %101 = vector.load %arg5[%c0_34, %c0_35, %c0_36] : memref<5x32x64xbf16, #tpu.memory_space<vmem>>, vector<1x32x64xbf16>
    %102 = vector.shape_cast %101 : vector<1x32x64xbf16> to vector<32x64xbf16>
    %cst_37 = arith.constant dense<0.000000e+00> : vector<8x64xf32>
    %103 = tpu.matmul %100, %102, %cst_37 {dimension_numbers = #tpu.dot_dimension_numbers<[1], [0], [0], [1], [0, 0, 1, 1], [], []>} : vector<8x32xbf16>, vector<32x64xbf16>, vector<8x64xf32> -> vector<8x64xf32>
    %c0_38 = arith.constant 0 : index
    %c0_39 = arith.constant 0 : index
    %c0_40 = arith.constant 0 : index
    %104 = vector.load %arg6[%c0_38, %c0_39, %c0_40] : memref<5x1x64xf32, #tpu.memory_space<vmem>>, vector<1x1x64xf32>
    %105 = vector.shape_cast %104 : vector<1x1x64xf32> to vector<1x64xf32>
    %106 = vector.broadcast %105 : vector<1x64xf32> to vector<8x64xf32>
    %107 = arith.addf %103, %106 : vector<8x64xf32>
    %cst_41 = arith.constant 5.000000e-01 : f32
    %108 = vector.broadcast %cst_41 : f32 to vector<8x64xf32>
    %109 = arith.mulf %108, %107 : vector<8x64xf32>
    %cst_42 = arith.constant 4.471500e-02 : f32
    %110 = vector.broadcast %cst_42 : f32 to vector<8x64xf32>
    %111 = arith.mulf %110, %107 : vector<8x64xf32>
    %112 = arith.mulf %111, %107 : vector<8x64xf32>
    %113 = arith.mulf %112, %107 : vector<8x64xf32>
    %114 = arith.addf %107, %113 : vector<8x64xf32>
    %cst_43 = arith.constant 0.797884583 : f32
    %115 = vector.broadcast %cst_43 : f32 to vector<8x64xf32>
    %116 = arith.mulf %115, %114 : vector<8x64xf32>
    %117 = math.tanh %116 : vector<8x64xf32>
    %cst_44 = arith.constant 1.000000e+00 : f32
    %118 = vector.broadcast %cst_44 : f32 to vector<8x64xf32>
    %119 = arith.addf %118, %117 : vector<8x64xf32>
    %120 = arith.mulf %109, %119 : vector<8x64xf32>
    %121 = arith.truncf %120 : vector<8x64xf32> to vector<8x64xbf16>
    %c0_45 = arith.constant 0 : index
    %c0_46 = arith.constant 0 : index
    %c0_47 = arith.constant 0 : index
    %122 = vector.load %arg7[%c0_45, %c0_46, %c0_47] : memref<5x64x32xbf16, #tpu.memory_space<vmem>>, vector<1x64x32xbf16>
    %123 = vector.shape_cast %122 : vector<1x64x32xbf16> to vector<64x32xbf16>
    %cst_48 = arith.constant dense<0.000000e+00> : vector<8x32xf32>
    %124 = tpu.matmul %121, %123, %cst_48 {dimension_numbers = #tpu.dot_dimension_numbers<[1], [0], [0], [1], [0, 0, 1, 1], [], []>} : vector<8x64xbf16>, vector<64x32xbf16>, vector<8x32xf32> -> vector<8x32xf32>
    %c0_49 = arith.constant 0 : index
    %c0_50 = arith.constant 0 : index
    %c0_51 = arith.constant 0 : index
    %125 = vector.load %arg8[%c0_49, %c0_50, %c0_51] : memref<5x1x32xf32, #tpu.memory_space<vmem>>, vector<1x1x32xf32>
    %126 = vector.shape_cast %125 : vector<1x1x32xf32> to vector<1x32xf32>
    %127 = vector.broadcast %126 : vector<1x32xf32> to vector<8x32xf32>
    %128 = arith.addf %124, %127 : vector<8x32xf32>
    %129 = arith.addf %77, %128 : vector<8x32xf32>
    %cst_52 = arith.constant dense<0.000000e+00> : vector<8xf32>
    %130 = vector.multi_reduction <add>, %129, %cst_52 [1] : vector<8x32xf32> to vector<8xf32>
    %131 = vector.shape_cast %130 : vector<8xf32> to vector<8x1xf32>
    %cst_53 = arith.constant 3.200000e+01 : f32
    %132 = vector.broadcast %cst_53 : f32 to vector<8x1xf32>
    %133 = arith.divf %131, %132 : vector<8x1xf32>
    %134 = arith.mulf %129, %129 : vector<8x32xf32>
    %cst_54 = arith.constant dense<0.000000e+00> : vector<8xf32>
    %135 = vector.multi_reduction <add>, %134, %cst_54 [1] : vector<8x32xf32> to vector<8xf32>
    %136 = vector.shape_cast %135 : vector<8xf32> to vector<8x1xf32>
    %cst_55 = arith.constant 3.200000e+01 : f32
    %137 = vector.broadcast %cst_55 : f32 to vector<8x1xf32>
    %138 = arith.divf %136, %137 : vector<8x1xf32>
    %139 = arith.mulf %133, %133 : vector<8x1xf32>
    %140 = arith.subf %138, %139 : vector<8x1xf32>
    %141 = vector.broadcast %133 : vector<8x1xf32> to vector<8x32xf32>
    %142 = arith.subf %129, %141 : vector<8x32xf32>
    %cst_56 = arith.constant 9.99999974E-6 : f32
    %143 = vector.broadcast %cst_56 : f32 to vector<8x1xf32>
    %144 = arith.addf %140, %143 : vector<8x1xf32>
    %145 = math.rsqrt %144 : vector<8x1xf32>
    %146 = vector.broadcast %145 : vector<8x1xf32> to vector<8x32xf32>
    %147 = arith.mulf %142, %146 : vector<8x32xf32>
    %148 = vector.broadcast %0 : vector<1x32xf32> to vector<8x32xf32>
    %149 = arith.mulf %147, %148 : vector<8x32xf32>
    %150 = vector.broadcast %1 : vector<1x32xf32> to vector<8x32xf32>
    %151 = arith.addf %149, %150 : vector<8x32xf32>
    %152 = arith.truncf %151 : vector<8x32xf32> to vector<8x32xbf16>
    %c1 = arith.constant 1 : index
    %c0_57 = arith.constant 0 : index
    %c0_58 = arith.constant 0 : index
    %153 = vector.load %arg1[%c1, %c0_57, %c0_58] : memref<5x32x96xbf16, #tpu.memory_space<vmem>>, vector<1x32x96xbf16>
    %154 = vector.shape_cast %153 : vector<1x32x96xbf16> to vector<32x96xbf16>
    %cst_59 = arith.constant dense<0.000000e+00> : vector<8x96xf32>
    %155 = tpu.matmul %152, %154, %cst_59 {dimension_numbers = #tpu.dot_dimension_numbers<[1], [0], [0], [1], [0, 0, 1, 1], [], []>} : vector<8x32xbf16>, vector<32x96xbf16>, vector<8x96xf32> -> vector<8x96xf32>
    %c1_60 = arith.constant 1 : index
    %c0_61 = arith.constant 0 : index
    %c0_62 = arith.constant 0 : index
    %156 = vector.load %arg2[%c1_60, %c0_61, %c0_62] : memref<5x1x96xf32, #tpu.memory_space<vmem>>, vector<1x1x96xf32>
    %157 = vector.shape_cast %156 : vector<1x1x96xf32> to vector<1x96xf32>
    %158 = vector.broadcast %157 : vector<1x96xf32> to vector<8x96xf32>
    %159 = arith.addf %155, %158 : vector<8x96xf32>
    %160 = vector.extract_strided_slice %159 {offsets = [0, 0], sizes = [8, 32], strides = [1, 1]} : vector<8x96xf32> to vector<8x32xf32>
    %161 = vector.shape_cast %160 : vector<8x32xf32> to vector<8x4x8xf32>
    %162 = tpu.transpose %161, [1, 0, 2] : vector<8x4x8xf32> -> vector<4x8x8xf32>
    %163 = vector.extract_strided_slice %159 {offsets = [0, 32], sizes = [8, 32], strides = [1, 1]} : vector<8x96xf32> to vector<8x32xf32>
    %164 = vector.shape_cast %163 : vector<8x32xf32> to vector<8x4x8xf32>
    %165 = tpu.transpose %164, [1, 0, 2] : vector<8x4x8xf32> -> vector<4x8x8xf32>
    %166 = vector.extract_strided_slice %159 {offsets = [0, 64], sizes = [8, 32], strides = [1, 1]} : vector<8x96xf32> to vector<8x32xf32>
    %167 = vector.shape_cast %166 : vector<8x32xf32> to vector<8x4x8xf32>
    %168 = tpu.transpose %167, [1, 0, 2] : vector<8x4x8xf32> -> vector<4x8x8xf32>
    %169 = arith.truncf %162 : vector<4x8x8xf32> to vector<4x8x8xbf16>
    %170 = arith.truncf %165 : vector<4x8x8xf32> to vector<4x8x8xbf16>
    "tpu.trace_start"() <{level = 10 : i32, message = "htd,hsd->hts"}> : () -> ()
    %cst_63 = arith.constant dense<0.000000e+00> : vector<4x8x8xf32>
    %171 = tpu.matmul %169, %170, %cst_63 {dimension_numbers = #tpu.dot_dimension_numbers<[2], [2], [1], [1], [0, 0, 0, 1, 1, 1], [0], [0]>} : vector<4x8x8xbf16>, vector<4x8x8xbf16>, vector<4x8x8xf32> -> vector<4x8x8xf32>
    "tpu.trace_stop"() : () -> ()
    %172 = vector.shape_cast %7 : vector<8x8xf32> to vector<1x8x8xf32>
    %173 = vector.broadcast %172 : vector<1x8x8xf32> to vector<4x8x8xf32>
    %174 = arith.addf %171, %173 : vector<4x8x8xf32>
    %cst_64 = arith.constant dense<0xFF800000> : vector<4x8xf32>
    %175 = vector.multi_reduction <maximumf>, %174, %cst_64 [2] : vector<4x8x8xf32> to vector<4x8xf32>
    %176 = vector.shape_cast %175 : vector<4x8xf32> to vector<4x8x1xf32>
    %177 = vector.broadcast %176 : vector<4x8x1xf32> to vector<4x8x8xf32>
    %178 = arith.subf %174, %177 : vector<4x8x8xf32>
    %179 = math.exp %178 : vector<4x8x8xf32>
    %cst_65 = arith.constant dense<0.000000e+00> : vector<4x8xf32>
    %180 = vector.multi_reduction <add>, %179, %cst_65 [2] : vector<4x8x8xf32> to vector<4x8xf32>
    %181 = vector.shape_cast %180 : vector<4x8xf32> to vector<4x8x1xf32>
    %182 = tpu.reciprocal %181 {approx = true} : vector<4x8x1xf32> -> vector<4x8x1xf32>
    %183 = vector.broadcast %182 : vector<4x8x1xf32> to vector<4x8x8xf32>
    %184 = arith.mulf %179, %183 : vector<4x8x8xf32>
    %185 = arith.truncf %184 : vector<4x8x8xf32> to vector<4x8x8xbf16>
    %186 = arith.truncf %168 : vector<4x8x8xf32> to vector<4x8x8xbf16>
    "tpu.trace_start"() <{level = 10 : i32, message = "hts,hsd->htd"}> : () -> ()
    %cst_66 = arith.constant dense<0.000000e+00> : vector<4x8x8xf32>
    %187 = tpu.matmul %185, %186, %cst_66 {dimension_numbers = #tpu.dot_dimension_numbers<[2], [1], [1], [2], [0, 0, 0, 1, 1, 2], [0], [0]>} : vector<4x8x8xbf16>, vector<4x8x8xbf16>, vector<4x8x8xf32> -> vector<4x8x8xf32>
    "tpu.trace_stop"() : () -> ()
    %188 = tpu.transpose %187, [1, 0, 2] : vector<4x8x8xf32> -> vector<8x4x8xf32>
    %189 = vector.shape_cast %188 : vector<8x4x8xf32> to vector<8x32xf32>
    %190 = arith.truncf %189 : vector<8x32xf32> to vector<8x32xbf16>
    %c1_67 = arith.constant 1 : index
    %c0_68 = arith.constant 0 : index
    %c0_69 = arith.constant 0 : index
    %191 = vector.load %arg3[%c1_67, %c0_68, %c0_69] : memref<5x32x32xbf16, #tpu.memory_space<vmem>>, vector<1x32x32xbf16>
    %192 = vector.shape_cast %191 : vector<1x32x32xbf16> to vector<32x32xbf16>
    %cst_70 = arith.constant dense<0.000000e+00> : vector<8x32xf32>
    %193 = tpu.matmul %190, %192, %cst_70 {dimension_numbers = #tpu.dot_dimension_numbers<[1], [0], [0], [1], [0, 0, 1, 1], [], []>} : vector<8x32xbf16>, vector<32x32xbf16>, vector<8x32xf32> -> vector<8x32xf32>
    %c1_71 = arith.constant 1 : index
    %c0_72 = arith.constant 0 : index
    %c0_73 = arith.constant 0 : index
    %194 = vector.load %arg4[%c1_71, %c0_72, %c0_73] : memref<5x1x32xf32, #tpu.memory_space<vmem>>, vector<1x1x32xf32>
    %195 = vector.shape_cast %194 : vector<1x1x32xf32> to vector<1x32xf32>
    %196 = vector.broadcast %195 : vector<1x32xf32> to vector<8x32xf32>
    %197 = arith.addf %193, %196 : vector<8x32xf32>
    %198 = arith.addf %129, %197 : vector<8x32xf32>
    %cst_74 = arith.constant dense<0.000000e+00> : vector<8xf32>
    %199 = vector.multi_reduction <add>, %198, %cst_74 [1] : vector<8x32xf32> to vector<8xf32>
    %200 = vector.shape_cast %199 : vector<8xf32> to vector<8x1xf32>
    %cst_75 = arith.constant 3.200000e+01 : f32
    %201 = vector.broadcast %cst_75 : f32 to vector<8x1xf32>
    %202 = arith.divf %200, %201 : vector<8x1xf32>
    %203 = arith.mulf %198, %198 : vector<8x32xf32>
    %cst_76 = arith.constant dense<0.000000e+00> : vector<8xf32>
    %204 = vector.multi_reduction <add>, %203, %cst_76 [1] : vector<8x32xf32> to vector<8xf32>
    %205 = vector.shape_cast %204 : vector<8xf32> to vector<8x1xf32>
    %cst_77 = arith.constant 3.200000e+01 : f32
    %206 = vector.broadcast %cst_77 : f32 to vector<8x1xf32>
    %207 = arith.divf %205, %206 : vector<8x1xf32>
    %208 = arith.mulf %202, %202 : vector<8x1xf32>
    %209 = arith.subf %207, %208 : vector<8x1xf32>
    %210 = vector.broadcast %202 : vector<8x1xf32> to vector<8x32xf32>
    %211 = arith.subf %198, %210 : vector<8x32xf32>
    %cst_78 = arith.constant 9.99999974E-6 : f32
    %212 = vector.broadcast %cst_78 : f32 to vector<8x1xf32>
    %213 = arith.addf %209, %212 : vector<8x1xf32>
    %214 = math.rsqrt %213 : vector<8x1xf32>
    %215 = vector.broadcast %214 : vector<8x1xf32> to vector<8x32xf32>
    %216 = arith.mulf %211, %215 : vector<8x32xf32>
    %217 = vector.broadcast %0 : vector<1x32xf32> to vector<8x32xf32>
    %218 = arith.mulf %216, %217 : vector<8x32xf32>
    %219 = vector.broadcast %1 : vector<1x32xf32> to vector<8x32xf32>
    %220 = arith.addf %218, %219 : vector<8x32xf32>
    %221 = arith.truncf %220 : vector<8x32xf32> to vector<8x32xbf16>
    %c1_79 = arith.constant 1 : index
    %c0_80 = arith.constant 0 : index
    %c0_81 = arith.constant 0 : index
    %222 = vector.load %arg5[%c1_79, %c0_80, %c0_81] : memref<5x32x64xbf16, #tpu.memory_space<vmem>>, vector<1x32x64xbf16>
    %223 = vector.shape_cast %222 : vector<1x32x64xbf16> to vector<32x64xbf16>
    %cst_82 = arith.constant dense<0.000000e+00> : vector<8x64xf32>
    %224 = tpu.matmul %221, %223, %cst_82 {dimension_numbers = #tpu.dot_dimension_numbers<[1], [0], [0], [1], [0, 0, 1, 1], [], []>} : vector<8x32xbf16>, vector<32x64xbf16>, vector<8x64xf32> -> vector<8x64xf32>
    %c1_83 = arith.constant 1 : index
    %c0_84 = arith.constant 0 : index
    %c0_85 = arith.constant 0 : index
    %225 = vector.load %arg6[%c1_83, %c0_84, %c0_85] : memref<5x1x64xf32, #tpu.memory_space<vmem>>, vector<1x1x64xf32>
    %226 = vector.shape_cast %225 : vector<1x1x64xf32> to vector<1x64xf32>
    %227 = vector.broadcast %226 : vector<1x64xf32> to vector<8x64xf32>
    %228 = arith.addf %224, %227 : vector<8x64xf32>
    %cst_86 = arith.constant 5.000000e-01 : f32
    %229 = vector.broadcast %cst_86 : f32 to vector<8x64xf32>
    %230 = arith.mulf %229, %228 : vector<8x64xf32>
    %cst_87 = arith.constant 4.471500e-02 : f32
    %231 = vector.broadcast %cst_87 : f32 to vector<8x64xf32>
    %232 = arith.mulf %231, %228 : vector<8x64xf32>
    %233 = arith.mulf %232, %228 : vector<8x64xf32>
    %234 = arith.mulf %233, %228 : vector<8x64xf32>
    %235 = arith.addf %228, %234 : vector<8x64xf32>
    %cst_88 = arith.constant 0.797884583 : f32
    %236 = vector.broadcast %cst_88 : f32 to vector<8x64xf32>
    %237 = arith.mulf %236, %235 : vector<8x64xf32>
    %238 = math.tanh %237 : vector<8x64xf32>
    %cst_89 = arith.constant 1.000000e+00 : f32
    %239 = vector.broadcast %cst_89 : f32 to vector<8x64xf32>
    %240 = arith.addf %239, %238 : vector<8x64xf32>
    %241 = arith.mulf %230, %240 : vector<8x64xf32>
    %242 = arith.truncf %241 : vector<8x64xf32> to vector<8x64xbf16>
    %c1_90 = arith.constant 1 : index
    %c0_91 = arith.constant 0 : index
    %c0_92 = arith.constant 0 : index
    %243 = vector.load %arg7[%c1_90, %c0_91, %c0_92] : memref<5x64x32xbf16, #tpu.memory_space<vmem>>, vector<1x64x32xbf16>
    %244 = vector.shape_cast %243 : vector<1x64x32xbf16> to vector<64x32xbf16>
    %cst_93 = arith.constant dense<0.000000e+00> : vector<8x32xf32>
    %245 = tpu.matmul %242, %244, %cst_93 {dimension_numbers = #tpu.dot_dimension_numbers<[1], [0], [0], [1], [0, 0, 1, 1], [], []>} : vector<8x64xbf16>, vector<64x32xbf16>, vector<8x32xf32> -> vector<8x32xf32>
    %c1_94 = arith.constant 1 : index
    %c0_95 = arith.constant 0 : index
    %c0_96 = arith.constant 0 : index
    %246 = vector.load %arg8[%c1_94, %c0_95, %c0_96] : memref<5x1x32xf32, #tpu.memory_space<vmem>>, vector<1x1x32xf32>
    %247 = vector.shape_cast %246 : vector<1x1x32xf32> to vector<1x32xf32>
    %248 = vector.broadcast %247 : vector<1x32xf32> to vector<8x32xf32>
    %249 = arith.addf %245, %248 : vector<8x32xf32>
    %250 = arith.addf %198, %249 : vector<8x32xf32>
    %cst_97 = arith.constant dense<0.000000e+00> : vector<8xf32>
    %251 = vector.multi_reduction <add>, %250, %cst_97 [1] : vector<8x32xf32> to vector<8xf32>
    %252 = vector.shape_cast %251 : vector<8xf32> to vector<8x1xf32>
    %cst_98 = arith.constant 3.200000e+01 : f32
    %253 = vector.broadcast %cst_98 : f32 to vector<8x1xf32>
    %254 = arith.divf %252, %253 : vector<8x1xf32>
    %255 = arith.mulf %250, %250 : vector<8x32xf32>
    %cst_99 = arith.constant dense<0.000000e+00> : vector<8xf32>
    %256 = vector.multi_reduction <add>, %255, %cst_99 [1] : vector<8x32xf32> to vector<8xf32>
    %257 = vector.shape_cast %256 : vector<8xf32> to vector<8x1xf32>
    %cst_100 = arith.constant 3.200000e+01 : f32
    %258 = vector.broadcast %cst_100 : f32 to vector<8x1xf32>
    %259 = arith.divf %257, %258 : vector<8x1xf32>
    %260 = arith.mulf %254, %254 : vector<8x1xf32>
    %261 = arith.subf %259, %260 : vector<8x1xf32>
    %262 = vector.broadcast %254 : vector<8x1xf32> to vector<8x32xf32>
    %263 = arith.subf %250, %262 : vector<8x32xf32>
    %cst_101 = arith.constant 9.99999974E-6 : f32
    %264 = vector.broadcast %cst_101 : f32 to vector<8x1xf32>
    %265 = arith.addf %261, %264 : vector<8x1xf32>
    %266 = math.rsqrt %265 : vector<8x1xf32>
    %267 = vector.broadcast %266 : vector<8x1xf32> to vector<8x32xf32>
    %268 = arith.mulf %263, %267 : vector<8x32xf32>
    %269 = vector.broadcast %0 : vector<1x32xf32> to vector<8x32xf32>
    %270 = arith.mulf %268, %269 : vector<8x32xf32>
    %271 = vector.broadcast %1 : vector<1x32xf32> to vector<8x32xf32>
    %272 = arith.addf %270, %271 : vector<8x32xf32>
    %273 = arith.truncf %272 : vector<8x32xf32> to vector<8x32xbf16>
    %c2 = arith.constant 2 : index
    %c0_102 = arith.constant 0 : index
    %c0_103 = arith.constant 0 : index
    %274 = vector.load %arg1[%c2, %c0_102, %c0_103] : memref<5x32x96xbf16, #tpu.memory_space<vmem>>, vector<1x32x96xbf16>
    %275 = vector.shape_cast %274 : vector<1x32x96xbf16> to vector<32x96xbf16>
    %cst_104 = arith.constant dense<0.000000e+00> : vector<8x96xf32>
    %276 = tpu.matmul %273, %275, %cst_104 {dimension_numbers = #tpu.dot_dimension_numbers<[1], [0], [0], [1], [0, 0, 1, 1], [], []>} : vector<8x32xbf16>, vector<32x96xbf16>, vector<8x96xf32> -> vector<8x96xf32>
    %c2_105 = arith.constant 2 : index
    %c0_106 = arith.constant 0 : index
    %c0_107 = arith.constant 0 : index
    %277 = vector.load %arg2[%c2_105, %c0_106, %c0_107] : memref<5x1x96xf32, #tpu.memory_space<vmem>>, vector<1x1x96xf32>
    %278 = vector.shape_cast %277 : vector<1x1x96xf32> to vector<1x96xf32>
    %279 = vector.broadcast %278 : vector<1x96xf32> to vector<8x96xf32>
    %280 = arith.addf %276, %279 : vector<8x96xf32>
    %281 = vector.extract_strided_slice %280 {offsets = [0, 0], sizes = [8, 32], strides = [1, 1]} : vector<8x96xf32> to vector<8x32xf32>
    %282 = vector.shape_cast %281 : vector<8x32xf32> to vector<8x4x8xf32>
    %283 = tpu.transpose %282, [1, 0, 2] : vector<8x4x8xf32> -> vector<4x8x8xf32>
    %284 = vector.extract_strided_slice %280 {offsets = [0, 32], sizes = [8, 32], strides = [1, 1]} : vector<8x96xf32> to vector<8x32xf32>
    %285 = vector.shape_cast %284 : vector<8x32xf32> to vector<8x4x8xf32>
    %286 = tpu.transpose %285, [1, 0, 2] : vector<8x4x8xf32> -> vector<4x8x8xf32>
    %287 = vector.extract_strided_slice %280 {offsets = [0, 64], sizes = [8, 32], strides = [1, 1]} : vector<8x96xf32> to vector<8x32xf32>
    %288 = vector.shape_cast %287 : vector<8x32xf32> to vector<8x4x8xf32>
    %289 = tpu.transpose %288, [1, 0, 2] : vector<8x4x8xf32> -> vector<4x8x8xf32>
    %290 = arith.truncf %283 : vector<4x8x8xf32> to vector<4x8x8xbf16>
    %291 = arith.truncf %286 : vector<4x8x8xf32> to vector<4x8x8xbf16>
    "tpu.trace_start"() <{level = 10 : i32, message = "htd,hsd->hts"}> : () -> ()
    %cst_108 = arith.constant dense<0.000000e+00> : vector<4x8x8xf32>
    %292 = tpu.matmul %290, %291, %cst_108 {dimension_numbers = #tpu.dot_dimension_numbers<[2], [2], [1], [1], [0, 0, 0, 1, 1, 1], [0], [0]>} : vector<4x8x8xbf16>, vector<4x8x8xbf16>, vector<4x8x8xf32> -> vector<4x8x8xf32>
    "tpu.trace_stop"() : () -> ()
    %293 = vector.shape_cast %7 : vector<8x8xf32> to vector<1x8x8xf32>
    %294 = vector.broadcast %293 : vector<1x8x8xf32> to vector<4x8x8xf32>
    %295 = arith.addf %292, %294 : vector<4x8x8xf32>
    %cst_109 = arith.constant dense<0xFF800000> : vector<4x8xf32>
    %296 = vector.multi_reduction <maximumf>, %295, %cst_109 [2] : vector<4x8x8xf32> to vector<4x8xf32>
    %297 = vector.shape_cast %296 : vector<4x8xf32> to vector<4x8x1xf32>
    %298 = vector.broadcast %297 : vector<4x8x1xf32> to vector<4x8x8xf32>
    %299 = arith.subf %295, %298 : vector<4x8x8xf32>
    %300 = math.exp %299 : vector<4x8x8xf32>
    %cst_110 = arith.constant dense<0.000000e+00> : vector<4x8xf32>
    %301 = vector.multi_reduction <add>, %300, %cst_110 [2] : vector<4x8x8xf32> to vector<4x8xf32>
    %302 = vector.shape_cast %301 : vector<4x8xf32> to vector<4x8x1xf32>
    %303 = tpu.reciprocal %302 {approx = true} : vector<4x8x1xf32> -> vector<4x8x1xf32>
    %304 = vector.broadcast %303 : vector<4x8x1xf32> to vector<4x8x8xf32>
    %305 = arith.mulf %300, %304 : vector<4x8x8xf32>
    %306 = arith.truncf %305 : vector<4x8x8xf32> to vector<4x8x8xbf16>
    %307 = arith.truncf %289 : vector<4x8x8xf32> to vector<4x8x8xbf16>
    "tpu.trace_start"() <{level = 10 : i32, message = "hts,hsd->htd"}> : () -> ()
    %cst_111 = arith.constant dense<0.000000e+00> : vector<4x8x8xf32>
    %308 = tpu.matmul %306, %307, %cst_111 {dimension_numbers = #tpu.dot_dimension_numbers<[2], [1], [1], [2], [0, 0, 0, 1, 1, 2], [0], [0]>} : vector<4x8x8xbf16>, vector<4x8x8xbf16>, vector<4x8x8xf32> -> vector<4x8x8xf32>
    "tpu.trace_stop"() : () -> ()
    %309 = tpu.transpose %308, [1, 0, 2] : vector<4x8x8xf32> -> vector<8x4x8xf32>
    %310 = vector.shape_cast %309 : vector<8x4x8xf32> to vector<8x32xf32>
    %311 = arith.truncf %310 : vector<8x32xf32> to vector<8x32xbf16>
    %c2_112 = arith.constant 2 : index
    %c0_113 = arith.constant 0 : index
    %c0_114 = arith.constant 0 : index
    %312 = vector.load %arg3[%c2_112, %c0_113, %c0_114] : memref<5x32x32xbf16, #tpu.memory_space<vmem>>, vector<1x32x32xbf16>
    %313 = vector.shape_cast %312 : vector<1x32x32xbf16> to vector<32x32xbf16>
    %cst_115 = arith.constant dense<0.000000e+00> : vector<8x32xf32>
    %314 = tpu.matmul %311, %313, %cst_115 {dimension_numbers = #tpu.dot_dimension_numbers<[1], [0], [0], [1], [0, 0, 1, 1], [], []>} : vector<8x32xbf16>, vector<32x32xbf16>, vector<8x32xf32> -> vector<8x32xf32>
    %c2_116 = arith.constant 2 : index
    %c0_117 = arith.constant 0 : index
    %c0_118 = arith.constant 0 : index
    %315 = vector.load %arg4[%c2_116, %c0_117, %c0_118] : memref<5x1x32xf32, #tpu.memory_space<vmem>>, vector<1x1x32xf32>
    %316 = vector.shape_cast %315 : vector<1x1x32xf32> to vector<1x32xf32>
    %317 = vector.broadcast %316 : vector<1x32xf32> to vector<8x32xf32>
    %318 = arith.addf %314, %317 : vector<8x32xf32>
    %319 = arith.addf %250, %318 : vector<8x32xf32>
    %cst_119 = arith.constant dense<0.000000e+00> : vector<8xf32>
    %320 = vector.multi_reduction <add>, %319, %cst_119 [1] : vector<8x32xf32> to vector<8xf32>
    %321 = vector.shape_cast %320 : vector<8xf32> to vector<8x1xf32>
    %cst_120 = arith.constant 3.200000e+01 : f32
    %322 = vector.broadcast %cst_120 : f32 to vector<8x1xf32>
    %323 = arith.divf %321, %322 : vector<8x1xf32>
    %324 = arith.mulf %319, %319 : vector<8x32xf32>
    %cst_121 = arith.constant dense<0.000000e+00> : vector<8xf32>
    %325 = vector.multi_reduction <add>, %324, %cst_121 [1] : vector<8x32xf32> to vector<8xf32>
    %326 = vector.shape_cast %325 : vector<8xf32> to vector<8x1xf32>
    %cst_122 = arith.constant 3.200000e+01 : f32
    %327 = vector.broadcast %cst_122 : f32 to vector<8x1xf32>
    %328 = arith.divf %326, %327 : vector<8x1xf32>
    %329 = arith.mulf %323, %323 : vector<8x1xf32>
    %330 = arith.subf %328, %329 : vector<8x1xf32>
    %331 = vector.broadcast %323 : vector<8x1xf32> to vector<8x32xf32>
    %332 = arith.subf %319, %331 : vector<8x32xf32>
    %cst_123 = arith.constant 9.99999974E-6 : f32
    %333 = vector.broadcast %cst_123 : f32 to vector<8x1xf32>
    %334 = arith.addf %330, %333 : vector<8x1xf32>
    %335 = math.rsqrt %334 : vector<8x1xf32>
    %336 = vector.broadcast %335 : vector<8x1xf32> to vector<8x32xf32>
    %337 = arith.mulf %332, %336 : vector<8x32xf32>
    %338 = vector.broadcast %0 : vector<1x32xf32> to vector<8x32xf32>
    %339 = arith.mulf %337, %338 : vector<8x32xf32>
    %340 = vector.broadcast %1 : vector<1x32xf32> to vector<8x32xf32>
    %341 = arith.addf %339, %340 : vector<8x32xf32>
    %342 = arith.truncf %341 : vector<8x32xf32> to vector<8x32xbf16>
    %c2_124 = arith.constant 2 : index
    %c0_125 = arith.constant 0 : index
    %c0_126 = arith.constant 0 : index
    %343 = vector.load %arg5[%c2_124, %c0_125, %c0_126] : memref<5x32x64xbf16, #tpu.memory_space<vmem>>, vector<1x32x64xbf16>
    %344 = vector.shape_cast %343 : vector<1x32x64xbf16> to vector<32x64xbf16>
    %cst_127 = arith.constant dense<0.000000e+00> : vector<8x64xf32>
    %345 = tpu.matmul %342, %344, %cst_127 {dimension_numbers = #tpu.dot_dimension_numbers<[1], [0], [0], [1], [0, 0, 1, 1], [], []>} : vector<8x32xbf16>, vector<32x64xbf16>, vector<8x64xf32> -> vector<8x64xf32>
    %c2_128 = arith.constant 2 : index
    %c0_129 = arith.constant 0 : index
    %c0_130 = arith.constant 0 : index
    %346 = vector.load %arg6[%c2_128, %c0_129, %c0_130] : memref<5x1x64xf32, #tpu.memory_space<vmem>>, vector<1x1x64xf32>
    %347 = vector.shape_cast %346 : vector<1x1x64xf32> to vector<1x64xf32>
    %348 = vector.broadcast %347 : vector<1x64xf32> to vector<8x64xf32>
    %349 = arith.addf %345, %348 : vector<8x64xf32>
    %cst_131 = arith.constant 5.000000e-01 : f32
    %350 = vector.broadcast %cst_131 : f32 to vector<8x64xf32>
    %351 = arith.mulf %350, %349 : vector<8x64xf32>
    %cst_132 = arith.constant 4.471500e-02 : f32
    %352 = vector.broadcast %cst_132 : f32 to vector<8x64xf32>
    %353 = arith.mulf %352, %349 : vector<8x64xf32>
    %354 = arith.mulf %353, %349 : vector<8x64xf32>
    %355 = arith.mulf %354, %349 : vector<8x64xf32>
    %356 = arith.addf %349, %355 : vector<8x64xf32>
    %cst_133 = arith.constant 0.797884583 : f32
    %357 = vector.broadcast %cst_133 : f32 to vector<8x64xf32>
    %358 = arith.mulf %357, %356 : vector<8x64xf32>
    %359 = math.tanh %358 : vector<8x64xf32>
    %cst_134 = arith.constant 1.000000e+00 : f32
    %360 = vector.broadcast %cst_134 : f32 to vector<8x64xf32>
    %361 = arith.addf %360, %359 : vector<8x64xf32>
    %362 = arith.mulf %351, %361 : vector<8x64xf32>
    %363 = arith.truncf %362 : vector<8x64xf32> to vector<8x64xbf16>
    %c2_135 = arith.constant 2 : index
    %c0_136 = arith.constant 0 : index
    %c0_137 = arith.constant 0 : index
    %364 = vector.load %arg7[%c2_135, %c0_136, %c0_137] : memref<5x64x32xbf16, #tpu.memory_space<vmem>>, vector<1x64x32xbf16>
    %365 = vector.shape_cast %364 : vector<1x64x32xbf16> to vector<64x32xbf16>
    %cst_138 = arith.constant dense<0.000000e+00> : vector<8x32xf32>
    %366 = tpu.matmul %363, %365, %cst_138 {dimension_numbers = #tpu.dot_dimension_numbers<[1], [0], [0], [1], [0, 0, 1, 1], [], []>} : vector<8x64xbf16>, vector<64x32xbf16>, vector<8x32xf32> -> vector<8x32xf32>
    %c2_139 = arith.constant 2 : index
    %c0_140 = arith.constant 0 : index
    %c0_141 = arith.constant 0 : index
    %367 = vector.load %arg8[%c2_139, %c0_140, %c0_141] : memref<5x1x32xf32, #tpu.memory_space<vmem>>, vector<1x1x32xf32>
    %368 = vector.shape_cast %367 : vector<1x1x32xf32> to vector<1x32xf32>
    %369 = vector.broadcast %368 : vector<1x32xf32> to vector<8x32xf32>
    %370 = arith.addf %366, %369 : vector<8x32xf32>
    %371 = arith.addf %319, %370 : vector<8x32xf32>
    %cst_142 = arith.constant dense<0.000000e+00> : vector<8xf32>
    %372 = vector.multi_reduction <add>, %371, %cst_142 [1] : vector<8x32xf32> to vector<8xf32>
    %373 = vector.shape_cast %372 : vector<8xf32> to vector<8x1xf32>
    %cst_143 = arith.constant 3.200000e+01 : f32
    %374 = vector.broadcast %cst_143 : f32 to vector<8x1xf32>
    %375 = arith.divf %373, %374 : vector<8x1xf32>
    %376 = arith.mulf %371, %371 : vector<8x32xf32>
    %cst_144 = arith.constant dense<0.000000e+00> : vector<8xf32>
    %377 = vector.multi_reduction <add>, %376, %cst_144 [1] : vector<8x32xf32> to vector<8xf32>
    %378 = vector.shape_cast %377 : vector<8xf32> to vector<8x1xf32>
    %cst_145 = arith.constant 3.200000e+01 : f32
    %379 = vector.broadcast %cst_145 : f32 to vector<8x1xf32>
    %380 = arith.divf %378, %379 : vector<8x1xf32>
    %381 = arith.mulf %375, %375 : vector<8x1xf32>
    %382 = arith.subf %380, %381 : vector<8x1xf32>
    %383 = vector.broadcast %375 : vector<8x1xf32> to vector<8x32xf32>
    %384 = arith.subf %371, %383 : vector<8x32xf32>
    %cst_146 = arith.constant 9.99999974E-6 : f32
    %385 = vector.broadcast %cst_146 : f32 to vector<8x1xf32>
    %386 = arith.addf %382, %385 : vector<8x1xf32>
    %387 = math.rsqrt %386 : vector<8x1xf32>
    %388 = vector.broadcast %387 : vector<8x1xf32> to vector<8x32xf32>
    %389 = arith.mulf %384, %388 : vector<8x32xf32>
    %390 = vector.broadcast %0 : vector<1x32xf32> to vector<8x32xf32>
    %391 = arith.mulf %389, %390 : vector<8x32xf32>
    %392 = vector.broadcast %1 : vector<1x32xf32> to vector<8x32xf32>
    %393 = arith.addf %391, %392 : vector<8x32xf32>
    %394 = arith.truncf %393 : vector<8x32xf32> to vector<8x32xbf16>
    %c3 = arith.constant 3 : index
    %c0_147 = arith.constant 0 : index
    %c0_148 = arith.constant 0 : index
    %395 = vector.load %arg1[%c3, %c0_147, %c0_148] : memref<5x32x96xbf16, #tpu.memory_space<vmem>>, vector<1x32x96xbf16>
    %396 = vector.shape_cast %395 : vector<1x32x96xbf16> to vector<32x96xbf16>
    %cst_149 = arith.constant dense<0.000000e+00> : vector<8x96xf32>
    %397 = tpu.matmul %394, %396, %cst_149 {dimension_numbers = #tpu.dot_dimension_numbers<[1], [0], [0], [1], [0, 0, 1, 1], [], []>} : vector<8x32xbf16>, vector<32x96xbf16>, vector<8x96xf32> -> vector<8x96xf32>
    %c3_150 = arith.constant 3 : index
    %c0_151 = arith.constant 0 : index
    %c0_152 = arith.constant 0 : index
    %398 = vector.load %arg2[%c3_150, %c0_151, %c0_152] : memref<5x1x96xf32, #tpu.memory_space<vmem>>, vector<1x1x96xf32>
    %399 = vector.shape_cast %398 : vector<1x1x96xf32> to vector<1x96xf32>
    %400 = vector.broadcast %399 : vector<1x96xf32> to vector<8x96xf32>
    %401 = arith.addf %397, %400 : vector<8x96xf32>
    %402 = vector.extract_strided_slice %401 {offsets = [0, 0], sizes = [8, 32], strides = [1, 1]} : vector<8x96xf32> to vector<8x32xf32>
    %403 = vector.shape_cast %402 : vector<8x32xf32> to vector<8x4x8xf32>
    %404 = tpu.transpose %403, [1, 0, 2] : vector<8x4x8xf32> -> vector<4x8x8xf32>
    %405 = vector.extract_strided_slice %401 {offsets = [0, 32], sizes = [8, 32], strides = [1, 1]} : vector<8x96xf32> to vector<8x32xf32>
    %406 = vector.shape_cast %405 : vector<8x32xf32> to vector<8x4x8xf32>
    %407 = tpu.transpose %406, [1, 0, 2] : vector<8x4x8xf32> -> vector<4x8x8xf32>
    %408 = vector.extract_strided_slice %401 {offsets = [0, 64], sizes = [8, 32], strides = [1, 1]} : vector<8x96xf32> to vector<8x32xf32>
    %409 = vector.shape_cast %408 : vector<8x32xf32> to vector<8x4x8xf32>
    %410 = tpu.transpose %409, [1, 0, 2] : vector<8x4x8xf32> -> vector<4x8x8xf32>
    %411 = arith.truncf %404 : vector<4x8x8xf32> to vector<4x8x8xbf16>
    %412 = arith.truncf %407 : vector<4x8x8xf32> to vector<4x8x8xbf16>
    "tpu.trace_start"() <{level = 10 : i32, message = "htd,hsd->hts"}> : () -> ()
    %cst_153 = arith.constant dense<0.000000e+00> : vector<4x8x8xf32>
    %413 = tpu.matmul %411, %412, %cst_153 {dimension_numbers = #tpu.dot_dimension_numbers<[2], [2], [1], [1], [0, 0, 0, 1, 1, 1], [0], [0]>} : vector<4x8x8xbf16>, vector<4x8x8xbf16>, vector<4x8x8xf32> -> vector<4x8x8xf32>
    "tpu.trace_stop"() : () -> ()
    %414 = vector.shape_cast %7 : vector<8x8xf32> to vector<1x8x8xf32>
    %415 = vector.broadcast %414 : vector<1x8x8xf32> to vector<4x8x8xf32>
    %416 = arith.addf %413, %415 : vector<4x8x8xf32>
    %cst_154 = arith.constant dense<0xFF800000> : vector<4x8xf32>
    %417 = vector.multi_reduction <maximumf>, %416, %cst_154 [2] : vector<4x8x8xf32> to vector<4x8xf32>
    %418 = vector.shape_cast %417 : vector<4x8xf32> to vector<4x8x1xf32>
    %419 = vector.broadcast %418 : vector<4x8x1xf32> to vector<4x8x8xf32>
    %420 = arith.subf %416, %419 : vector<4x8x8xf32>
    %421 = math.exp %420 : vector<4x8x8xf32>
    %cst_155 = arith.constant dense<0.000000e+00> : vector<4x8xf32>
    %422 = vector.multi_reduction <add>, %421, %cst_155 [2] : vector<4x8x8xf32> to vector<4x8xf32>
    %423 = vector.shape_cast %422 : vector<4x8xf32> to vector<4x8x1xf32>
    %424 = tpu.reciprocal %423 {approx = true} : vector<4x8x1xf32> -> vector<4x8x1xf32>
    %425 = vector.broadcast %424 : vector<4x8x1xf32> to vector<4x8x8xf32>
    %426 = arith.mulf %421, %425 : vector<4x8x8xf32>
    %427 = arith.truncf %426 : vector<4x8x8xf32> to vector<4x8x8xbf16>
    %428 = arith.truncf %410 : vector<4x8x8xf32> to vector<4x8x8xbf16>
    "tpu.trace_start"() <{level = 10 : i32, message = "hts,hsd->htd"}> : () -> ()
    %cst_156 = arith.constant dense<0.000000e+00> : vector<4x8x8xf32>
    %429 = tpu.matmul %427, %428, %cst_156 {dimension_numbers = #tpu.dot_dimension_numbers<[2], [1], [1], [2], [0, 0, 0, 1, 1, 2], [0], [0]>} : vector<4x8x8xbf16>, vector<4x8x8xbf16>, vector<4x8x8xf32> -> vector<4x8x8xf32>
    "tpu.trace_stop"() : () -> ()
    %430 = tpu.transpose %429, [1, 0, 2] : vector<4x8x8xf32> -> vector<8x4x8xf32>
    %431 = vector.shape_cast %430 : vector<8x4x8xf32> to vector<8x32xf32>
    %432 = arith.truncf %431 : vector<8x32xf32> to vector<8x32xbf16>
    %c3_157 = arith.constant 3 : index
    %c0_158 = arith.constant 0 : index
    %c0_159 = arith.constant 0 : index
    %433 = vector.load %arg3[%c3_157, %c0_158, %c0_159] : memref<5x32x32xbf16, #tpu.memory_space<vmem>>, vector<1x32x32xbf16>
    %434 = vector.shape_cast %433 : vector<1x32x32xbf16> to vector<32x32xbf16>
    %cst_160 = arith.constant dense<0.000000e+00> : vector<8x32xf32>
    %435 = tpu.matmul %432, %434, %cst_160 {dimension_numbers = #tpu.dot_dimension_numbers<[1], [0], [0], [1], [0, 0, 1, 1], [], []>} : vector<8x32xbf16>, vector<32x32xbf16>, vector<8x32xf32> -> vector<8x32xf32>
    %c3_161 = arith.constant 3 : index
    %c0_162 = arith.constant 0 : index
    %c0_163 = arith.constant 0 : index
    %436 = vector.load %arg4[%c3_161, %c0_162, %c0_163] : memref<5x1x32xf32, #tpu.memory_space<vmem>>, vector<1x1x32xf32>
    %437 = vector.shape_cast %436 : vector<1x1x32xf32> to vector<1x32xf32>
    %438 = vector.broadcast %437 : vector<1x32xf32> to vector<8x32xf32>
    %439 = arith.addf %435, %438 : vector<8x32xf32>
    %440 = arith.addf %371, %439 : vector<8x32xf32>
    %cst_164 = arith.constant dense<0.000000e+00> : vector<8xf32>
    %441 = vector.multi_reduction <add>, %440, %cst_164 [1] : vector<8x32xf32> to vector<8xf32>
    %442 = vector.shape_cast %441 : vector<8xf32> to vector<8x1xf32>
    %cst_165 = arith.constant 3.200000e+01 : f32
    %443 = vector.broadcast %cst_165 : f32 to vector<8x1xf32>
    %444 = arith.divf %442, %443 : vector<8x1xf32>
    %445 = arith.mulf %440, %440 : vector<8x32xf32>
    %cst_166 = arith.constant dense<0.000000e+00> : vector<8xf32>
    %446 = vector.multi_reduction <add>, %445, %cst_166 [1] : vector<8x32xf32> to vector<8xf32>
    %447 = vector.shape_cast %446 : vector<8xf32> to vector<8x1xf32>
    %cst_167 = arith.constant 3.200000e+01 : f32
    %448 = vector.broadcast %cst_167 : f32 to vector<8x1xf32>
    %449 = arith.divf %447, %448 : vector<8x1xf32>
    %450 = arith.mulf %444, %444 : vector<8x1xf32>
    %451 = arith.subf %449, %450 : vector<8x1xf32>
    %452 = vector.broadcast %444 : vector<8x1xf32> to vector<8x32xf32>
    %453 = arith.subf %440, %452 : vector<8x32xf32>
    %cst_168 = arith.constant 9.99999974E-6 : f32
    %454 = vector.broadcast %cst_168 : f32 to vector<8x1xf32>
    %455 = arith.addf %451, %454 : vector<8x1xf32>
    %456 = math.rsqrt %455 : vector<8x1xf32>
    %457 = vector.broadcast %456 : vector<8x1xf32> to vector<8x32xf32>
    %458 = arith.mulf %453, %457 : vector<8x32xf32>
    %459 = vector.broadcast %0 : vector<1x32xf32> to vector<8x32xf32>
    %460 = arith.mulf %458, %459 : vector<8x32xf32>
    %461 = vector.broadcast %1 : vector<1x32xf32> to vector<8x32xf32>
    %462 = arith.addf %460, %461 : vector<8x32xf32>
    %463 = arith.truncf %462 : vector<8x32xf32> to vector<8x32xbf16>
    %c3_169 = arith.constant 3 : index
    %c0_170 = arith.constant 0 : index
    %c0_171 = arith.constant 0 : index
    %464 = vector.load %arg5[%c3_169, %c0_170, %c0_171] : memref<5x32x64xbf16, #tpu.memory_space<vmem>>, vector<1x32x64xbf16>
    %465 = vector.shape_cast %464 : vector<1x32x64xbf16> to vector<32x64xbf16>
    %cst_172 = arith.constant dense<0.000000e+00> : vector<8x64xf32>
    %466 = tpu.matmul %463, %465, %cst_172 {dimension_numbers = #tpu.dot_dimension_numbers<[1], [0], [0], [1], [0, 0, 1, 1], [], []>} : vector<8x32xbf16>, vector<32x64xbf16>, vector<8x64xf32> -> vector<8x64xf32>
    %c3_173 = arith.constant 3 : index
    %c0_174 = arith.constant 0 : index
    %c0_175 = arith.constant 0 : index
    %467 = vector.load %arg6[%c3_173, %c0_174, %c0_175] : memref<5x1x64xf32, #tpu.memory_space<vmem>>, vector<1x1x64xf32>
    %468 = vector.shape_cast %467 : vector<1x1x64xf32> to vector<1x64xf32>
    %469 = vector.broadcast %468 : vector<1x64xf32> to vector<8x64xf32>
    %470 = arith.addf %466, %469 : vector<8x64xf32>
    %cst_176 = arith.constant 5.000000e-01 : f32
    %471 = vector.broadcast %cst_176 : f32 to vector<8x64xf32>
    %472 = arith.mulf %471, %470 : vector<8x64xf32>
    %cst_177 = arith.constant 4.471500e-02 : f32
    %473 = vector.broadcast %cst_177 : f32 to vector<8x64xf32>
    %474 = arith.mulf %473, %470 : vector<8x64xf32>
    %475 = arith.mulf %474, %470 : vector<8x64xf32>
    %476 = arith.mulf %475, %470 : vector<8x64xf32>
    %477 = arith.addf %470, %476 : vector<8x64xf32>
    %cst_178 = arith.constant 0.797884583 : f32
    %478 = vector.broadcast %cst_178 : f32 to vector<8x64xf32>
    %479 = arith.mulf %478, %477 : vector<8x64xf32>
    %480 = math.tanh %479 : vector<8x64xf32>
    %cst_179 = arith.constant 1.000000e+00 : f32
    %481 = vector.broadcast %cst_179 : f32 to vector<8x64xf32>
    %482 = arith.addf %481, %480 : vector<8x64xf32>
    %483 = arith.mulf %472, %482 : vector<8x64xf32>
    %484 = arith.truncf %483 : vector<8x64xf32> to vector<8x64xbf16>
    %c3_180 = arith.constant 3 : index
    %c0_181 = arith.constant 0 : index
    %c0_182 = arith.constant 0 : index
    %485 = vector.load %arg7[%c3_180, %c0_181, %c0_182] : memref<5x64x32xbf16, #tpu.memory_space<vmem>>, vector<1x64x32xbf16>
    %486 = vector.shape_cast %485 : vector<1x64x32xbf16> to vector<64x32xbf16>
    %cst_183 = arith.constant dense<0.000000e+00> : vector<8x32xf32>
    %487 = tpu.matmul %484, %486, %cst_183 {dimension_numbers = #tpu.dot_dimension_numbers<[1], [0], [0], [1], [0, 0, 1, 1], [], []>} : vector<8x64xbf16>, vector<64x32xbf16>, vector<8x32xf32> -> vector<8x32xf32>
    %c3_184 = arith.constant 3 : index
    %c0_185 = arith.constant 0 : index
    %c0_186 = arith.constant 0 : index
    %488 = vector.load %arg8[%c3_184, %c0_185, %c0_186] : memref<5x1x32xf32, #tpu.memory_space<vmem>>, vector<1x1x32xf32>
    %489 = vector.shape_cast %488 : vector<1x1x32xf32> to vector<1x32xf32>
    %490 = vector.broadcast %489 : vector<1x32xf32> to vector<8x32xf32>
    %491 = arith.addf %487, %490 : vector<8x32xf32>
    %492 = arith.addf %440, %491 : vector<8x32xf32>
    %cst_187 = arith.constant dense<0.000000e+00> : vector<8xf32>
    %493 = vector.multi_reduction <add>, %492, %cst_187 [1] : vector<8x32xf32> to vector<8xf32>
    %494 = vector.shape_cast %493 : vector<8xf32> to vector<8x1xf32>
    %cst_188 = arith.constant 3.200000e+01 : f32
    %495 = vector.broadcast %cst_188 : f32 to vector<8x1xf32>
    %496 = arith.divf %494, %495 : vector<8x1xf32>
    %497 = arith.mulf %492, %492 : vector<8x32xf32>
    %cst_189 = arith.constant dense<0.000000e+00> : vector<8xf32>
    %498 = vector.multi_reduction <add>, %497, %cst_189 [1] : vector<8x32xf32> to vector<8xf32>
    %499 = vector.shape_cast %498 : vector<8xf32> to vector<8x1xf32>
    %cst_190 = arith.constant 3.200000e+01 : f32
    %500 = vector.broadcast %cst_190 : f32 to vector<8x1xf32>
    %501 = arith.divf %499, %500 : vector<8x1xf32>
    %502 = arith.mulf %496, %496 : vector<8x1xf32>
    %503 = arith.subf %501, %502 : vector<8x1xf32>
    %504 = vector.broadcast %496 : vector<8x1xf32> to vector<8x32xf32>
    %505 = arith.subf %492, %504 : vector<8x32xf32>
    %cst_191 = arith.constant 9.99999974E-6 : f32
    %506 = vector.broadcast %cst_191 : f32 to vector<8x1xf32>
    %507 = arith.addf %503, %506 : vector<8x1xf32>
    %508 = math.rsqrt %507 : vector<8x1xf32>
    %509 = vector.broadcast %508 : vector<8x1xf32> to vector<8x32xf32>
    %510 = arith.mulf %505, %509 : vector<8x32xf32>
    %511 = vector.broadcast %0 : vector<1x32xf32> to vector<8x32xf32>
    %512 = arith.mulf %510, %511 : vector<8x32xf32>
    %513 = vector.broadcast %1 : vector<1x32xf32> to vector<8x32xf32>
    %514 = arith.addf %512, %513 : vector<8x32xf32>
    %515 = arith.truncf %514 : vector<8x32xf32> to vector<8x32xbf16>
    %c4 = arith.constant 4 : index
    %c0_192 = arith.constant 0 : index
    %c0_193 = arith.constant 0 : index
    %516 = vector.load %arg1[%c4, %c0_192, %c0_193] : memref<5x32x96xbf16, #tpu.memory_space<vmem>>, vector<1x32x96xbf16>
    %517 = vector.shape_cast %516 : vector<1x32x96xbf16> to vector<32x96xbf16>
    %cst_194 = arith.constant dense<0.000000e+00> : vector<8x96xf32>
    %518 = tpu.matmul %515, %517, %cst_194 {dimension_numbers = #tpu.dot_dimension_numbers<[1], [0], [0], [1], [0, 0, 1, 1], [], []>} : vector<8x32xbf16>, vector<32x96xbf16>, vector<8x96xf32> -> vector<8x96xf32>
    %c4_195 = arith.constant 4 : index
    %c0_196 = arith.constant 0 : index
    %c0_197 = arith.constant 0 : index
    %519 = vector.load %arg2[%c4_195, %c0_196, %c0_197] : memref<5x1x96xf32, #tpu.memory_space<vmem>>, vector<1x1x96xf32>
    %520 = vector.shape_cast %519 : vector<1x1x96xf32> to vector<1x96xf32>
    %521 = vector.broadcast %520 : vector<1x96xf32> to vector<8x96xf32>
    %522 = arith.addf %518, %521 : vector<8x96xf32>
    %523 = vector.extract_strided_slice %522 {offsets = [0, 0], sizes = [8, 32], strides = [1, 1]} : vector<8x96xf32> to vector<8x32xf32>
    %524 = vector.shape_cast %523 : vector<8x32xf32> to vector<8x4x8xf32>
    %525 = tpu.transpose %524, [1, 0, 2] : vector<8x4x8xf32> -> vector<4x8x8xf32>
    %526 = vector.extract_strided_slice %522 {offsets = [0, 32], sizes = [8, 32], strides = [1, 1]} : vector<8x96xf32> to vector<8x32xf32>
    %527 = vector.shape_cast %526 : vector<8x32xf32> to vector<8x4x8xf32>
    %528 = tpu.transpose %527, [1, 0, 2] : vector<8x4x8xf32> -> vector<4x8x8xf32>
    %529 = vector.extract_strided_slice %522 {offsets = [0, 64], sizes = [8, 32], strides = [1, 1]} : vector<8x96xf32> to vector<8x32xf32>
    %530 = vector.shape_cast %529 : vector<8x32xf32> to vector<8x4x8xf32>
    %531 = tpu.transpose %530, [1, 0, 2] : vector<8x4x8xf32> -> vector<4x8x8xf32>
    %532 = arith.truncf %525 : vector<4x8x8xf32> to vector<4x8x8xbf16>
    %533 = arith.truncf %528 : vector<4x8x8xf32> to vector<4x8x8xbf16>
    "tpu.trace_start"() <{level = 10 : i32, message = "htd,hsd->hts"}> : () -> ()
    %cst_198 = arith.constant dense<0.000000e+00> : vector<4x8x8xf32>
    %534 = tpu.matmul %532, %533, %cst_198 {dimension_numbers = #tpu.dot_dimension_numbers<[2], [2], [1], [1], [0, 0, 0, 1, 1, 1], [0], [0]>} : vector<4x8x8xbf16>, vector<4x8x8xbf16>, vector<4x8x8xf32> -> vector<4x8x8xf32>
    "tpu.trace_stop"() : () -> ()
    %535 = vector.shape_cast %7 : vector<8x8xf32> to vector<1x8x8xf32>
    %536 = vector.broadcast %535 : vector<1x8x8xf32> to vector<4x8x8xf32>
    %537 = arith.addf %534, %536 : vector<4x8x8xf32>
    %cst_199 = arith.constant dense<0xFF800000> : vector<4x8xf32>
    %538 = vector.multi_reduction <maximumf>, %537, %cst_199 [2] : vector<4x8x8xf32> to vector<4x8xf32>
    %539 = vector.shape_cast %538 : vector<4x8xf32> to vector<4x8x1xf32>
    %540 = vector.broadcast %539 : vector<4x8x1xf32> to vector<4x8x8xf32>
    %541 = arith.subf %537, %540 : vector<4x8x8xf32>
    %542 = math.exp %541 : vector<4x8x8xf32>
    %cst_200 = arith.constant dense<0.000000e+00> : vector<4x8xf32>
    %543 = vector.multi_reduction <add>, %542, %cst_200 [2] : vector<4x8x8xf32> to vector<4x8xf32>
    %544 = vector.shape_cast %543 : vector<4x8xf32> to vector<4x8x1xf32>
    %545 = tpu.reciprocal %544 {approx = true} : vector<4x8x1xf32> -> vector<4x8x1xf32>
    %546 = vector.broadcast %545 : vector<4x8x1xf32> to vector<4x8x8xf32>
    %547 = arith.mulf %542, %546 : vector<4x8x8xf32>
    %548 = arith.truncf %547 : vector<4x8x8xf32> to vector<4x8x8xbf16>
    %549 = arith.truncf %531 : vector<4x8x8xf32> to vector<4x8x8xbf16>
    "tpu.trace_start"() <{level = 10 : i32, message = "hts,hsd->htd"}> : () -> ()
    %cst_201 = arith.constant dense<0.000000e+00> : vector<4x8x8xf32>
    %550 = tpu.matmul %548, %549, %cst_201 {dimension_numbers = #tpu.dot_dimension_numbers<[2], [1], [1], [2], [0, 0, 0, 1, 1, 2], [0], [0]>} : vector<4x8x8xbf16>, vector<4x8x8xbf16>, vector<4x8x8xf32> -> vector<4x8x8xf32>
    "tpu.trace_stop"() : () -> ()
    %551 = tpu.transpose %550, [1, 0, 2] : vector<4x8x8xf32> -> vector<8x4x8xf32>
    %552 = vector.shape_cast %551 : vector<8x4x8xf32> to vector<8x32xf32>
    %553 = arith.truncf %552 : vector<8x32xf32> to vector<8x32xbf16>
    %c4_202 = arith.constant 4 : index
    %c0_203 = arith.constant 0 : index
    %c0_204 = arith.constant 0 : index
    %554 = vector.load %arg3[%c4_202, %c0_203, %c0_204] : memref<5x32x32xbf16, #tpu.memory_space<vmem>>, vector<1x32x32xbf16>
    %555 = vector.shape_cast %554 : vector<1x32x32xbf16> to vector<32x32xbf16>
    %cst_205 = arith.constant dense<0.000000e+00> : vector<8x32xf32>
    %556 = tpu.matmul %553, %555, %cst_205 {dimension_numbers = #tpu.dot_dimension_numbers<[1], [0], [0], [1], [0, 0, 1, 1], [], []>} : vector<8x32xbf16>, vector<32x32xbf16>, vector<8x32xf32> -> vector<8x32xf32>
    %c4_206 = arith.constant 4 : index
    %c0_207 = arith.constant 0 : index
    %c0_208 = arith.constant 0 : index
    %557 = vector.load %arg4[%c4_206, %c0_207, %c0_208] : memref<5x1x32xf32, #tpu.memory_space<vmem>>, vector<1x1x32xf32>
    %558 = vector.shape_cast %557 : vector<1x1x32xf32> to vector<1x32xf32>
    %559 = vector.broadcast %558 : vector<1x32xf32> to vector<8x32xf32>
    %560 = arith.addf %556, %559 : vector<8x32xf32>
    %561 = arith.addf %492, %560 : vector<8x32xf32>
    %cst_209 = arith.constant dense<0.000000e+00> : vector<8xf32>
    %562 = vector.multi_reduction <add>, %561, %cst_209 [1] : vector<8x32xf32> to vector<8xf32>
    %563 = vector.shape_cast %562 : vector<8xf32> to vector<8x1xf32>
    %cst_210 = arith.constant 3.200000e+01 : f32
    %564 = vector.broadcast %cst_210 : f32 to vector<8x1xf32>
    %565 = arith.divf %563, %564 : vector<8x1xf32>
    %566 = arith.mulf %561, %561 : vector<8x32xf32>
    %cst_211 = arith.constant dense<0.000000e+00> : vector<8xf32>
    %567 = vector.multi_reduction <add>, %566, %cst_211 [1] : vector<8x32xf32> to vector<8xf32>
    %568 = vector.shape_cast %567 : vector<8xf32> to vector<8x1xf32>
    %cst_212 = arith.constant 3.200000e+01 : f32
    %569 = vector.broadcast %cst_212 : f32 to vector<8x1xf32>
    %570 = arith.divf %568, %569 : vector<8x1xf32>
    %571 = arith.mulf %565, %565 : vector<8x1xf32>
    %572 = arith.subf %570, %571 : vector<8x1xf32>
    %573 = vector.broadcast %565 : vector<8x1xf32> to vector<8x32xf32>
    %574 = arith.subf %561, %573 : vector<8x32xf32>
    %cst_213 = arith.constant 9.99999974E-6 : f32
    %575 = vector.broadcast %cst_213 : f32 to vector<8x1xf32>
    %576 = arith.addf %572, %575 : vector<8x1xf32>
    %577 = math.rsqrt %576 : vector<8x1xf32>
    %578 = vector.broadcast %577 : vector<8x1xf32> to vector<8x32xf32>
    %579 = arith.mulf %574, %578 : vector<8x32xf32>
    %580 = vector.broadcast %0 : vector<1x32xf32> to vector<8x32xf32>
    %581 = arith.mulf %579, %580 : vector<8x32xf32>
    %582 = vector.broadcast %1 : vector<1x32xf32> to vector<8x32xf32>
    %583 = arith.addf %581, %582 : vector<8x32xf32>
    %584 = arith.truncf %583 : vector<8x32xf32> to vector<8x32xbf16>
    %c4_214 = arith.constant 4 : index
    %c0_215 = arith.constant 0 : index
    %c0_216 = arith.constant 0 : index
    %585 = vector.load %arg5[%c4_214, %c0_215, %c0_216] : memref<5x32x64xbf16, #tpu.memory_space<vmem>>, vector<1x32x64xbf16>
    %586 = vector.shape_cast %585 : vector<1x32x64xbf16> to vector<32x64xbf16>
    %cst_217 = arith.constant dense<0.000000e+00> : vector<8x64xf32>
    %587 = tpu.matmul %584, %586, %cst_217 {dimension_numbers = #tpu.dot_dimension_numbers<[1], [0], [0], [1], [0, 0, 1, 1], [], []>} : vector<8x32xbf16>, vector<32x64xbf16>, vector<8x64xf32> -> vector<8x64xf32>
    %c4_218 = arith.constant 4 : index
    %c0_219 = arith.constant 0 : index
    %c0_220 = arith.constant 0 : index
    %588 = vector.load %arg6[%c4_218, %c0_219, %c0_220] : memref<5x1x64xf32, #tpu.memory_space<vmem>>, vector<1x1x64xf32>
    %589 = vector.shape_cast %588 : vector<1x1x64xf32> to vector<1x64xf32>
    %590 = vector.broadcast %589 : vector<1x64xf32> to vector<8x64xf32>
    %591 = arith.addf %587, %590 : vector<8x64xf32>
    %cst_221 = arith.constant 5.000000e-01 : f32
    %592 = vector.broadcast %cst_221 : f32 to vector<8x64xf32>
    %593 = arith.mulf %592, %591 : vector<8x64xf32>
    %cst_222 = arith.constant 4.471500e-02 : f32
    %594 = vector.broadcast %cst_222 : f32 to vector<8x64xf32>
    %595 = arith.mulf %594, %591 : vector<8x64xf32>
    %596 = arith.mulf %595, %591 : vector<8x64xf32>
    %597 = arith.mulf %596, %591 : vector<8x64xf32>
    %598 = arith.addf %591, %597 : vector<8x64xf32>
    %cst_223 = arith.constant 0.797884583 : f32
    %599 = vector.broadcast %cst_223 : f32 to vector<8x64xf32>
    %600 = arith.mulf %599, %598 : vector<8x64xf32>
    %601 = math.tanh %600 : vector<8x64xf32>
    %cst_224 = arith.constant 1.000000e+00 : f32
    %602 = vector.broadcast %cst_224 : f32 to vector<8x64xf32>
    %603 = arith.addf %602, %601 : vector<8x64xf32>
    %604 = arith.mulf %593, %603 : vector<8x64xf32>
    %605 = arith.truncf %604 : vector<8x64xf32> to vector<8x64xbf16>
    %c4_225 = arith.constant 4 : index
    %c0_226 = arith.constant 0 : index
    %c0_227 = arith.constant 0 : index
    %606 = vector.load %arg7[%c4_225, %c0_226, %c0_227] : memref<5x64x32xbf16, #tpu.memory_space<vmem>>, vector<1x64x32xbf16>
    %607 = vector.shape_cast %606 : vector<1x64x32xbf16> to vector<64x32xbf16>
    %cst_228 = arith.constant dense<0.000000e+00> : vector<8x32xf32>
    %608 = tpu.matmul %605, %607, %cst_228 {dimension_numbers = #tpu.dot_dimension_numbers<[1], [0], [0], [1], [0, 0, 1, 1], [], []>} : vector<8x64xbf16>, vector<64x32xbf16>, vector<8x32xf32> -> vector<8x32xf32>
    %c4_229 = arith.constant 4 : index
    %c0_230 = arith.constant 0 : index
    %c0_231 = arith.constant 0 : index
    %609 = vector.load %arg8[%c4_229, %c0_230, %c0_231] : memref<5x1x32xf32, #tpu.memory_space<vmem>>, vector<1x1x32xf32>
    %610 = vector.shape_cast %609 : vector<1x1x32xf32> to vector<1x32xf32>
    %611 = vector.broadcast %610 : vector<1x32xf32> to vector<8x32xf32>
    %612 = arith.addf %608, %611 : vector<8x32xf32>
    %613 = arith.addf %561, %612 : vector<8x32xf32>
    %cst_232 = arith.constant dense<0.000000e+00> : vector<8xf32>
    %614 = vector.multi_reduction <add>, %613, %cst_232 [1] : vector<8x32xf32> to vector<8xf32>
    %615 = vector.shape_cast %614 : vector<8xf32> to vector<8x1xf32>
    %cst_233 = arith.constant 3.200000e+01 : f32
    %616 = vector.broadcast %cst_233 : f32 to vector<8x1xf32>
    %617 = arith.divf %615, %616 : vector<8x1xf32>
    %618 = arith.mulf %613, %613 : vector<8x32xf32>
    %cst_234 = arith.constant dense<0.000000e+00> : vector<8xf32>
    %619 = vector.multi_reduction <add>, %618, %cst_234 [1] : vector<8x32xf32> to vector<8xf32>
    %620 = vector.shape_cast %619 : vector<8xf32> to vector<8x1xf32>
    %cst_235 = arith.constant 3.200000e+01 : f32
    %621 = vector.broadcast %cst_235 : f32 to vector<8x1xf32>
    %622 = arith.divf %620, %621 : vector<8x1xf32>
    %623 = arith.mulf %617, %617 : vector<8x1xf32>
    %624 = arith.subf %622, %623 : vector<8x1xf32>
    %625 = vector.broadcast %617 : vector<8x1xf32> to vector<8x32xf32>
    %626 = arith.subf %613, %625 : vector<8x32xf32>
    %cst_236 = arith.constant 9.99999974E-6 : f32
    %627 = vector.broadcast %cst_236 : f32 to vector<8x1xf32>
    %628 = arith.addf %624, %627 : vector<8x1xf32>
    %629 = math.rsqrt %628 : vector<8x1xf32>
    %630 = vector.broadcast %629 : vector<8x1xf32> to vector<8x32xf32>
    %631 = arith.mulf %626, %630 : vector<8x32xf32>
    %632 = vector.broadcast %0 : vector<1x32xf32> to vector<8x32xf32>
    %633 = arith.mulf %631, %632 : vector<8x32xf32>
    %634 = vector.broadcast %1 : vector<1x32xf32> to vector<8x32xf32>
    %635 = arith.addf %633, %634 : vector<8x32xf32>
    %636 = arith.truncf %635 : vector<8x32xf32> to vector<8x32xbf16>
    %c0_237 = arith.constant 0 : index
    %c0_238 = arith.constant 0 : index
    %637 = vector.load %arg11[%c0_237, %c0_238] : memref<32x128xbf16, #tpu.memory_space<vmem>>, vector<32x128xbf16>
    %cst_239 = arith.constant dense<0.000000e+00> : vector<8x128xf32>
    %638 = tpu.matmul %636, %637, %cst_239 {dimension_numbers = #tpu.dot_dimension_numbers<[1], [0], [0], [1], [0, 0, 1, 1], [], []>} : vector<8x32xbf16>, vector<32x128xbf16>, vector<8x128xf32> -> vector<8x128xf32>
    %c0_240 = arith.constant 0 : index
    %c0_241 = arith.constant 0 : index
    %639 = vector.load %arg12[%c0_240, %c0_241] : memref<1x128xf32, #tpu.memory_space<vmem>>, vector<1x128xf32>
    %640 = vector.broadcast %639 : vector<1x128xf32> to vector<8x128xf32>
    %641 = arith.addf %638, %640 : vector<8x128xf32>
    %c0_242 = arith.constant 0 : index
    %c0_243 = arith.constant 0 : index
    %642 = vector.load %arg13[%c0_242, %c0_243] : memref<8x128xf32, #tpu.memory_space<vmem>>, vector<8x128xf32>
    tpu.vector_store %arg13[%c0_242, %c0_243], %641 {strides = array<i32>} : memref<8x128xf32, #tpu.memory_space<vmem>>, vector<8x128xf32>,
    return
  }
}

</mosaic_0001>

<bundles_post_ra>
// kernel: tpu_custom_call.1
= control target key start
LH: loop header
LB: loop body
LE: loop exit
PB: predicated region body
PF: predicated region fallthrough
CT: control target
= control target key end

     0   :  { %18 = vsyncpa [#allocation3], 0  ;;  %s9608_s0 = inlined_call_operand.hbm [shape: f32[8,32], index: 0, kind: input, shape index: {}]   ;;  %s9609_s1 = inlined_call_operand.vmem [shape: bf16[5,32,96], index: 1, kind: input, shape index: {}]   ;;  %s9610_s2 = inlined_call_operand.hbm [shape: f32[5,1,96], index: 2, kind: input, shape index: {}]   ;;  %s9611_s3 = inlined_call_operand.vmem [shape: bf16[5,32,32], index: 3, kind: input, shape index: {}]   ;;  %s9612_s4 = inlined_call_operand.hbm [shape: f32[5,1,32], index: 4, kind: input, shape index: {}]   ;;  %s9613_s5 = inlined_call_operand.vmem [shape: bf16[5,32,64], index: 5, kind: input, shape index: {}]   ;;  %s9614_s6 = inlined_call_operand.hbm [shape: f32[5,1,64], index: 6, kind: input, shape index: {}]   ;;  %s9615_s7 = inlined_call_operand.vmem [shape: bf16[5,64,32], index: 7, kind: input, shape index: {}]   ;;  %s9616_s8 = inlined_call_operand.hbm [shape: f32[5,1,32], index: 8, kind: input, shape index: {}]   ;;  %s9617_s9 = inlined_call_operand.vmem [shape: f32[1,32], index: 9, kind: input, shape index: {}]   ;;  %s9618_s10 = inlined_call_operand.vmem [shape: f32[1,32], index: 10, kind: input, shape index: {}]   ;;  %s9619_s11 = inlined_call_operand.vmem [shape: bf16[32,128], index: 11, kind: input, shape index: {}]   ;;  %s9620_s12 = inlined_call_operand.vmem [shape: f32[1,128], index: 12, kind: input, shape index: {}]   ;;  %s9621_s13 = inlined_call_operand.hbm [shape: f32[8,128], index: 13, kind: output, shape index: {}]  }
   0x1   :  { %19 = vsyncpa [#allocation6], 0 }
   0x2   :  { %20 = vsyncpa [#allocation9], 0 }
   0x3   :  { %21 = vsyncpa [#allocation4], 0  ;;  %s8177_s25 = smov [#allocation5]  }
   0x4   :  { %s39_s26 = sshll.u32 %s8177_s25, 4  ;;  %s40_s26 = int_to_ptr.vmem [resolvable:$true] %s39_s26 }
   0x5   :  { %s8057_s27 = scalar_lea.vmem %s40_s26, 80  ;;  %s8061_s28 = scalar_lea.vmem %s40_s26, 96 }
   0x6   :  { %p8058_p0 = scmp.ne.s32.totalorder %s40_s26, %s8057_s27  ;;  %p8062_p1 = scmp.lt.s32.totalorder %s40_s26, %s40_s26 }
   0x7   :  { %p8063_p2 = scmp.lt.s32.totalorder %s8061_s28, %s8057_s27 }
   0x9   :  { %p8064_p3 = por %p8063_p2, %p8062_p1 }
   0xb   :  { %p8065_p4 = pnand %p8064_p3, %p8058_p0 }
   0xd   :  { %8068 = shalt.err (!%p8065_p4)
}
   0xe   :  { %s8178_s29 = smov 16   ;;  %s8179_s30 = smov 1  }
   0xf   :  { %45 = dma.hbm_to_vmem [thread:$0]  %s9610_s2, 80, %s40_s26, [#allocation6], %s8178_s29, %s8178_s29, %s8179_s30  }
  0x10   :  { %s8180_s16 = smov [#allocation8]   ;;  %s8181_s18 = smov [#allocation2]  }
  0x11   :  { %s67_s17 = sshll.u32 %s8180_s16, 4  ;;  %s28_s19 = sshll.u32 %s8181_s18, 4  ;;  %s68_s17 = int_to_ptr.vmem [resolvable:$true] %s67_s17  ;;  %s29_s19 = int_to_ptr.vmem [resolvable:$true] %s28_s19 }
  0x12   :  { %s8077_s20 = scalar_lea.vmem %s68_s17, 80  ;;  %s8081_s21 = scalar_lea.vmem %s68_s17, 96 }
  0x13   :  { %p8078_p5 = scmp.ne.s32.totalorder %s68_s17, %s8077_s20  ;;  %p8082_p6 = scmp.lt.s32.totalorder %s68_s17, %s68_s17 }
  0x14   :  { %p8083_p7 = scmp.lt.s32.totalorder %s8081_s21, %s8077_s20 }
  0x16   :  { %p8084_p8 = por %p8083_p7, %p8082_p6 }
  0x18   :  { %p8085_p9 = pnand %p8084_p8, %p8078_p5 }
  0x1a   :  { %8088 = shalt.err (!%p8085_p9)
}
  0x1b   :  { %73 = dma.hbm_to_vmem [thread:$0]  %s9614_s6, 80, %s68_s17, [#allocation9], %s8178_s29, %s8178_s29, %s8179_s30  }
  0x1c   :  { %s8097_s2 = scalar_lea.vmem %s29_s19, 128  ;;  %p8102_p11 = scmp.lt.s32.totalorder %s29_s19, %s29_s19 }
  0x1d   :  { %p8098_p10 = scmp.ne.s32.totalorder %s29_s19, %s8097_s2  ;;  %p8103_p12 = scmp.lt.s32.totalorder %s8097_s2, %s8097_s2 }
  0x1f   :  { %p8104_p13 = por %p8103_p12, %p8102_p11 }
  0x21   :  { %p8105_p0 = pnand %p8104_p13, %p8098_p10 }
  0x23   :  { %8108 = shalt.err (!%p8105_p0)
}
  0x24   :  { %31 = dma.hbm_to_vmem [thread:$0]  %s9608_s0, 128, %s29_s19, [#allocation3]  }
  0x25   :  { %s8182_s26 = smov [#allocation7]   ;;  %s8183_s28 = smov [#allocation10]  }
  0x26   :  { %s53_s27 = sshll.u32 %s8182_s26, 4  ;;  %s81_s14 = sshll.u32 %s8183_s28, 4  ;;  %s54_s27 = int_to_ptr.vmem [resolvable:$true] %s53_s27  ;;  %s82_s14 = int_to_ptr.vmem [resolvable:$true] %s81_s14 }
  0x27   :  { %s8117_s15 = scalar_lea.vmem %s54_s27, 80  ;;  %s8121_s6 = scalar_lea.vmem %s54_s27, 96 }
  0x28   :  { %p8118_p1 = scmp.ne.s32.totalorder %s54_s27, %s8117_s15  ;;  %p8122_p2 = scmp.lt.s32.totalorder %s54_s27, %s54_s27 }
  0x29   :  { %p8123_p3 = scmp.lt.s32.totalorder %s8121_s6, %s8117_s15 }
  0x2b   :  { %p8124_p4 = por %p8123_p3, %p8122_p2 }
  0x2d   :  { %p8125_p5 = pnand %p8124_p4, %p8118_p1 }
  0x2f   :  { %8128 = shalt.err (!%p8125_p5)
}
  0x30   :  { %59 = dma.hbm_to_vmem [thread:$0]  %s9612_s4, 80, %s54_s27, [#allocation6], %s8178_s29, %s8178_s29, %s8179_s30  }
  0x31   :  { %s8137_s0 = scalar_lea.vmem %s82_s14, 80  ;;  %s8141_s18 = scalar_lea.vmem %s82_s14, 96 }
  0x32   :  { %p8138_p6 = scmp.ne.s32.totalorder %s82_s14, %s8137_s0  ;;  %p8142_p7 = scmp.lt.s32.totalorder %s82_s14, %s82_s14 }
  0x33   :  { %p8143_p8 = scmp.lt.s32.totalorder %s8141_s18, %s8137_s0 }
  0x35   :  { %p8144_p9 = por %p8143_p8, %p8142_p7 }
  0x37   :  { %p8145_p10 = pnand %p8144_p9, %p8138_p6 }
  0x39   :  { %8148 = shalt.err (!%p8145_p10)
}
  0x3a   :  { %87 = dma.hbm_to_vmem [thread:$0]  %s9616_s8, 80, %s82_s14, [#allocation9], %s8178_s29, %s8178_s29, %s8179_s30  }
  0x3b   :  { %8169 = dma.done.wait [#allocation3], 128  }
  0x3c   :  { %8170 = vsyncadd [#allocation3], 4294967168 }
  0x3d   :  { %8171 = dma.done.wait [#allocation6], 160  }
  0x3e   :  { %8172 = vsyncadd [#allocation6], 4294967136 }
  0x3f   :  { %8173 = dma.done.wait [#allocation9], 160  }
  0x40   :  { %8174 = vsyncadd [#allocation9], 4294967136  ;;  %vm121_vm0 = vcmask 261120   ;;  %v8294_v0 = vld [vmem:[#allocation2] sm:$0xff]  ;;  %v7881_v4 = vld [vmem:[%s9609_s1 + $0x8] sm:$0xff]   ;;  %v8184_v5 = vmov 0.0   ;;  %v114_v31 = vlaneseq }
  0x41   :  { %v122_v1 = vsel %vm121_vm0, %v8294_v0, 0.0  ;;  %v127_v2 = vmul.f32 %v8294_v0, %v8294_v0  ;;  %7433 = vmatprep.subr.bf16.mxu0 %v8184_v5  ;;  %v7882_v6 = vld [vmem:[%s9609_s1] sm:$0xff]   ;;  %vm8185_vm1 = vmmov 0   ;;  %7441 = vmatprep.subr.bf16.mxu1 %v8184_v5  ;;  %v7026_v22 = vld [vmem:[#allocation5] ss:$0 sm:$0xff]  ;;  %s8186_s25 = smov 104  }
  0x42   :  { %123 = vadd.xlane.f32.xlu0 %v122_v1  ;;  %7437 = vmatprep.mubr.msk.bf16.mxu0 %vm8185_vm1, %v8184_v5  ;;  %v8319_v16 = vld [vmem:[%s9617_s9] ss:$0 sm:$0xff]  ;;  %s8187_s26 = smov 120   ;;  %s8188_s27 = smov 112   ;;  %v8190_v32 = vmov 1983009808  }
  0x43   :  { %v128_v3 = vsel %vm121_vm0, %v127_v2, 0.0  ;;  %7434 = vmatpush3.bf16.msra.mxu0 %v7881_v4  ;;  %7443 = vmatprep.mubr.msk.bf16.mxu1 %vm8185_vm1, %v8184_v5  ;;  %v8324_v18 = vld [vmem:[%s9618_s10] ss:$0 sm:$0xff]  ;;  %s8189_s28 = smov 96   ;;  %v232_v33 = vunpack.c.l.s4 %v8190_v32  ;;  %v8354_v34 = vshrl.u32 %v114_v31, 7  ;;  %vm669_vm2 = vcmask 64512  }
  0x44   :  { %7435 = vmatprep.subr.bf16.mxu0 %v8184_v5  ;;  %v8191_v37 = vmov 1934713408   ;;  %s8193_s14 = smov 64   ;;  %vm909_vm4 = vcmask 1043456   ;;  %s8194_s0 = smov 8   ;;  %vm1240_vm5 = vcmask 130048  }
  0x45   :  { %v233_v35 = vunpack.c.0.s8 %v232_v33  ;;  %v264_v38 = vunpack.c.l.s4 %v8191_v37  ;;  %s8195_s18 = smov 24   ;;  %vm1242_vm6 = vcmask 195584   ;;  %vm1445_vm7 = vcmask 523264   ;;  %s8196_s21 = smov [#allocation11]  }
  0x46   :  { %129 = vadd.xlane.f32.xlu0 %v128_v3  ;;  %s7013_s22 = sshll.u32 %s8196_s21, 4  ;;  %s7014_s22 = int_to_ptr.vmem [resolvable:$true] %s7013_s22 }
  0x47   :  { %7436 = vmatpush3.bf16.msra.mxu0 %v7882_v6  ;;  %v8361_v41 = vsub.s32 %v233_v35, %v8354_v34  ;;  %v265_v45 = vunpack.c.0.s8 %v264_v38  ;;  %s8149_s23 = scalar_lea.vmem %s7014_s22, 128  ;;  %p8154_p12 = scmp.lt.s32.totalorder %s7014_s22, %s7014_s22 }
  0x48   :  { %7447 = vmatprep.subr.bf16.mxu0 %v8184_v5  ;;  %p8150_p11 = scmp.ne.s32.totalorder %s7014_s22, %s8149_s23  ;;  %p8155_p13 = scmp.lt.s32.totalorder %s8149_s23, %s8149_s23 }
  0x49   :  { %v8372_v51 = vsub.s32 %v265_v45, %v8354_v34 }
  0x4a   :  { %p8156_p0 = por %p8155_p13, %p8154_p12 }
  0x4c   :  { %p8157_p1 = pnand %p8156_p0, %p8150_p11 }
  0xcb   :  { %v124_v7 = vpop.xlane.xlu0 %123 }
  0xcc   :  { %v126_v8 = vmul.f32 0.03125, %v124_v7 }
  0xce   :  { %v132_v10 = vmul.f32 %v126_v8, %v126_v8  ;;  %v134_v14 = vsub.f32 %v8294_v0, %v126_v8 }
  0xcf   :  { %v130_v9 = vpop.xlane.xlu0 %129 }
  0xd0   :  { %v131_v11 = vmul.f32 0.03125, %v130_v9 }
  0xd2   :  { %v133_v12 = vsub.f32 %v131_v11, %v132_v10 }
  0xd4   :  { %v135_v13 = vadd.f32 1e-05, %v133_v12 }
  0xd6   :  { %7933 = vrsqrt.f32 %v135_v13 }
  0xe3   :  { %v7934_v15 = vpop.eup %7933 }
  0xe4   :  { %v137_v17 = vmul.f32 %v7934_v15, %v134_v14 }
  0xe6   :  { %v144_v19 = vmul.f32 %v8319_v16, %v137_v17 }
  0xe8   :  { %v151_v20 = vadd.f32 %v8324_v18, %v144_v19 }
  0xea   :  { %v152_v21 = vpack.c.bf16 %v151_v20, %v151_v20 }
  0xec   :  { %7438 = vmatmul.mubr.msk.bf16.vlgmr.msra.gmra.mxu0 %vm121_vm0, %v152_v21 }
  0xed   :  { %7449 = vmatprep.mubr.msk.bf16.mxu0 %vm8185_vm1, %v8184_v5 }
 0x1ac   :  { %v213_v23 = vpop.f32.mrf.mxu0 }
 0x1ad   :  { %v8331_v24 = vadd.f32 %v7026_v22, %v213_v23 }
 0x1ae   :  { %v7439_v25 = vpop.f32.mrf.mxu0 }
 0x1af   :  { %226 = vrot.lane.b32.xlu0 %v8331_v24, %s8186_s25  ;;  %220 = vrot.lane.b32.xlu1 %v8331_v24, %s8187_s26 }
 0x1b0   :  { %v216_v26 = vpop.f32.mrf.mxu0 }
 0x1b2   :  { %v7440_v27 = vpop.f32.mrf.mxu0 }
 0x1b3   :  { %223 = vrot.lane.b32.xlu1 %v8331_v24, %s8188_s27 }
 0x1b7   :  { %365 = vrot.lane.b32.xlu1 %v8331_v24, %s8189_s28 }
 0x221   :  { %v8341_v28 = vpop.permute.xlu1 %220  ;;  %v8349_v30 = vpop.permute.xlu0 %226 }
 0x222   :  { %367 = vrot.lane.b32.xlu1 %v8341_v28, %s8189_s28  ;;  %v245_v42 = vcombine.low %v8341_v28, %v8349_v30  ;;  %v246_v43 = vcombine.high %v8341_v28, %v8349_v30 }
 0x224   :  { %v253_v48 = vrot.slane %v245_v42, %v8361_v41  ;;  %v260_v49 = vrot.slane %v246_v43, %v8361_v41 }
 0x225   :  { %v8345_v29 = vpop.permute.xlu1 %223 }
 0x226   :  { %369 = vrot.lane.b32.xlu1 %v8345_v29, %s8189_s28  ;;  %v229_v39 = vcombine.low %v8331_v24, %v8345_v29  ;;  %v230_v40 = vcombine.high %v8331_v24, %v8345_v29 }
 0x228   :  { %v237_v46 = vrot.slane %v229_v39, %v8361_v41  ;;  %v244_v47 = vrot.slane %v230_v40, %v8361_v41 }
 0x229   :  { %v366_v36 = vpop.permute.xlu1 %365 }
 0x22a   :  { %371 = vrot.lane.b32.xlu1 %v8349_v30, %s8189_s28  ;;  %v261_v52 = vcombine.low %v237_v46, %v253_v48  ;;  %v262_v53 = vcombine.high %v237_v46, %v253_v48  ;;  %v277_v54 = vcombine.low %v244_v47, %v260_v49  ;;  %v278_v55 = vcombine.high %v244_v47, %v260_v49 }
 0x22c   :  { %v269_v61 = vrot.slane %v261_v52, %v8372_v51  ;;  %v276_v62 = vrot.slane %v262_v53, %v8372_v51  ;;  %v285_v63 = vrot.slane %v277_v54, %v8372_v51  ;;  %v292_v1 = vrot.slane %v278_v55, %v8372_v51 }
 0x22e   :  { %v297_v11 = vcombine.low %v269_v61, %v276_v62  ;;  %v7030_v12 = vcombine.high %v269_v61, %v276_v62  ;;  %v313_v13 = vcombine.low %v285_v63, %v292_v1  ;;  %v7031_v14 = vcombine.high %v285_v63, %v292_v1 }
 0x230   :  { %v304_v26 = vrot.slane %v297_v11, %v8361_v41  ;;  %v312_v27 = vrot.slane %v7030_v12, %v8361_v41  ;;  %v320_v32 = vrot.slane %v313_v13, %v8361_v41  ;;  %v328_v33 = vrot.slane %v7031_v14, %v8361_v41 }
 0x232   :  { %v329_v46 = vcombine.low %v304_v26, %v312_v27  ;;  %v345_v47 = vcombine.low %v320_v32, %v328_v33  ;;  %v330_v61 = vcombine.high %v304_v26, %v312_v27  ;;  %v346_v62 = vcombine.high %v320_v32, %v328_v33 }
 0x234   :  { %v337_v55 = vrot.slane %v329_v46, %v8372_v51 }
 0x294   :  { %v368_v44 = vpop.permute.xlu1 %367 }
 0x298   :  { %v370_v50 = vpop.permute.xlu1 %369 }
 0x299   :  { %v377_v56 = vcombine.low %v366_v36, %v370_v50  ;;  %v378_v57 = vcombine.high %v366_v36, %v370_v50 }
 0x29b   :  { %v385_v2 = vrot.slane %v377_v56, %v8361_v41  ;;  %v392_v3 = vrot.slane %v378_v57, %v8361_v41  ;;  %v353_v56 = vrot.slane %v345_v47, %v8372_v51 }
 0x29c   :  { %v372_v58 = vpop.permute.xlu1 %371 }
 0x29d   :  { %v393_v59 = vcombine.low %v368_v44, %v372_v58  ;;  %v394_v60 = vcombine.high %v368_v44, %v372_v58  ;;  %v361_v63 = vcombine.low %v337_v55, %v353_v56  ;;  %v362_v1 = vcombine.high %v337_v55, %v353_v56 }
 0x29f   :  { %v401_v4 = vrot.slane %v393_v59, %v8361_v41  ;;  %v408_v6 = vrot.slane %v394_v60, %v8361_v41 }
 0x2a1   :  { %v409_v7 = vcombine.low %v385_v2, %v401_v4  ;;  %v410_v8 = vcombine.high %v385_v2, %v401_v4  ;;  %v425_v9 = vcombine.low %v392_v3, %v408_v6  ;;  %v426_v10 = vcombine.high %v392_v3, %v408_v6 }
 0x2a2   :  { %v661_v4 = vpack.c.bf16 %v361_v63, %v361_v63  ;;  %v662_v6 = vpack.c.bf16 %v362_v1, %v362_v1 }
 0x2a3   :  { %v417_v15 = vrot.slane %v409_v7, %v8372_v51  ;;  %v424_v17 = vrot.slane %v410_v8, %v8372_v51  ;;  %v433_v19 = vrot.slane %v425_v9, %v8372_v51  ;;  %v440_v20 = vrot.slane %v426_v10, %v8372_v51 }
 0x2a4   :  { %v344_v7 = vrot.slane %v330_v61, %v8372_v51  ;;  %v360_v8 = vrot.slane %v346_v62, %v8372_v51 }
 0x2a5   :  { %v445_v21 = vcombine.low %v417_v15, %v424_v17  ;;  %v7032_v22 = vcombine.high %v417_v15, %v424_v17  ;;  %v461_v23 = vcombine.low %v433_v19, %v440_v20  ;;  %v7033_v25 = vcombine.high %v433_v19, %v440_v20 }
 0x2a6   :  { %v363_v11 = vcombine.low %v344_v7, %v360_v8  ;;  %v364_v12 = vcombine.high %v344_v7, %v360_v8  ;;  %v117_v15 = vand.u32 127, %v114_v31  ;;  %v8192_v17 = vmov -1e+30  }
 0x2a7   :  { %v452_v35 = vrot.slane %v445_v21, %v8361_v41  ;;  %v460_v36 = vrot.slane %v7032_v22, %v8361_v41  ;;  %v468_v37 = vrot.slane %v461_v23, %v8361_v41  ;;  %v476_v38 = vrot.slane %v7033_v25, %v8361_v41 }
 0x2a8   :  { %v663_v13 = vpack.c.bf16 %v363_v11, %v363_v11  ;;  %v664_v14 = vpack.c.bf16 %v364_v12, %v364_v12  ;;  %vm118_vm3 = vcmp.ge.s32.totalorder %v8354_v34, %v117_v15 }
 0x2a9   :  { %v477_v39 = vcombine.low %v452_v35, %v460_v36  ;;  %v493_v40 = vcombine.low %v468_v37, %v476_v38  ;;  %v478_v42 = vcombine.high %v452_v35, %v460_v36  ;;  %v494_v43 = vcombine.high %v468_v37, %v476_v38 }
 0x2aa   :  { %v8424_v19 = vsel %vm118_vm3, 0.0, %v8192_v17 }
 0x2ab   :  { %v485_v44 = vrot.slane %v477_v39, %v8372_v51  ;;  %v501_v45 = vrot.slane %v493_v40, %v8372_v51  ;;  %v492_v50 = vrot.slane %v478_v42, %v8372_v51  ;;  %v508_v52 = vrot.slane %v494_v43, %v8372_v51 }
 0x2ad   :  { %v509_v48 = vcombine.low %v485_v44, %v501_v45  ;;  %v510_v49 = vcombine.high %v485_v44, %v501_v45  ;;  %v511_v59 = vcombine.low %v492_v50, %v508_v52  ;;  %v512_v60 = vcombine.high %v492_v50, %v508_v52 }
 0x2af   :  { %v665_v53 = vpack.c.bf16 %v509_v48, %v509_v48  ;;  %v666_v54 = vpack.c.bf16 %v510_v49, %v510_v49  ;;  %v667_v2 = vpack.c.bf16 %v511_v59, %v511_v59  ;;  %v668_v3 = vpack.c.bf16 %v512_v60, %v512_v60 }
 0x2b1   :  { %v674_v57 = vsel %vm669_vm2, %v665_v53, 0  ;;  %v720_v58 = vsel %vm669_vm2, %v666_v54, 0  ;;  %v766_v9 = vsel %vm669_vm2, %v667_v2, 0  ;;  %v812_v10 = vsel %vm669_vm2, %v668_v3, 0 }
 0x2b2   :  { %7442 = vmatpush3.bf16.xpose.msra.mxu1 %v674_v57  ;;  %7448 = vmatpush3.bf16.xpose.msra.mxu0 %v720_v58 }
 0x2b3   :  { %7453 = vmatprep.subr.bf16.mxu1 %v8184_v5  ;;  %7459 = vmatprep.subr.bf16.mxu0 %v8184_v5 }
 0x2b9   :  { %7444 = vmatmul.mubr.msk.bf16.vlgmr.msra.gmra.mxu1 %vm669_vm2, %v661_v4  ;;  %7450 = vmatmul.mubr.msk.bf16.vlgmr.msra.gmra.mxu0 %vm669_vm2, %v662_v6 }
 0x2ba   :  { %7454 = vmatpush3.bf16.xpose.msra.mxu1 %v766_v9  ;;  %7460 = vmatpush3.bf16.xpose.msra.mxu0 %v812_v10 }
 0x2bb   :  { %7455 = vmatprep.mubr.msk.bf16.mxu1 %vm8185_vm1, %v8184_v5  ;;  %7461 = vmatprep.mubr.msk.bf16.mxu0 %vm8185_vm1, %v8184_v5 }
 0x2bc   :  { %7465 = vmatprep.subr.bf16.mxu1 %v8184_v5  ;;  %7471 = vmatprep.subr.bf16.mxu0 %v8184_v5 }
 0x2c1   :  { %7456 = vmatmul.mubr.msk.bf16.vlgmr.msra.gmra.mxu1 %vm669_vm2, %v663_v13  ;;  %7462 = vmatmul.mubr.msk.bf16.vlgmr.msra.gmra.mxu0 %vm669_vm2, %v664_v14 }
 0x2c2   :  { %7467 = vmatprep.mubr.msk.bf16.mxu1 %vm8185_vm1, %v8184_v5  ;;  %7473 = vmatprep.mubr.msk.bf16.mxu0 %vm8185_vm1, %v8184_v5 }
 0x379   :  { %v710_v20 = vpop.f32.mrf.mxu1  ;;  %v756_v21 = vpop.f32.mrf.mxu0 }
 0x37a   :  { %v711_v22 = vadd.f32 %v710_v20, %v8424_v19  ;;  %v757_v23 = vadd.f32 %v756_v21, %v8424_v19 }
 0x37b   :  { %v7445_v25 = vpop.f32.mrf.mxu1  ;;  %v7451_v26 = vpop.f32.mrf.mxu0 }
 0x37c   :  { %v854_v27 = vsel %vm669_vm2, %v711_v22, -inf  ;;  %v857_v32 = vsel %vm669_vm2, %v757_v23, -inf }
 0x37d   :  { %855 = vmax.xlane.f32.xlu1 %v854_v27  ;;  %v713_v33 = vpop.f32.mrf.mxu1  ;;  %858 = vmax.xlane.f32.xlu0 %v857_v32  ;;  %v759_v31 = vpop.f32.mrf.mxu0 }
 0x37f   :  { %v7446_v34 = vpop.f32.mrf.mxu1  ;;  %v7452_v35 = vpop.f32.mrf.mxu0 }
 0x381   :  { %v802_v36 = vpop.f32.mrf.mxu1  ;;  %v848_v37 = vpop.f32.mrf.mxu0 }
 0x382   :  { %v803_v38 = vadd.f32 %v802_v36, %v8424_v19  ;;  %v849_v39 = vadd.f32 %v848_v37, %v8424_v19 }
 0x383   :  { %v7457_v40 = vpop.f32.mrf.mxu1  ;;  %v7463_v42 = vpop.f32.mrf.mxu0 }
 0x384   :  { %v860_v43 = vsel %vm669_vm2, %v803_v38, -inf  ;;  %v863_v44 = vsel %vm669_vm2, %v849_v39, -inf }
 0x385   :  { %861 = vmax.xlane.f32.xlu1 %v860_v43  ;;  %v805_v45 = vpop.f32.mrf.mxu1  ;;  %864 = vmax.xlane.f32.xlu0 %v863_v44  ;;  %v851_v46 = vpop.f32.mrf.mxu0 }
 0x387   :  { %v7458_v47 = vpop.f32.mrf.mxu1  ;;  %v7464_v48 = vpop.f32.mrf.mxu0 }
 0x396   :  { %513 = vrot.lane.b32.xlu1 %v8331_v24, %s8193_s14 }
 0x406   :  { %v856_v49 = vpop.xlane.xlu1 %855  ;;  %v859_v50 = vpop.xlane.xlu0 %858 }
 0x407   :  { %v866_v52 = vsub.f32 %v711_v22, %v856_v49  ;;  %v867_v53 = vsub.f32 %v757_v23, %v859_v50 }
 0x409   :  { %v870_v54 = vmul.f32 1.442695, %v866_v52  ;;  %v872_v55 = vmul.f32 1.442695, %v867_v53 }
 0x40b   :  { %7935 = vpow2.f32 %v870_v54 }
 0x40c   :  { %7937 = vpow2.f32 %v872_v55 }
 0x40e   :  { %v862_v24 = vpop.xlane.xlu1 %861  ;;  %v865_v61 = vpop.xlane.xlu0 %864 }
 0x40f   :  { %v868_v60 = vsub.f32 %v803_v38, %v862_v24  ;;  %v869_v62 = vsub.f32 %v849_v39, %v865_v61 }
 0x411   :  { %v874_v63 = vmul.f32 1.442695, %v868_v60  ;;  %v876_v1 = vmul.f32 1.442695, %v869_v62 }
 0x413   :  { %7939 = vpow2.f32 %v874_v63 }
 0x414   :  { %7941 = vpow2.f32 %v876_v1 }
 0x418   :  { %v8436_v56 = vpop.eup %7935 }
 0x419   :  { %v8438_v57 = vpop.eup %7937  ;;  %v878_v58 = vsel %vm669_vm2, %v8436_v56, 0.0 }
 0x41a   :  { %879 = vadd.xlane.f32.xlu1 %v878_v58  ;;  %v881_v59 = vsel %vm669_vm2, %v8438_v57, 0.0 }
 0x41b   :  { %882 = vadd.xlane.f32.xlu0 %v881_v59 }
 0x420   :  { %v8450_v2 = vpop.eup %7939 }
 0x421   :  { %v8452_v3 = vpop.eup %7941 }
 0x42b   :  { %517 = vrot.lane.b32.xlu1 %v8345_v29, %s8193_s14  ;;  %v884_v29 = vsel %vm669_vm2, %v8450_v2, 0.0 }
 0x42f   :  { %519 = vrot.lane.b32.xlu1 %v8349_v30, %s8193_s14  ;;  %v887_v30 = vsel %vm669_vm2, %v8452_v3, 0.0 }
 0x431   :  { %515 = vrot.lane.b32.xlu0 %v8341_v28, %s8193_s14  ;;  %v514_v28 = vpop.permute.xlu1 %513 }
 0x450   :  { %885 = vadd.xlane.f32.xlu0 %v884_v29 }
 0x453   :  { %888 = vadd.xlane.f32.xlu1 %v887_v30 }
 0x4a3   :  { %v880_v4 = vpop.xlane.xlu1 %879 }
 0x4a4   :  { %v883_v6 = vpop.xlane.xlu0 %882  ;;  %7943 = vrcp.f32 %v880_v4 }
 0x4a5   :  { %7945 = vrcp.f32 %v883_v6 }
 0x4a7   :  { %v518_v7 = vpop.permute.xlu1 %517 }
 0x4a8   :  { %v525_v8 = vcombine.low %v514_v28, %v518_v7  ;;  %v526_v9 = vcombine.high %v514_v28, %v518_v7  ;;  %v516_v10 = vpop.permute.xlu0 %515 }
 0x4aa   :  { %v533_v14 = vrot.slane %v525_v8, %v8361_v41  ;;  %v540_v15 = vrot.slane %v526_v9, %v8361_v41 }
 0x4ab   :  { %v520_v11 = vpop.permute.xlu1 %519 }
 0x4ac   :  { %v541_v12 = vcombine.low %v516_v10, %v520_v11  ;;  %v542_v13 = vcombine.high %v516_v10, %v520_v11 }
 0x4ae   :  { %v549_v17 = vrot.slane %v541_v12, %v8361_v41  ;;  %v556_v20 = vrot.slane %v542_v13, %v8361_v41 }
 0x4b0   :  { %v557_v21 = vcombine.low %v533_v14, %v549_v17  ;;  %v558_v22 = vcombine.high %v533_v14, %v549_v17  ;;  %v573_v23 = vcombine.low %v540_v15, %v556_v20  ;;  %v574_v25 = vcombine.high %v540_v15, %v556_v20 }
 0x4b1   :  { %v7944_v46 = vpop.eup %7943 }
 0x4b2   :  { %v565_v26 = vrot.slane %v557_v21, %v8372_v51  ;;  %v572_v27 = vrot.slane %v558_v22, %v8372_v51  ;;  %v581_v32 = vrot.slane %v573_v23, %v8372_v51  ;;  %v588_v33 = vrot.slane %v574_v25, %v8372_v51  ;;  %v7946_v47 = vpop.eup %7945 }
 0x4b3   :  { %v894_v60 = vmul.f32 %v7944_v46, %v8436_v56  ;;  %v895_v61 = vmul.f32 %v7946_v47, %v8438_v57  ;;  %v7883_v46 = vld [vmem:[%s9611_s3 + $0x8] sm:$0xff]  }
 0x4b4   :  { %v593_v31 = vcombine.low %v565_v26, %v572_v27  ;;  %v7034_v34 = vcombine.high %v565_v26, %v572_v27  ;;  %v609_v35 = vcombine.low %v581_v32, %v588_v33  ;;  %v7035_v36 = vcombine.high %v581_v32, %v588_v33 }
 0x4b5   :  { %v898_v30 = vpack.c.bf16 %v894_v60, %v894_v60  ;;  %v899_v28 = vpack.c.bf16 %v895_v61, %v895_v61 }
 0x4b6   :  { %v600_v37 = vrot.slane %v593_v31, %v8361_v41  ;;  %v608_v38 = vrot.slane %v7034_v34, %v8361_v41  ;;  %v616_v39 = vrot.slane %v609_v35, %v8361_v41  ;;  %v624_v40 = vrot.slane %v7035_v36, %v8361_v41 }
 0x4b8   :  { %v625_v42 = vcombine.low %v600_v37, %v608_v38  ;;  %v641_v43 = vcombine.low %v616_v39, %v624_v40  ;;  %v626_v44 = vcombine.high %v600_v37, %v608_v38  ;;  %v642_v45 = vcombine.high %v616_v39, %v624_v40 }
 0x4ba   :  { %v633_v48 = vrot.slane %v625_v42, %v8372_v51  ;;  %v649_v49 = vrot.slane %v641_v43, %v8372_v51  ;;  %v640_v50 = vrot.slane %v626_v44, %v8372_v51  ;;  %v656_v52 = vrot.slane %v642_v45, %v8372_v51 }
 0x4bc   :  { %v657_v53 = vcombine.low %v633_v48, %v649_v49  ;;  %v658_v54 = vcombine.high %v633_v48, %v649_v49  ;;  %v659_v55 = vcombine.low %v640_v50, %v656_v52  ;;  %v660_v58 = vcombine.high %v640_v50, %v656_v52 }
 0x4be   :  { %v902_v59 = vpack.c.bf16 %v657_v53, %v657_v53  ;;  %v903_v24 = vpack.c.bf16 %v658_v54, %v658_v54  ;;  %v904_v1 = vpack.c.bf16 %v659_v55, %v659_v55  ;;  %v905_v29 = vpack.c.bf16 %v660_v58, %v660_v58 }
 0x4c0   :  { %v911_v62 = vsel %vm909_vm4, %v902_v59, 0  ;;  %v957_v63 = vsel %vm909_vm4, %v903_v24, 0  ;;  %v1003_v56 = vsel %vm909_vm4, %v904_v1, 0  ;;  %v1049_v57 = vsel %vm909_vm4, %v905_v29, 0  ;;  %v7884_v59 = vld [vmem:[%s9611_s3] sm:$0xff]  }
 0x4c1   :  { %7466 = vmatpush3.bf16.msra.mxu1 %v911_v62  ;;  %7472 = vmatpush3.bf16.msra.mxu0 %v957_v63 }
 0x4c2   :  { %7477 = vmatprep.subr.bf16.mxu1 %v8184_v5  ;;  %7483 = vmatprep.subr.bf16.mxu0 %v8184_v5 }
 0x4c4   :  { %7468 = vmatmul.mubr.msk.bf16.vlgmr.msra.gmra.mxu1 %vm669_vm2, %v898_v30  ;;  %7474 = vmatmul.mubr.msk.bf16.vlgmr.msra.gmra.mxu0 %vm669_vm2, %v899_v28 }
 0x4c5   :  { %7478 = vmatpush3.bf16.msra.mxu1 %v1003_v56  ;;  %7484 = vmatpush3.bf16.msra.mxu0 %v1049_v57 }
 0x4c6   :  { %7479 = vmatprep.mubr.msk.bf16.mxu1 %vm8185_vm1, %v8184_v5  ;;  %7485 = vmatprep.mubr.msk.bf16.mxu0 %vm8185_vm1, %v8184_v5 }
 0x4c7   :  { %7489 = vmatprep.subr.bf16.mxu1 %v8184_v5  ;;  %7497 = vmatprep.subr.bf16.mxu0 %v8184_v5 }
 0x4d9   :  { %v886_v4 = vpop.xlane.xlu0 %885 }
 0x4da   :  { %7947 = vrcp.f32 %v886_v4 }
 0x4dc   :  { %v889_v6 = vpop.xlane.xlu1 %888 }
 0x4dd   :  { %7949 = vrcp.f32 %v889_v6 }
 0x4e7   :  { %v7948_v7 = vpop.eup %7947 }
 0x4e8   :  { %v896_v8 = vmul.f32 %v7948_v7, %v8450_v2 }
 0x4ea   :  { %v7950_v9 = vpop.eup %7949  ;;  %v900_v10 = vpack.c.bf16 %v896_v8, %v896_v8 }
 0x4eb   :  { %v897_v11 = vmul.f32 %v7950_v9, %v8452_v3 }
 0x4ec   :  { %7480 = vmatmul.mubr.msk.bf16.vlgmr.msra.gmra.mxu1 %vm669_vm2, %v900_v10 }
 0x4ed   :  { %v901_v12 = vpack.c.bf16 %v897_v11, %v897_v11  ;;  %7493 = vmatprep.mubr.msk.bf16.mxu1 %vm8185_vm1, %v8184_v5  ;;  %7490 = vmatpush3.bf16.msra.mxu1 %v7883_v46 }
 0x4ee   :  { %7491 = vmatprep.subr.bf16.mxu1 %v8184_v5 }
 0x4ef   :  { %7486 = vmatmul.mubr.msk.bf16.vlgmr.msra.gmra.mxu0 %vm669_vm2, %v901_v12 }
 0x4f0   :  { %7501 = vmatprep.mubr.msk.bf16.mxu0 %vm8185_vm1, %v8184_v5 }
 0x4f1   :  { %7492 = vmatpush3.bf16.msra.mxu1 %v7884_v59 }
 0x4f2   :  { %7505 = vmatprep.subr.bf16.mxu1 %v8184_v5 }
 0x584   :  { %v947_v13 = vpop.f32.mrf.mxu1  ;;  %v993_v14 = vpop.f32.mrf.mxu0 }
 0x586   :  { %v7469_v15 = vpop.f32.mrf.mxu1  ;;  %v7475_v17 = vpop.f32.mrf.mxu0 }
 0x588   :  { %v950_v2 = vpop.f32.mrf.mxu1  ;;  %v996_v20 = vpop.f32.mrf.mxu0 }
 0x589   :  { %v7046_v2 = vld [vmem:[#allocation7] ss:$0 sm:$0xff] }
 0x58a   :  { %v7470_v21 = vpop.f32.mrf.mxu1  ;;  %v7476_v22 = vpop.f32.mrf.mxu0 }
 0x5ac   :  { %v1039_v3 = vpop.f32.mrf.mxu1 }
 0x5ad   :  { %v1091_v23 = vcombine.low %v947_v13, %v1039_v3  ;;  %v1092_v25 = vcombine.high %v947_v13, %v1039_v3 }
 0x5ae   :  { %v7481_v26 = vpop.f32.mrf.mxu1 }
 0x5af   :  { %v1085_v27 = vpop.f32.mrf.mxu0  ;;  %v1099_v35 = vrot.slane %v1091_v23, %v8361_v41  ;;  %v1106_v36 = vrot.slane %v1092_v25, %v8361_v41 }
 0x5b0   :  { %v1042_v32 = vpop.f32.mrf.mxu1  ;;  %v1107_v33 = vcombine.low %v993_v14, %v1085_v27  ;;  %v1108_v31 = vcombine.high %v993_v14, %v1085_v27 }
 0x5b1   :  { %v7487_v34 = vpop.f32.mrf.mxu0 }
 0x5b2   :  { %v1115_v37 = vrot.slane %v1107_v33, %v8361_v41  ;;  %v1122_v38 = vrot.slane %v1108_v31, %v8361_v41  ;;  %v7482_v39 = vpop.f32.mrf.mxu1  ;;  %v7885_v33 = vld [vmem:[%s9613_s5 + $0x8] sm:$0xff]  }
 0x5b3   :  { %v1088_v40 = vpop.f32.mrf.mxu0  ;;  %7498 = vmatpush3.bf16.msra.mxu0 %v7885_v33 }
 0x5b4   :  { %v1123_v42 = vcombine.low %v1099_v35, %v1115_v37  ;;  %v1124_v43 = vcombine.high %v1099_v35, %v1115_v37  ;;  %v1139_v44 = vcombine.low %v1106_v36, %v1122_v38  ;;  %v1140_v45 = vcombine.high %v1106_v36, %v1122_v38  ;;  %7499 = vmatprep.subr.bf16.mxu0 %v8184_v5 }
 0x5b5   :  { %v7488_v47 = vpop.f32.mrf.mxu0 }
 0x5b6   :  { %v1131_v48 = vrot.slane %v1123_v42, %v8372_v51  ;;  %v1138_v49 = vrot.slane %v1124_v43, %v8372_v51  ;;  %v1147_v50 = vrot.slane %v1139_v44, %v8372_v51  ;;  %v1154_v52 = vrot.slane %v1140_v45, %v8372_v51  ;;  %v7887_v47 = vld [vmem:[%s9615_s7 + $0x18] sm:$0xff]  }
 0x5b8   :  { %v1159_v53 = vcombine.low %v1131_v48, %v1138_v49  ;;  %v7044_v54 = vcombine.high %v1131_v48, %v1138_v49  ;;  %v1175_v55 = vcombine.low %v1147_v50, %v1154_v52  ;;  %v7045_v58 = vcombine.high %v1147_v50, %v1154_v52  ;;  %v7888_v48 = vld [vmem:[%s9615_s7 + $0x10] sm:$0xff]   ;;  %v7889_v49 = vld [vmem:[%s9615_s7 + $0x8] sm:$0xff]   ;;  %v7890_v50 = vld [vmem:[%s9615_s7] sm:$0xff]  }
 0x5b9   :  { %v7050_v52 = vld [vmem:[#allocation8] ss:$0 sm:$0xff] }
 0x5ba   :  { %v1166_v24 = vrot.slane %v1159_v53, %v8361_v41  ;;  %v1174_v60 = vrot.slane %v7044_v54, %v8361_v41  ;;  %v1182_v61 = vrot.slane %v1175_v55, %v8361_v41  ;;  %v1190_v62 = vrot.slane %v7045_v58, %v8361_v41 }
 0x5bc   :  { %v1192_v63 = vcombine.high %v1166_v24, %v1174_v60  ;;  %v1208_v1 = vcombine.high %v1182_v61, %v1190_v62  ;;  %v1191_v29 = vcombine.low %v1166_v24, %v1174_v60  ;;  %v1207_v30 = vcombine.low %v1182_v61, %v1190_v62 }
 0x5be   :  { %v1206_v28 = vrot.slane %v1192_v63, %v8372_v51  ;;  %v1222_v56 = vrot.slane %v1208_v1, %v8372_v51  ;;  %v1199_v57 = vrot.slane %v1191_v29, %v8372_v51  ;;  %v1215_v4 = vrot.slane %v1207_v30, %v8372_v51 }
 0x5c0   :  { %v1225_v6 = vcombine.low %v1206_v28, %v1222_v56  ;;  %v1224_v7 = vcombine.high %v1199_v57, %v1215_v4  ;;  %v1223_v8 = vcombine.low %v1199_v57, %v1215_v4  ;;  %v1226_v9 = vcombine.high %v1206_v28, %v1222_v56  ;;  %v7054_v57 = vld [vmem:[#allocation10] ss:$0 sm:$0xff] }
 0x5c2   :  { %1232 = vrot.lane.b32.xlu1 %v1225_v6, %s8178_s29  ;;  %1228 = vrot.lane.b32.xlu0 %v1224_v7, %s8194_s0 }
 0x5c6   :  { %1236 = vrot.lane.b32.xlu0 %v1226_v9, %s8195_s18 }
 0x634   :  { %v1229_v10 = vpop.permute.xlu0 %1228  ;;  %v1233_v11 = vpop.permute.xlu1 %1232 }
 0x635   :  { %v1239_v12 = vsel %vm669_vm2, %v1223_v8, %v1229_v10 }
 0x636   :  { %v1241_v14 = vsel %vm1240_vm5, %v1239_v12, %v1233_v11 }
 0x638   :  { %v1237_v13 = vpop.permute.xlu0 %1236 }
 0x639   :  { %v1243_v15 = vsel %vm1242_vm6, %v1241_v14, %v1237_v13  ;;  %v7891_v14 = vld [vmem:[%s9609_s1 + $0x18] sm:$0xff]  }
 0x63a   :  { %v1244_v17 = vpack.c.bf16 %v1243_v15, %v1243_v15  ;;  %v7892_v15 = vld [vmem:[%s9609_s1 + $0x10] sm:$0xff]  }
 0x63c   :  { %7494 = vmatmul.mubr.msk.bf16.vlgmr.msra.gmra.mxu1 %vm121_vm0, %v1244_v17 }
 0x63d   :  { %7513 = vmatprep.mubr.msk.bf16.mxu1 %vm8185_vm1, %v8184_v5  ;;  %7506 = vmatpush3.bf16.msra.mxu1 %v7887_v47 }
 0x63e   :  { %7507 = vmatprep.subr.bf16.mxu1 %v8184_v5 }
 0x641   :  { %7508 = vmatpush3.bf16.msra.mxu1 %v7888_v48 }
 0x642   :  { %7509 = vmatprep.subr.bf16.mxu1 %v8184_v5 }
 0x645   :  { %7510 = vmatpush3.bf16.msra.mxu1 %v7889_v49 }
 0x646   :  { %7511 = vmatprep.subr.bf16.mxu1 %v8184_v5 }
 0x649   :  { %7512 = vmatpush3.bf16.msra.mxu1 %v7890_v50 }
 0x64a   :  { %7531 = vmatprep.subr.bf16.mxu1 %v8184_v5 }
 0x6fc   :  { %v1305_v20 = vpop.f32.mrf.mxu1 }
 0x6fd   :  { %v1306_v21 = vadd.f32 %v7046_v2, %v1305_v20 }
 0x6fe   :  { %v7495_v22 = vpop.f32.mrf.mxu1 }
 0x6ff   :  { %v8532_v3 = vadd.f32 %v1306_v21, %v8294_v0  ;;  %v7886_v0 = vld [vmem:[%s9613_s5] sm:$0xff]  }
 0x700   :  { %v1308_v23 = vpop.f32.mrf.mxu1  ;;  %7500 = vmatpush3.bf16.msra.mxu0 %v7886_v0 }
 0x701   :  { %v1312_v25 = vsel %vm121_vm0, %v8532_v3, 0.0  ;;  %v1316_v26 = vmul.f32 %v8532_v3, %v8532_v3  ;;  %7517 = vmatprep.subr.bf16.mxu0 %v8184_v5 }
 0x702   :  { %1313 = vadd.xlane.f32.xlu1 %v1312_v25  ;;  %v7496_v27 = vpop.f32.mrf.mxu1 }
 0x703   :  { %v1317_v32 = vsel %vm121_vm0, %v1316_v26, 0.0 }
 0x704   :  { %1318 = vadd.xlane.f32.xlu0 %v1317_v32 }
 0x78b   :  { %v1314_v31 = vpop.xlane.xlu1 %1313 }
 0x78c   :  { %v1315_v34 = vmul.f32 0.03125, %v1314_v31  ;;  %v7064_v31 = vld [vmem:[#allocation5 + $0x1] ss:$0 sm:$0xff] }
 0x78d   :  { %v1319_v35 = vpop.xlane.xlu0 %1318 }
 0x78e   :  { %v1321_v36 = vmul.f32 %v1315_v34, %v1315_v34  ;;  %v1320_v37 = vmul.f32 0.03125, %v1319_v35  ;;  %v1323_v40 = vsub.f32 %v8532_v3, %v1315_v34 }
 0x790   :  { %v1322_v38 = vsub.f32 %v1320_v37, %v1321_v36 }
 0x792   :  { %v1324_v39 = vadd.f32 1e-05, %v1322_v38 }
 0x794   :  { %7951 = vrsqrt.f32 %v1324_v39 }
 0x7a1   :  { %v7952_v42 = vpop.eup %7951 }
 0x7a2   :  { %v1326_v43 = vmul.f32 %v7952_v42, %v1323_v40 }
 0x7a4   :  { %v1327_v44 = vmul.f32 %v8319_v16, %v1326_v43 }
 0x7a6   :  { %v1328_v45 = vadd.f32 %v8324_v18, %v1327_v44 }
 0x7a8   :  { %v1329_v46 = vpack.c.bf16 %v1328_v45, %v1328_v45 }
 0x7aa   :  { %7502 = vmatmul.mubr.msk.bf16.vlgmr.msra.gmra.mxu0 %vm121_vm0, %v1329_v46 }
 0x7ab   :  { %7521 = vmatprep.mubr.msk.bf16.mxu0 %vm8185_vm1, %v8184_v5  ;;  %7518 = vmatpush3.bf16.msra.mxu0 %v7891_v14 }
 0x7ac   :  { %7519 = vmatprep.subr.bf16.mxu0 %v8184_v5 }
 0x7af   :  { %7520 = vmatpush3.bf16.msra.mxu0 %v7892_v15 }
 0x7b0   :  { %7525 = vmatprep.subr.bf16.mxu0 %v8184_v5 }
 0x86a   :  { %v1390_v53 = vpop.f32.mrf.mxu0 }
 0x86b   :  { %v1391_v54 = vadd.f32 %v7050_v52, %v1390_v53 }
 0x86c   :  { %v7503_v55 = vpop.f32.mrf.mxu0 }
 0x86d   :  { %v1397_v58 = vmul.f32 0.044715, %v1391_v54  ;;  %v1396_v29 = vmul.f32 0.5, %v1391_v54 }
 0x86e   :  { %v1393_v59 = vpop.f32.mrf.mxu0 }
 0x86f   :  { %v1398_v24 = vmul.f32 %v1397_v58, %v1391_v54 }
 0x870   :  { %v7504_v60 = vpop.f32.mrf.mxu0 }
 0x871   :  { %v1399_v61 = vmul.f32 %v1398_v24, %v1391_v54 }
 0x873   :  { %v1400_v62 = vadd.f32 %v1399_v61, %v1391_v54 }
 0x875   :  { %v1401_v63 = vmul.f32 0.7978846, %v1400_v62 }
 0x877   :  { %7953 = vtanh.f32 %v1401_v63 }
 0x884   :  { %v7954_v1 = vpop.eup %7953 }
 0x885   :  { %v1403_v30 = vadd.f32 1.0, %v7954_v1 }
 0x887   :  { %v1404_v28 = vmul.f32 %v1403_v30, %v1396_v29 }
 0x889   :  { %v1405_v56 = vpack.c.bf16 %v1404_v28, %v1404_v28 }
 0x88b   :  { %7514 = vmatmul.mubr.msk.bf16.vlgmr.msra.gmra.mxu1 %vm1445_vm7, %v1405_v56 }
 0x88c   :  { %7533 = vmatprep.mubr.msk.bf16.mxu1 %vm8185_vm1, %v8184_v5 }
 0x94b   :  { %v1483_v4 = vpop.f32.mrf.mxu1 }
 0x94c   :  { %v1484_v6 = vadd.f32 %v7054_v57, %v1483_v4 }
 0x94d   :  { %v7515_v7 = vpop.f32.mrf.mxu1 }
 0x94e   :  { %v8573_v8 = vadd.f32 %v1484_v6, %v8532_v3 }
 0x94f   :  { %v1486_v9 = vpop.f32.mrf.mxu1 }
 0x950   :  { %v1490_v10 = vsel %vm121_vm0, %v8573_v8, 0.0  ;;  %v1494_v11 = vmul.f32 %v8573_v8, %v8573_v8 }
 0x951   :  { %1491 = vadd.xlane.f32.xlu0 %v1490_v10  ;;  %v7516_v12 = vpop.f32.mrf.mxu1 }
 0x952   :  { %v1495_v13 = vsel %vm121_vm0, %v1494_v11, 0.0 }
 0x953   :  { %1496 = vadd.xlane.f32.xlu1 %v1495_v13 }
 0x9da   :  { %v1492_v17 = vpop.xlane.xlu0 %1491 }
 0x9db   :  { %v1493_v2 = vmul.f32 0.03125, %v1492_v17 }
 0x9dc   :  { %v1497_v20 = vpop.xlane.xlu1 %1496 }
 0x9dd   :  { %v1499_v21 = vmul.f32 %v1493_v2, %v1493_v2  ;;  %v1498_v22 = vmul.f32 0.03125, %v1497_v20  ;;  %v1501_v25 = vsub.f32 %v8573_v8, %v1493_v2 }
 0x9df   :  { %v1500_v3 = vsub.f32 %v1498_v22, %v1499_v21 }
 0x9e1   :  { %v1502_v23 = vadd.f32 1e-05, %v1500_v3 }
 0x9e3   :  { %7955 = vrsqrt.f32 %v1502_v23 }
 0x9f0   :  { %v7956_v26 = vpop.eup %7955 }
 0x9f1   :  { %v1504_v27 = vmul.f32 %v7956_v26, %v1501_v25 }
 0x9f3   :  { %v1505_v32 = vmul.f32 %v8319_v16, %v1504_v27 }
 0x9f5   :  { %v1506_v33 = vadd.f32 %v8324_v18, %v1505_v32 }
 0x9f7   :  { %v1507_v0 = vpack.c.bf16 %v1506_v33, %v1506_v33 }
 0x9f9   :  { %7522 = vmatmul.mubr.msk.bf16.vlgmr.msra.gmra.mxu0 %vm121_vm0, %v1507_v0 }
 0x9fa   :  { %7527 = vmatprep.mubr.msk.bf16.mxu0 %vm8185_vm1, %v8184_v5 }
 0xab9   :  { %v1570_v34 = vpop.f32.mrf.mxu0 }
 0xaba   :  { %v8594_v35 = vadd.f32 %v7064_v31, %v1570_v34 }
 0xabb   :  { %v7523_v36 = vpop.f32.mrf.mxu0 }
 0xabc   :  { %1580 = vrot.lane.b32.xlu1 %v8594_v35, %s8188_s27  ;;  %1577 = vrot.lane.b32.xlu0 %v8594_v35, %s8187_s26 }
 0xabd   :  { %v1573_v16 = vpop.f32.mrf.mxu0 }
 0xabf   :  { %v7524_v37 = vpop.f32.mrf.mxu0 }
 0xac0   :  { %1583 = vrot.lane.b32.xlu1 %v8594_v35, %s8186_s25  ;;  %1722 = vrot.lane.b32.xlu0 %v8594_v35, %s8189_s28 }
 0xb2e   :  { %v8604_v18 = vpop.permute.xlu1 %1580  ;;  %v8606_v38 = vpop.permute.xlu0 %1577 }
 0xb2f   :  { %1726 = vrot.lane.b32.xlu0 %v8604_v18, %s8189_s28  ;;  %1724 = vrot.lane.b32.xlu1 %v8606_v38, %s8189_s28  ;;  %v1586_v43 = vcombine.low %v8594_v35, %v8604_v18  ;;  %v1587_v44 = vcombine.high %v8594_v35, %v8604_v18 }
 0xb31   :  { %v1594_v48 = vrot.slane %v1586_v43, %v8361_v41  ;;  %v1601_v49 = vrot.slane %v1587_v44, %v8361_v41 }
 0xb32   :  { %v8612_v39 = vpop.permute.xlu1 %1583  ;;  %v1723_v45 = vpop.permute.xlu0 %1722 }
 0xb33   :  { %1728 = vrot.lane.b32.xlu1 %v8612_v39, %s8189_s28  ;;  %v1602_v40 = vcombine.low %v8606_v38, %v8612_v39  ;;  %v1603_v42 = vcombine.high %v8606_v38, %v8612_v39 }
 0xb35   :  { %v1610_v46 = vrot.slane %v1602_v40, %v8361_v41  ;;  %v1617_v47 = vrot.slane %v1603_v42, %v8361_v41 }
 0xb37   :  { %v1618_v53 = vcombine.low %v1594_v48, %v1610_v46  ;;  %v1619_v54 = vcombine.high %v1594_v48, %v1610_v46  ;;  %v1634_v55 = vcombine.low %v1601_v49, %v1617_v47  ;;  %v1635_v58 = vcombine.high %v1601_v49, %v1617_v47 }
 0xb39   :  { %v1626_v63 = vrot.slane %v1618_v53, %v8372_v51  ;;  %v1633_v1 = vrot.slane %v1619_v54, %v8372_v51  ;;  %v1642_v29 = vrot.slane %v1634_v55, %v8372_v51  ;;  %v1649_v30 = vrot.slane %v1635_v58, %v8372_v51 }
 0xb3b   :  { %v1654_v11 = vcombine.low %v1626_v63, %v1633_v1  ;;  %v7068_v12 = vcombine.high %v1626_v63, %v1633_v1  ;;  %v1670_v13 = vcombine.low %v1642_v29, %v1649_v30  ;;  %v7069_v14 = vcombine.high %v1642_v29, %v1649_v30 }
 0xb3d   :  { %v1661_v25 = vrot.slane %v1654_v11, %v8361_v41  ;;  %v1669_v26 = vrot.slane %v7068_v12, %v8361_v41  ;;  %v1677_v27 = vrot.slane %v1670_v13, %v8361_v41  ;;  %v1685_v32 = vrot.slane %v7069_v14, %v8361_v41 }
 0xb3f   :  { %v1686_v44 = vcombine.low %v1661_v25, %v1669_v26  ;;  %v1703_v63 = vcombine.high %v1677_v27, %v1685_v32 }
 0xb41   :  { %v1694_v53 = vrot.slane %v1686_v44, %v8372_v51 }
 0xba1   :  { %v1725_v50 = vpop.permute.xlu1 %1724  ;;  %v1727_v52 = vpop.permute.xlu0 %1726 }
 0xba2   :  { %v1734_v59 = vcombine.low %v1723_v45, %v1727_v52  ;;  %v1735_v24 = vcombine.high %v1723_v45, %v1727_v52  ;;  %v1702_v45 = vcombine.low %v1677_v27, %v1685_v32 }
 0xba4   :  { %v1742_v28 = vrot.slane %v1734_v59, %v8361_v41  ;;  %v1749_v56 = vrot.slane %v1735_v24, %v8361_v41  ;;  %v1710_v54 = vrot.slane %v1702_v45, %v8372_v51 }
 0xba5   :  { %v1729_v60 = vpop.permute.xlu1 %1728 }
 0xba6   :  { %v1750_v61 = vcombine.low %v1725_v50, %v1729_v60  ;;  %v1751_v62 = vcombine.high %v1725_v50, %v1729_v60  ;;  %v1687_v60 = vcombine.high %v1661_v25, %v1669_v26 }
 0xba8   :  { %v1758_v57 = vrot.slane %v1750_v61, %v8361_v41  ;;  %v1765_v4 = vrot.slane %v1751_v62, %v8361_v41  ;;  %v1718_v61 = vcombine.low %v1694_v53, %v1710_v54  ;;  %v1719_v62 = vcombine.high %v1694_v53, %v1710_v54 }
 0xbaa   :  { %v1766_v6 = vcombine.low %v1742_v28, %v1758_v57  ;;  %v1767_v7 = vcombine.high %v1742_v28, %v1758_v57  ;;  %v1782_v9 = vcombine.low %v1749_v56, %v1765_v4  ;;  %v1783_v10 = vcombine.high %v1749_v56, %v1765_v4 }
 0xbab   :  { %v2018_v30 = vpack.c.bf16 %v1718_v61, %v1718_v61  ;;  %v2019_v28 = vpack.c.bf16 %v1719_v62, %v1719_v62  ;;  %v1701_v56 = vrot.slane %v1687_v60, %v8372_v51  ;;  %v1717_v57 = vrot.slane %v1703_v63, %v8372_v51 }
 0xbac   :  { %v1774_v15 = vrot.slane %v1766_v6, %v8372_v51  ;;  %v1781_v17 = vrot.slane %v1767_v7, %v8372_v51  ;;  %v1790_v2 = vrot.slane %v1782_v9, %v8372_v51  ;;  %v1797_v20 = vrot.slane %v1783_v10, %v8372_v51 }
 0xbad   :  { %v1720_v7 = vcombine.low %v1701_v56, %v1717_v57  ;;  %v1721_v9 = vcombine.high %v1701_v56, %v1717_v57 }
 0xbae   :  { %v1802_v21 = vcombine.low %v1774_v15, %v1781_v17  ;;  %v7070_v22 = vcombine.high %v1774_v15, %v1781_v17  ;;  %v1818_v3 = vcombine.low %v1790_v2, %v1797_v20  ;;  %v7071_v23 = vcombine.high %v1790_v2, %v1797_v20 }
 0xbaf   :  { %v2020_v10 = vpack.c.bf16 %v1720_v7, %v1720_v7  ;;  %v2021_v11 = vpack.c.bf16 %v1721_v9, %v1721_v9 }
 0xbb0   :  { %v1809_v33 = vrot.slane %v1802_v21, %v8361_v41  ;;  %v1817_v0 = vrot.slane %v7070_v22, %v8361_v41  ;;  %v1825_v31 = vrot.slane %v1818_v3, %v8361_v41  ;;  %v1833_v34 = vrot.slane %v7071_v23, %v8361_v41 }
 0xbb2   :  { %v1834_v36 = vcombine.low %v1809_v33, %v1817_v0  ;;  %v1850_v16 = vcombine.low %v1825_v31, %v1833_v34  ;;  %v1835_v37 = vcombine.high %v1809_v33, %v1817_v0  ;;  %v1851_v40 = vcombine.high %v1825_v31, %v1833_v34 }
 0xbb4   :  { %v1842_v42 = vrot.slane %v1834_v36, %v8372_v51  ;;  %v1858_v43 = vrot.slane %v1850_v16, %v8372_v51  ;;  %v1849_v48 = vrot.slane %v1835_v37, %v8372_v51  ;;  %v1865_v49 = vrot.slane %v1851_v40, %v8372_v51 }
 0xbb6   :  { %v1866_v46 = vcombine.low %v1842_v42, %v1858_v43  ;;  %v1867_v47 = vcombine.high %v1842_v42, %v1858_v43  ;;  %v1868_v59 = vcombine.low %v1849_v48, %v1865_v49  ;;  %v1869_v24 = vcombine.high %v1849_v48, %v1865_v49 }
 0xbb8   :  { %v2022_v50 = vpack.c.bf16 %v1866_v46, %v1866_v46  ;;  %v2023_v52 = vpack.c.bf16 %v1867_v47, %v1867_v47  ;;  %v2024_v1 = vpack.c.bf16 %v1868_v59, %v1868_v59  ;;  %v2025_v29 = vpack.c.bf16 %v1869_v24, %v1869_v24 }
 0xbba   :  { %v2030_v55 = vsel %vm669_vm2, %v2022_v50, 0  ;;  %v2076_v58 = vsel %vm669_vm2, %v2023_v52, 0  ;;  %v2122_v4 = vsel %vm669_vm2, %v2024_v1, 0  ;;  %v2168_v6 = vsel %vm669_vm2, %v2025_v29, 0 }
 0xbbb   :  { %7526 = vmatpush3.bf16.xpose.msra.mxu0 %v2030_v55  ;;  %7532 = vmatpush3.bf16.xpose.msra.mxu1 %v2076_v58 }
 0xbbc   :  { %7537 = vmatprep.subr.bf16.mxu0 %v8184_v5  ;;  %7543 = vmatprep.subr.bf16.mxu1 %v8184_v5 }
 0xbc2   :  { %7528 = vmatmul.mubr.msk.bf16.vlgmr.msra.gmra.mxu0 %vm669_vm2, %v2018_v30  ;;  %7534 = vmatmul.mubr.msk.bf16.vlgmr.msra.gmra.mxu1 %vm669_vm2, %v2019_v28 }
 0xbc3   :  { %7538 = vmatpush3.bf16.xpose.msra.mxu0 %v2122_v4  ;;  %7544 = vmatpush3.bf16.xpose.msra.mxu1 %v2168_v6 }
 0xbc4   :  { %7539 = vmatprep.mubr.msk.bf16.mxu0 %vm8185_vm1, %v8184_v5  ;;  %7545 = vmatprep.mubr.msk.bf16.mxu1 %vm8185_vm1, %v8184_v5 }
 0xbc5   :  { %7549 = vmatprep.subr.bf16.mxu0 %v8184_v5  ;;  %7555 = vmatprep.subr.bf16.mxu1 %v8184_v5 }
 0xbca   :  { %7540 = vmatmul.mubr.msk.bf16.vlgmr.msra.gmra.mxu0 %vm669_vm2, %v2020_v10  ;;  %7546 = vmatmul.mubr.msk.bf16.vlgmr.msra.gmra.mxu1 %vm669_vm2, %v2021_v11 }
 0xbcb   :  { %7551 = vmatprep.mubr.msk.bf16.mxu0 %vm8185_vm1, %v8184_v5  ;;  %7557 = vmatprep.mubr.msk.bf16.mxu1 %vm8185_vm1, %v8184_v5 }
 0xc82   :  { %v2066_v12 = vpop.f32.mrf.mxu0  ;;  %v2112_v13 = vpop.f32.mrf.mxu1 }
 0xc83   :  { %v2067_v14 = vadd.f32 %v2066_v12, %v8424_v19  ;;  %v2113_v15 = vadd.f32 %v2112_v13, %v8424_v19 }
 0xc84   :  { %v7529_v17 = vpop.f32.mrf.mxu0  ;;  %v7535_v2 = vpop.f32.mrf.mxu1 }
 0xc85   :  { %v2213_v20 = vsel %vm669_vm2, %v2113_v15, -inf  ;;  %v2210_v21 = vsel %vm669_vm2, %v2067_v14, -inf }
 0xc86   :  { %2214 = vmax.xlane.f32.xlu1 %v2213_v20  ;;  %v2115_v22 = vpop.f32.mrf.mxu1  ;;  %2211 = vmax.xlane.f32.xlu0 %v2210_v21  ;;  %v2069_v3 = vpop.f32.mrf.mxu0 }
 0xc88   :  { %v7530_v23 = vpop.f32.mrf.mxu0  ;;  %v7536_v25 = vpop.f32.mrf.mxu1 }
 0xc8a   :  { %v2158_v26 = vpop.f32.mrf.mxu0  ;;  %v2204_v27 = vpop.f32.mrf.mxu1 }
 0xc8b   :  { %v2159_v32 = vadd.f32 %v2158_v26, %v8424_v19  ;;  %v2205_v31 = vadd.f32 %v2204_v27, %v8424_v19 }
 0xc8c   :  { %v7541_v33 = vpop.f32.mrf.mxu0  ;;  %v7547_v0 = vpop.f32.mrf.mxu1 }
 0xc8d   :  { %v2216_v34 = vsel %vm669_vm2, %v2159_v32, -inf  ;;  %v2219_v42 = vsel %vm669_vm2, %v2205_v31, -inf }
 0xc8e   :  { %v2207_v36 = vpop.f32.mrf.mxu1  ;;  %2217 = vmax.xlane.f32.xlu0 %v2216_v34  ;;  %v2161_v16 = vpop.f32.mrf.mxu0 }
 0xc90   :  { %v7542_v37 = vpop.f32.mrf.mxu0  ;;  %v7548_v40 = vpop.f32.mrf.mxu1 }
 0xc92   :  { %2220 = vmax.xlane.f32.xlu0 %v2219_v42 }
 0xc97   :  { %1870 = vrot.lane.b32.xlu1 %v8594_v35, %s8193_s14 }
 0xd0f   :  { %v2215_v43 = vpop.xlane.xlu1 %2214  ;;  %v2212_v44 = vpop.xlane.xlu0 %2211 }
 0xd10   :  { %v2223_v45 = vsub.f32 %v2113_v15, %v2215_v43  ;;  %v2222_v46 = vsub.f32 %v2067_v14, %v2212_v44 }
 0xd12   :  { %v2228_v47 = vmul.f32 1.442695, %v2223_v45  ;;  %v2226_v48 = vmul.f32 1.442695, %v2222_v46 }
 0xd14   :  { %7957 = vpow2.f32 %v2228_v47 }
 0xd15   :  { %7959 = vpow2.f32 %v2226_v48 }
 0xd17   :  { %v2218_v35 = vpop.xlane.xlu0 %2217 }
 0xd18   :  { %v2224_v54 = vsub.f32 %v2159_v32, %v2218_v35 }
 0xd1a   :  { %v2230_v58 = vmul.f32 1.442695, %v2224_v54 }
 0xd1b   :  { %v2221_v55 = vpop.xlane.xlu0 %2220 }
 0xd1c   :  { %v2225_v59 = vsub.f32 %v2205_v31, %v2221_v55  ;;  %7961 = vpow2.f32 %v2230_v58 }
 0xd1e   :  { %v2232_v24 = vmul.f32 1.442695, %v2225_v59 }
 0xd20   :  { %7963 = vpow2.f32 %v2232_v24 }
 0xd21   :  { %v8686_v49 = vpop.eup %7957 }
 0xd22   :  { %v8688_v50 = vpop.eup %7959  ;;  %v2237_v52 = vsel %vm669_vm2, %v8686_v49, 0.0 }
 0xd23   :  { %v2234_v53 = vsel %vm669_vm2, %v8688_v50, 0.0  ;;  %2238 = vadd.xlane.f32.xlu0 %v2237_v52 }
 0xd24   :  { %2235 = vadd.xlane.f32.xlu1 %v2234_v53 }
 0xd29   :  { %v8700_v60 = vpop.eup %7961 }
 0xd2a   :  { %v2240_v61 = vsel %vm669_vm2, %v8700_v60, 0.0 }
 0xd35   :  { %1874 = vrot.lane.b32.xlu1 %v8604_v18, %s8193_s14  ;;  %v8704_v18 = vpop.eup %7963 }
 0xd39   :  { %1876 = vrot.lane.b32.xlu1 %v8612_v39, %s8193_s14  ;;  %1872 = vrot.lane.b32.xlu0 %v8606_v38, %s8193_s14  ;;  %v2243_v39 = vsel %vm669_vm2, %v8704_v18, 0.0  ;;  %v1871_v38 = vpop.permute.xlu1 %1870 }
 0xd58   :  { %2241 = vadd.xlane.f32.xlu0 %v2240_v61 }
 0xd5d   :  { %2244 = vadd.xlane.f32.xlu1 %v2243_v39 }
 0xdac   :  { %v2239_v63 = vpop.xlane.xlu0 %2238 }
 0xdad   :  { %v2236_v62 = vpop.xlane.xlu1 %2235  ;;  %7965 = vrcp.f32 %v2239_v63 }
 0xdae   :  { %7967 = vrcp.f32 %v2236_v62 }
 0xdb0   :  { %v1873_v28 = vpop.permute.xlu0 %1872 }
 0xdb1   :  { %v1875_v1 = vpop.permute.xlu1 %1874 }
 0xdb2   :  { %v1882_v29 = vcombine.low %v1871_v38, %v1875_v1  ;;  %v1883_v30 = vcombine.high %v1871_v38, %v1875_v1 }
 0xdb4   :  { %v1890_v6 = vrot.slane %v1882_v29, %v8361_v41  ;;  %v1897_v7 = vrot.slane %v1883_v30, %v8361_v41 }
 0xdb5   :  { %v1877_v56 = vpop.permute.xlu1 %1876 }
 0xdb6   :  { %v1898_v57 = vcombine.low %v1873_v28, %v1877_v56  ;;  %v1899_v4 = vcombine.high %v1873_v28, %v1877_v56 }
 0xdb8   :  { %v1906_v9 = vrot.slane %v1898_v57, %v8361_v41  ;;  %v1913_v10 = vrot.slane %v1899_v4, %v8361_v41 }
 0xdba   :  { %v1914_v11 = vcombine.low %v1890_v6, %v1906_v9  ;;  %v1915_v12 = vcombine.high %v1890_v6, %v1906_v9  ;;  %v1930_v13 = vcombine.low %v1897_v7, %v1913_v10  ;;  %v1931_v14 = vcombine.high %v1897_v7, %v1913_v10  ;;  %v7966_v36 = vpop.eup %7965 }
 0xdbb   :  { %v7968_v16 = vpop.eup %7967  ;;  %v2251_v35 = vmul.f32 %v7966_v36, %v8686_v49 }
 0xdbc   :  { %v1922_v15 = vrot.slane %v1914_v11, %v8372_v51  ;;  %v1929_v17 = vrot.slane %v1915_v12, %v8372_v51  ;;  %v1938_v2 = vrot.slane %v1930_v13, %v8372_v51  ;;  %v1945_v20 = vrot.slane %v1931_v14, %v8372_v51 }
 0xdbd   :  { %v2250_v53 = vmul.f32 %v7968_v16, %v8688_v50  ;;  %v2255_v61 = vpack.c.bf16 %v2251_v35, %v2251_v35 }
 0xdbe   :  { %v1950_v21 = vcombine.low %v1922_v15, %v1929_v17  ;;  %v7072_v22 = vcombine.high %v1922_v15, %v1929_v17  ;;  %v1966_v3 = vcombine.low %v1938_v2, %v1945_v20  ;;  %v7073_v23 = vcombine.high %v1938_v2, %v1945_v20 }
 0xdbf   :  { %v2254_v24 = vpack.c.bf16 %v2250_v53, %v2250_v53 }
 0xdc0   :  { %v1957_v25 = vrot.slane %v1950_v21, %v8361_v41  ;;  %v1965_v26 = vrot.slane %v7072_v22, %v8361_v41  ;;  %v1973_v27 = vrot.slane %v1966_v3, %v8361_v41  ;;  %v1981_v32 = vrot.slane %v7073_v23, %v8361_v41 }
 0xdc2   :  { %v1982_v33 = vcombine.low %v1957_v25, %v1965_v26  ;;  %v1998_v0 = vcombine.low %v1973_v27, %v1981_v32  ;;  %v1983_v31 = vcombine.high %v1957_v25, %v1965_v26  ;;  %v1999_v34 = vcombine.high %v1973_v27, %v1981_v32 }
 0xdc4   :  { %v1990_v37 = vrot.slane %v1982_v33, %v8372_v51  ;;  %v2006_v40 = vrot.slane %v1998_v0, %v8372_v51  ;;  %v1997_v42 = vrot.slane %v1983_v31, %v8372_v51  ;;  %v2013_v43 = vrot.slane %v1999_v34, %v8372_v51  ;;  %v7893_v31 = vld [vmem:[%s9611_s3 + $0x18] sm:$0xff]  }
 0xdc6   :  { %v2014_v44 = vcombine.low %v1990_v37, %v2006_v40  ;;  %v2015_v45 = vcombine.high %v1990_v37, %v2006_v40  ;;  %v2016_v46 = vcombine.low %v1997_v42, %v2013_v43  ;;  %v2017_v47 = vcombine.high %v1997_v42, %v2013_v43 }
 0xdc8   :  { %v2258_v48 = vpack.c.bf16 %v2014_v44, %v2014_v44  ;;  %v2259_v52 = vpack.c.bf16 %v2015_v45, %v2015_v45  ;;  %v2260_v58 = vpack.c.bf16 %v2016_v46, %v2016_v46  ;;  %v2261_v59 = vpack.c.bf16 %v2017_v47, %v2017_v47  ;;  %v7894_v46 = vld [vmem:[%s9611_s3 + $0x10] sm:$0xff]  }
 0xdca   :  { %v2266_v54 = vsel %vm909_vm4, %v2258_v48, 0  ;;  %v2312_v55 = vsel %vm909_vm4, %v2259_v52, 0  ;;  %v2358_v49 = vsel %vm909_vm4, %v2260_v58, 0  ;;  %v2404_v50 = vsel %vm909_vm4, %v2261_v59, 0 }
 0xdcb   :  { %7550 = vmatpush3.bf16.msra.mxu0 %v2266_v54  ;;  %7556 = vmatpush3.bf16.msra.mxu1 %v2312_v55 }
 0xdcc   :  { %7561 = vmatprep.subr.bf16.mxu0 %v8184_v5  ;;  %7567 = vmatprep.subr.bf16.mxu1 %v8184_v5 }
 0xdce   :  { %7552 = vmatmul.mubr.msk.bf16.vlgmr.msra.gmra.mxu0 %vm669_vm2, %v2254_v24  ;;  %7558 = vmatmul.mubr.msk.bf16.vlgmr.msra.gmra.mxu1 %vm669_vm2, %v2255_v61 }
 0xdcf   :  { %7562 = vmatpush3.bf16.msra.mxu0 %v2358_v49  ;;  %7568 = vmatpush3.bf16.msra.mxu1 %v2404_v50 }
 0xdd0   :  { %7563 = vmatprep.mubr.msk.bf16.mxu0 %vm8185_vm1, %v8184_v5  ;;  %7569 = vmatprep.mubr.msk.bf16.mxu1 %vm8185_vm1, %v8184_v5 }
 0xdd1   :  { %7573 = vmatprep.subr.bf16.mxu0 %v8184_v5  ;;  %7581 = vmatprep.subr.bf16.mxu1 %v8184_v5 }
 0xde1   :  { %v2242_v39 = vpop.xlane.xlu0 %2241 }
 0xde2   :  { %7969 = vrcp.f32 %v2242_v39 }
 0xde6   :  { %v2245_v38 = vpop.xlane.xlu1 %2244 }
 0xde7   :  { %7971 = vrcp.f32 %v2245_v38 }
 0xdef   :  { %v7970_v62 = vpop.eup %7969 }
 0xdf0   :  { %v2252_v63 = vmul.f32 %v7970_v62, %v8700_v60 }
 0xdf2   :  { %v2256_v1 = vpack.c.bf16 %v2252_v63, %v2252_v63 }
 0xdf4   :  { %v7972_v29 = vpop.eup %7971  ;;  %7564 = vmatmul.mubr.msk.bf16.vlgmr.msra.gmra.mxu0 %vm669_vm2, %v2256_v1 }
 0xdf5   :  { %v2253_v30 = vmul.f32 %v7972_v29, %v8704_v18  ;;  %7577 = vmatprep.mubr.msk.bf16.mxu0 %vm8185_vm1, %v8184_v5  ;;  %7574 = vmatpush3.bf16.msra.mxu0 %v7893_v31 }
 0xdf6   :  { %7575 = vmatprep.subr.bf16.mxu0 %v8184_v5 }
 0xdf7   :  { %v2257_v28 = vpack.c.bf16 %v2253_v30, %v2253_v30 }
 0xdf9   :  { %7570 = vmatmul.mubr.msk.bf16.vlgmr.msra.gmra.mxu1 %vm669_vm2, %v2257_v28  ;;  %7576 = vmatpush3.bf16.msra.mxu0 %v7894_v46 }
 0xdfa   :  { %7585 = vmatprep.mubr.msk.bf16.mxu1 %vm8185_vm1, %v8184_v5  ;;  %7589 = vmatprep.subr.bf16.mxu0 %v8184_v5 }
 0xe8e   :  { %v2302_v56 = vpop.f32.mrf.mxu0  ;;  %v2348_v57 = vpop.f32.mrf.mxu1 }
 0xe90   :  { %v7553_v4 = vpop.f32.mrf.mxu0  ;;  %v7559_v6 = vpop.f32.mrf.mxu1 }
 0xe91   :  { %v7088_v4 = vld [vmem:[#allocation7 + $0x1] ss:$0 sm:$0xff] }
 0xe92   :  { %v2305_v60 = vpop.f32.mrf.mxu0  ;;  %v2351_v7 = vpop.f32.mrf.mxu1 }
 0xe94   :  { %v7554_v9 = vpop.f32.mrf.mxu0  ;;  %v7560_v10 = vpop.f32.mrf.mxu1 }
 0xeb4   :  { %v2394_v11 = vpop.f32.mrf.mxu0 }
 0xeb5   :  { %v2446_v18 = vcombine.low %v2302_v56, %v2394_v11  ;;  %v2447_v13 = vcombine.high %v2302_v56, %v2394_v11 }
 0xeb6   :  { %v7565_v12 = vpop.f32.mrf.mxu0 }
 0xeb7   :  { %v2454_v22 = vrot.slane %v2446_v18, %v8361_v41  ;;  %v2461_v3 = vrot.slane %v2447_v13, %v8361_v41 }
 0xeb8   :  { %v2397_v14 = vpop.f32.mrf.mxu0 }
 0xeb9   :  { %v2440_v15 = vpop.f32.mrf.mxu1  ;;  %v7895_v14 = vld [vmem:[%s9613_s5 + $0x18] sm:$0xff]  }
 0xeba   :  { %v2462_v17 = vcombine.low %v2348_v57, %v2440_v15  ;;  %v2463_v2 = vcombine.high %v2348_v57, %v2440_v15  ;;  %v7566_v20 = vpop.f32.mrf.mxu0  ;;  %7582 = vmatpush3.bf16.msra.mxu1 %v7895_v14 }
 0xebb   :  { %v7571_v21 = vpop.f32.mrf.mxu1  ;;  %7583 = vmatprep.subr.bf16.mxu1 %v8184_v5 }
 0xebc   :  { %v2470_v23 = vrot.slane %v2462_v17, %v8361_v41  ;;  %v2477_v25 = vrot.slane %v2463_v2, %v8361_v41 }
 0xebd   :  { %v2443_v26 = vpop.f32.mrf.mxu1 }
 0xebe   :  { %v2478_v27 = vcombine.low %v2454_v22, %v2470_v23  ;;  %v2479_v32 = vcombine.high %v2454_v22, %v2470_v23  ;;  %v2494_v33 = vcombine.low %v2461_v3, %v2477_v25  ;;  %v2495_v0 = vcombine.high %v2461_v3, %v2477_v25 }
 0xebf   :  { %v7572_v34 = vpop.f32.mrf.mxu1 }
 0xec0   :  { %v2486_v36 = vrot.slane %v2478_v27, %v8372_v51  ;;  %v2493_v16 = vrot.slane %v2479_v32, %v8372_v51  ;;  %v2502_v37 = vrot.slane %v2494_v33, %v8372_v51  ;;  %v2509_v40 = vrot.slane %v2495_v0, %v8372_v51  ;;  %v8801_v27 = vld [vmem:[%s9617_s9] ss:$0 sm:$0xff]  ;;  %v7897_v34 = vld [vmem:[%s9615_s7 + $0x38] sm:$0xff]  }
 0xec1   :  { %v8807_v33 = vld [vmem:[%s9618_s10] ss:$0 sm:$0xff] }
 0xec2   :  { %v2514_v42 = vcombine.low %v2486_v36, %v2493_v16  ;;  %v7082_v43 = vcombine.high %v2486_v36, %v2493_v16  ;;  %v2530_v44 = vcombine.low %v2502_v37, %v2509_v40  ;;  %v7083_v45 = vcombine.high %v2502_v37, %v2509_v40  ;;  %v7898_v36 = vld [vmem:[%s9615_s7 + $0x30] sm:$0xff]   ;;  %v7899_v16 = vld [vmem:[%s9615_s7 + $0x28] sm:$0xff]   ;;  %v7900_v37 = vld [vmem:[%s9615_s7 + $0x20] sm:$0xff]  }
 0xec3   :  { %v7096_v40 = vld [vmem:[#allocation8 + $0x1] ss:$0 sm:$0xff] }
 0xec4   :  { %v2521_v47 = vrot.slane %v2514_v42, %v8361_v41  ;;  %v2529_v48 = vrot.slane %v7082_v43, %v8361_v41  ;;  %v2537_v52 = vrot.slane %v2530_v44, %v8361_v41  ;;  %v2545_v53 = vrot.slane %v7083_v45, %v8361_v41 }
 0xec6   :  { %v2547_v35 = vcombine.high %v2521_v47, %v2529_v48  ;;  %v2563_v54 = vcombine.high %v2537_v52, %v2545_v53  ;;  %v2546_v55 = vcombine.low %v2521_v47, %v2529_v48  ;;  %v2562_v58 = vcombine.low %v2537_v52, %v2545_v53 }
 0xec8   :  { %v2561_v59 = vrot.slane %v2547_v35, %v8372_v51  ;;  %v2577_v24 = vrot.slane %v2563_v54, %v8372_v51  ;;  %v2554_v61 = vrot.slane %v2546_v55, %v8372_v51  ;;  %v2570_v49 = vrot.slane %v2562_v58, %v8372_v51 }
 0xeca   :  { %v2580_v50 = vcombine.low %v2561_v59, %v2577_v24  ;;  %v2579_v39 = vcombine.high %v2554_v61, %v2570_v49  ;;  %v2578_v38 = vcombine.low %v2554_v61, %v2570_v49  ;;  %v2581_v62 = vcombine.high %v2561_v59, %v2577_v24  ;;  %v7108_v61 = vld [vmem:[#allocation10 + $0x1] ss:$0 sm:$0xff] }
 0xecc   :  { %2587 = vrot.lane.b32.xlu1 %v2580_v50, %s8178_s29  ;;  %2583 = vrot.lane.b32.xlu0 %v2579_v39, %s8194_s0 }
 0xed0   :  { %2591 = vrot.lane.b32.xlu0 %v2581_v62, %s8195_s18 }
 0xf3e   :  { %v2584_v63 = vpop.permute.xlu0 %2583  ;;  %v2588_v1 = vpop.permute.xlu1 %2587 }
 0xf3f   :  { %v2594_v29 = vsel %vm669_vm2, %v2578_v38, %v2584_v63 }
 0xf40   :  { %v2595_v28 = vsel %vm1240_vm5, %v2594_v29, %v2588_v1 }
 0xf42   :  { %v2592_v30 = vpop.permute.xlu0 %2591 }
 0xf43   :  { %v2596_v56 = vsel %vm1242_vm6, %v2595_v28, %v2592_v30  ;;  %v7901_v28 = vld [vmem:[%s9609_s1 + $0x28] sm:$0xff]  }
 0xf44   :  { %v2597_v57 = vpack.c.bf16 %v2596_v56, %v2596_v56  ;;  %v7902_v56 = vld [vmem:[%s9609_s1 + $0x20] sm:$0xff]  }
 0xf46   :  { %7578 = vmatmul.mubr.msk.bf16.vlgmr.msra.gmra.mxu0 %vm121_vm0, %v2597_v57 }
 0xf47   :  { %7597 = vmatprep.mubr.msk.bf16.mxu0 %vm8185_vm1, %v8184_v5  ;;  %7590 = vmatpush3.bf16.msra.mxu0 %v7897_v34 }
 0xf48   :  { %7591 = vmatprep.subr.bf16.mxu0 %v8184_v5 }
 0xf4b   :  { %7592 = vmatpush3.bf16.msra.mxu0 %v7898_v36 }
 0xf4c   :  { %7593 = vmatprep.subr.bf16.mxu0 %v8184_v5 }
 0xf4f   :  { %7594 = vmatpush3.bf16.msra.mxu0 %v7899_v16 }
 0xf50   :  { %7595 = vmatprep.subr.bf16.mxu0 %v8184_v5 }
 0xf53   :  { %7596 = vmatpush3.bf16.msra.mxu0 %v7900_v37 }
 0xf54   :  { %7615 = vmatprep.subr.bf16.mxu0 %v8184_v5 }
0x1006   :  { %v2660_v6 = vpop.f32.mrf.mxu0 }
0x1007   :  { %v2661_v60 = vadd.f32 %v7088_v4, %v2660_v6 }
0x1008   :  { %v7579_v7 = vpop.f32.mrf.mxu0 }
0x1009   :  { %v8782_v9 = vadd.f32 %v2661_v60, %v8573_v8  ;;  %v7896_v8 = vld [vmem:[%s9613_s5 + $0x10] sm:$0xff]  }
0x100a   :  { %v2663_v10 = vpop.f32.mrf.mxu0  ;;  %7584 = vmatpush3.bf16.msra.mxu1 %v7896_v8 }
0x100b   :  { %v2667_v11 = vsel %vm121_vm0, %v8782_v9, 0.0  ;;  %v2671_v12 = vmul.f32 %v8782_v9, %v8782_v9  ;;  %7601 = vmatprep.subr.bf16.mxu1 %v8184_v5 }
0x100c   :  { %2668 = vadd.xlane.f32.xlu1 %v2667_v11  ;;  %v7580_v18 = vpop.f32.mrf.mxu0 }
0x100d   :  { %v2672_v13 = vsel %vm121_vm0, %v2671_v12, 0.0 }
0x100e   :  { %2673 = vadd.xlane.f32.xlu0 %v2672_v13 }
0x1095   :  { %v2669_v15 = vpop.xlane.xlu1 %2668 }
0x1096   :  { %v2670_v17 = vmul.f32 0.03125, %v2669_v15  ;;  %v7118_v15 = vld [vmem:[#allocation5 + $0x2] ss:$0 sm:$0xff] }
0x1097   :  { %v2674_v2 = vpop.xlane.xlu0 %2673 }
0x1098   :  { %v2676_v20 = vmul.f32 %v2670_v17, %v2670_v17  ;;  %v2675_v21 = vmul.f32 0.03125, %v2674_v2  ;;  %v2678_v23 = vsub.f32 %v8782_v9, %v2670_v17 }
0x109a   :  { %v2677_v22 = vsub.f32 %v2675_v21, %v2676_v20 }
0x109c   :  { %v2679_v3 = vadd.f32 1e-05, %v2677_v22 }
0x109e   :  { %7973 = vrsqrt.f32 %v2679_v3 }
0x10ab   :  { %v7974_v25 = vpop.eup %7973 }
0x10ac   :  { %v2681_v26 = vmul.f32 %v7974_v25, %v2678_v23 }
0x10ae   :  { %v2682_v32 = vmul.f32 %v8801_v27, %v2681_v26 }
0x10b0   :  { %v2683_v0 = vadd.f32 %v8807_v33, %v2682_v32 }
0x10b2   :  { %v2684_v31 = vpack.c.bf16 %v2683_v0, %v2683_v0 }
0x10b4   :  { %7586 = vmatmul.mubr.msk.bf16.vlgmr.msra.gmra.mxu1 %vm121_vm0, %v2684_v31 }
0x10b5   :  { %7605 = vmatprep.mubr.msk.bf16.mxu1 %vm8185_vm1, %v8184_v5  ;;  %7602 = vmatpush3.bf16.msra.mxu1 %v7901_v28 }
0x10b6   :  { %7603 = vmatprep.subr.bf16.mxu1 %v8184_v5 }
0x10b9   :  { %7604 = vmatpush3.bf16.msra.mxu1 %v7902_v56 }
0x10ba   :  { %7609 = vmatprep.subr.bf16.mxu1 %v8184_v5 }
0x1174   :  { %v2747_v42 = vpop.f32.mrf.mxu1 }
0x1175   :  { %v2748_v43 = vadd.f32 %v7096_v40, %v2747_v42 }
0x1176   :  { %v7587_v44 = vpop.f32.mrf.mxu1 }
0x1177   :  { %v2754_v45 = vmul.f32 0.044715, %v2748_v43  ;;  %v2753_v55 = vmul.f32 0.5, %v2748_v43 }
0x1178   :  { %v2750_v46 = vpop.f32.mrf.mxu1 }
0x1179   :  { %v2755_v47 = vmul.f32 %v2754_v45, %v2748_v43 }
0x117a   :  { %v7588_v48 = vpop.f32.mrf.mxu1 }
0x117b   :  { %v2756_v52 = vmul.f32 %v2755_v47, %v2748_v43 }
0x117d   :  { %v2757_v53 = vadd.f32 %v2756_v52, %v2748_v43 }
0x117f   :  { %v2758_v35 = vmul.f32 0.7978846, %v2757_v53 }
0x1181   :  { %7975 = vtanh.f32 %v2758_v35 }
0x118e   :  { %v7976_v54 = vpop.eup %7975 }
0x118f   :  { %v2760_v58 = vadd.f32 1.0, %v7976_v54 }
0x1191   :  { %v2761_v59 = vmul.f32 %v2760_v58, %v2753_v55 }
0x1193   :  { %v2762_v24 = vpack.c.bf16 %v2761_v59, %v2761_v59 }
0x1195   :  { %7598 = vmatmul.mubr.msk.bf16.vlgmr.msra.gmra.mxu0 %vm1445_vm7, %v2762_v24 }
0x1196   :  { %7617 = vmatprep.mubr.msk.bf16.mxu0 %vm8185_vm1, %v8184_v5 }
0x1255   :  { %v2841_v49 = vpop.f32.mrf.mxu0 }
0x1256   :  { %v2842_v50 = vadd.f32 %v7108_v61, %v2841_v49 }
0x1257   :  { %v7599_v39 = vpop.f32.mrf.mxu0 }
0x1258   :  { %v8833_v38 = vadd.f32 %v2842_v50, %v8782_v9 }
0x1259   :  { %v2844_v62 = vpop.f32.mrf.mxu0 }
0x125a   :  { %v2848_v63 = vsel %vm121_vm0, %v8833_v38, 0.0  ;;  %v2852_v1 = vmul.f32 %v8833_v38, %v8833_v38 }
0x125b   :  { %2849 = vadd.xlane.f32.xlu0 %v2848_v63  ;;  %v7600_v29 = vpop.f32.mrf.mxu0 }
0x125c   :  { %v2853_v30 = vsel %vm121_vm0, %v2852_v1, 0.0 }
0x125d   :  { %2854 = vadd.xlane.f32.xlu1 %v2853_v30 }
0x12e4   :  { %v2850_v57 = vpop.xlane.xlu0 %2849 }
0x12e5   :  { %v2851_v4 = vmul.f32 0.03125, %v2850_v57 }
0x12e6   :  { %v2855_v6 = vpop.xlane.xlu1 %2854 }
0x12e7   :  { %v2857_v60 = vmul.f32 %v2851_v4, %v2851_v4  ;;  %v2856_v7 = vmul.f32 0.03125, %v2855_v6  ;;  %v2859_v11 = vsub.f32 %v8833_v38, %v2851_v4 }
0x12e9   :  { %v2858_v9 = vsub.f32 %v2856_v7, %v2857_v60 }
0x12eb   :  { %v2860_v10 = vadd.f32 1e-05, %v2858_v9 }
0x12ed   :  { %7977 = vrsqrt.f32 %v2860_v10 }
0x12fa   :  { %v7978_v12 = vpop.eup %7977 }
0x12fb   :  { %v2862_v18 = vmul.f32 %v7978_v12, %v2859_v11 }
0x12fd   :  { %v2863_v13 = vmul.f32 %v8801_v27, %v2862_v18 }
0x12ff   :  { %v2864_v14 = vadd.f32 %v8807_v33, %v2863_v13 }
0x1301   :  { %v2865_v8 = vpack.c.bf16 %v2864_v14, %v2864_v14 }
0x1303   :  { %7606 = vmatmul.mubr.msk.bf16.vlgmr.msra.gmra.mxu1 %vm121_vm0, %v2865_v8 }
0x1304   :  { %7611 = vmatprep.mubr.msk.bf16.mxu1 %vm8185_vm1, %v8184_v5 }
0x13c3   :  { %v2928_v17 = vpop.f32.mrf.mxu1 }
0x13c4   :  { %v8854_v2 = vadd.f32 %v7118_v15, %v2928_v17 }
0x13c5   :  { %v7607_v20 = vpop.f32.mrf.mxu1 }
0x13c6   :  { %2938 = vrot.lane.b32.xlu1 %v8854_v2, %s8188_s27  ;;  %2935 = vrot.lane.b32.xlu0 %v8854_v2, %s8187_s26 }
0x13c7   :  { %v2931_v21 = vpop.f32.mrf.mxu1 }
0x13c9   :  { %v7608_v22 = vpop.f32.mrf.mxu1 }
0x13ca   :  { %2941 = vrot.lane.b32.xlu1 %v8854_v2, %s8186_s25  ;;  %3080 = vrot.lane.b32.xlu0 %v8854_v2, %s8189_s28 }
0x1438   :  { %v8864_v3 = vpop.permute.xlu1 %2938  ;;  %v8866_v23 = vpop.permute.xlu0 %2935 }
0x1439   :  { %3084 = vrot.lane.b32.xlu0 %v8864_v3, %s8189_s28  ;;  %3082 = vrot.lane.b32.xlu1 %v8866_v23, %s8189_s28  ;;  %v2944_v0 = vcombine.low %v8854_v2, %v8864_v3  ;;  %v2945_v31 = vcombine.high %v8854_v2, %v8864_v3 }
0x143b   :  { %v2952_v37 = vrot.slane %v2944_v0, %v8361_v41  ;;  %v2959_v40 = vrot.slane %v2945_v31, %v8361_v41 }
0x143c   :  { %v8872_v25 = vpop.permute.xlu1 %2941  ;;  %v3081_v34 = vpop.permute.xlu0 %3080 }
0x143d   :  { %3086 = vrot.lane.b32.xlu1 %v8872_v25, %s8189_s28  ;;  %v2960_v26 = vcombine.low %v8866_v23, %v8872_v25  ;;  %v2961_v32 = vcombine.high %v8866_v23, %v8872_v25 }
0x143f   :  { %v2968_v36 = vrot.slane %v2960_v26, %v8361_v41  ;;  %v2975_v16 = vrot.slane %v2961_v32, %v8361_v41 }
0x1441   :  { %v2976_v44 = vcombine.low %v2952_v37, %v2968_v36  ;;  %v2977_v45 = vcombine.high %v2952_v37, %v2968_v36  ;;  %v2992_v46 = vcombine.low %v2959_v40, %v2975_v16  ;;  %v2993_v47 = vcombine.high %v2959_v40, %v2975_v16 }
0x1443   :  { %v2984_v55 = vrot.slane %v2976_v44, %v8372_v51  ;;  %v2991_v58 = vrot.slane %v2977_v45, %v8372_v51  ;;  %v3000_v59 = vrot.slane %v2992_v46, %v8372_v51  ;;  %v3007_v24 = vrot.slane %v2993_v47, %v8372_v51 }
0x1445   :  { %v3012_v30 = vcombine.low %v2984_v55, %v2991_v58  ;;  %v7122_v28 = vcombine.high %v2984_v55, %v2991_v58  ;;  %v3028_v56 = vcombine.low %v3000_v59, %v3007_v24  ;;  %v7123_v57 = vcombine.high %v3000_v59, %v3007_v24 }
0x1447   :  { %v3019_v18 = vrot.slane %v3012_v30, %v8361_v41  ;;  %v3027_v13 = vrot.slane %v7122_v28, %v8361_v41  ;;  %v3035_v14 = vrot.slane %v3028_v56, %v8361_v41  ;;  %v3043_v8 = vrot.slane %v7123_v57, %v8361_v41 }
0x1449   :  { %v3044_v36 = vcombine.low %v3019_v18, %v3027_v13  ;;  %v3060_v16 = vcombine.low %v3035_v14, %v3043_v8  ;;  %v3061_v59 = vcombine.high %v3035_v14, %v3043_v8 }
0x144b   :  { %v3052_v46 = vrot.slane %v3044_v36, %v8372_v51  ;;  %v3068_v47 = vrot.slane %v3060_v16, %v8372_v51 }
0x144d   :  { %v3076_v55 = vcombine.low %v3052_v46, %v3068_v47  ;;  %v3077_v58 = vcombine.high %v3052_v46, %v3068_v47 }
0x14ab   :  { %v3083_v42 = vpop.permute.xlu1 %3082  ;;  %v3085_v43 = vpop.permute.xlu0 %3084 }
0x14ac   :  { %v3092_v48 = vcombine.low %v3081_v34, %v3085_v43  ;;  %v3093_v52 = vcombine.high %v3081_v34, %v3085_v43 }
0x14ae   :  { %v3100_v61 = vrot.slane %v3092_v48, %v8361_v41  ;;  %v3107_v49 = vrot.slane %v3093_v52, %v8361_v41 }
0x14af   :  { %v3087_v53 = vpop.permute.xlu1 %3086 }
0x14b0   :  { %v3108_v35 = vcombine.low %v3083_v42, %v3087_v53  ;;  %v3109_v54 = vcombine.high %v3083_v42, %v3087_v53 }
0x14b2   :  { %v3116_v50 = vrot.slane %v3108_v35, %v8361_v41  ;;  %v3123_v39 = vrot.slane %v3109_v54, %v8361_v41  ;;  %v3045_v54 = vcombine.high %v3019_v18, %v3027_v13 }
0x14b4   :  { %v3124_v62 = vcombine.low %v3100_v61, %v3116_v50  ;;  %v3125_v63 = vcombine.high %v3100_v61, %v3116_v50  ;;  %v3140_v1 = vcombine.low %v3107_v49, %v3123_v39  ;;  %v3141_v29 = vcombine.high %v3107_v49, %v3123_v39 }
0x14b5   :  { %v3376_v49 = vpack.c.bf16 %v3076_v55, %v3076_v55  ;;  %v3377_v50 = vpack.c.bf16 %v3077_v58, %v3077_v58  ;;  %v3059_v39 = vrot.slane %v3045_v54, %v8372_v51 }
0x14b6   :  { %v3132_v4 = vrot.slane %v3124_v62, %v8372_v51  ;;  %v3139_v6 = vrot.slane %v3125_v63, %v8372_v51  ;;  %v3148_v60 = vrot.slane %v3140_v1, %v8372_v51  ;;  %v3155_v7 = vrot.slane %v3141_v29, %v8372_v51 }
0x14b7   :  { %v3075_v62 = vrot.slane %v3061_v59, %v8372_v51 }
0x14b8   :  { %v3160_v9 = vcombine.low %v3132_v4, %v3139_v6  ;;  %v7124_v10 = vcombine.high %v3132_v4, %v3139_v6  ;;  %v3176_v11 = vcombine.low %v3148_v60, %v3155_v7  ;;  %v7125_v12 = vcombine.high %v3148_v60, %v3155_v7 }
0x14b9   :  { %v3078_v29 = vcombine.low %v3059_v39, %v3075_v62  ;;  %v3079_v30 = vcombine.high %v3059_v39, %v3075_v62 }
0x14ba   :  { %v3167_v15 = vrot.slane %v3160_v9, %v8361_v41  ;;  %v3175_v17 = vrot.slane %v7124_v10, %v8361_v41  ;;  %v3183_v20 = vrot.slane %v3176_v11, %v8361_v41  ;;  %v3191_v21 = vrot.slane %v7125_v12, %v8361_v41 }
0x14bb   :  { %v3378_v28 = vpack.c.bf16 %v3078_v29, %v3078_v29  ;;  %v3379_v56 = vpack.c.bf16 %v3079_v30, %v3079_v30 }
0x14bc   :  { %v3192_v22 = vcombine.low %v3167_v15, %v3175_v17  ;;  %v3208_v26 = vcombine.low %v3183_v20, %v3191_v21  ;;  %v3193_v32 = vcombine.high %v3167_v15, %v3175_v17  ;;  %v3209_v0 = vcombine.high %v3183_v20, %v3191_v21 }
0x14be   :  { %v3200_v31 = vrot.slane %v3192_v22, %v8372_v51  ;;  %v3216_v34 = vrot.slane %v3208_v26, %v8372_v51  ;;  %v3207_v42 = vrot.slane %v3193_v32, %v8372_v51  ;;  %v3223_v43 = vrot.slane %v3209_v0, %v8372_v51 }
0x14c0   :  { %v3224_v37 = vcombine.low %v3200_v31, %v3216_v34  ;;  %v3225_v40 = vcombine.high %v3200_v31, %v3216_v34  ;;  %v3226_v53 = vcombine.low %v3207_v42, %v3223_v43  ;;  %v3227_v35 = vcombine.high %v3207_v42, %v3223_v43 }
0x14c2   :  { %v3380_v44 = vpack.c.bf16 %v3224_v37, %v3224_v37  ;;  %v3381_v45 = vpack.c.bf16 %v3225_v40, %v3225_v40  ;;  %v3382_v24 = vpack.c.bf16 %v3226_v53, %v3226_v53  ;;  %v3383_v61 = vpack.c.bf16 %v3227_v35, %v3227_v35 }
0x14c4   :  { %v3388_v48 = vsel %vm669_vm2, %v3380_v44, 0  ;;  %v3434_v52 = vsel %vm669_vm2, %v3381_v45, 0  ;;  %v3480_v63 = vsel %vm669_vm2, %v3382_v24, 0  ;;  %v3526_v1 = vsel %vm669_vm2, %v3383_v61, 0 }
0x14c5   :  { %7610 = vmatpush3.bf16.xpose.msra.mxu1 %v3388_v48  ;;  %7616 = vmatpush3.bf16.xpose.msra.mxu0 %v3434_v52 }
0x14c6   :  { %7621 = vmatprep.subr.bf16.mxu1 %v8184_v5  ;;  %7627 = vmatprep.subr.bf16.mxu0 %v8184_v5 }
0x14cc   :  { %7612 = vmatmul.mubr.msk.bf16.vlgmr.msra.gmra.mxu1 %vm669_vm2, %v3376_v49  ;;  %7618 = vmatmul.mubr.msk.bf16.vlgmr.msra.gmra.mxu0 %vm669_vm2, %v3377_v50 }
0x14cd   :  { %7622 = vmatpush3.bf16.xpose.msra.mxu1 %v3480_v63  ;;  %7628 = vmatpush3.bf16.xpose.msra.mxu0 %v3526_v1 }
0x14ce   :  { %7623 = vmatprep.mubr.msk.bf16.mxu1 %vm8185_vm1, %v8184_v5  ;;  %7629 = vmatprep.mubr.msk.bf16.mxu0 %vm8185_vm1, %v8184_v5 }
0x14cf   :  { %7633 = vmatprep.subr.bf16.mxu1 %v8184_v5  ;;  %7639 = vmatprep.subr.bf16.mxu0 %v8184_v5 }
0x14d4   :  { %7624 = vmatmul.mubr.msk.bf16.vlgmr.msra.gmra.mxu1 %vm669_vm2, %v3378_v28  ;;  %7630 = vmatmul.mubr.msk.bf16.vlgmr.msra.gmra.mxu0 %vm669_vm2, %v3379_v56 }
0x14d5   :  { %7635 = vmatprep.mubr.msk.bf16.mxu1 %vm8185_vm1, %v8184_v5  ;;  %7641 = vmatprep.mubr.msk.bf16.mxu0 %vm8185_vm1, %v8184_v5 }
0x158c   :  { %v3424_v57 = vpop.f32.mrf.mxu1  ;;  %v3470_v4 = vpop.f32.mrf.mxu0 }
0x158d   :  { %v3425_v6 = vadd.f32 %v3424_v57, %v8424_v19  ;;  %v3471_v60 = vadd.f32 %v3470_v4, %v8424_v19 }
0x158e   :  { %v7613_v7 = vpop.f32.mrf.mxu1  ;;  %v7619_v9 = vpop.f32.mrf.mxu0 }
0x158f   :  { %v3568_v10 = vsel %vm669_vm2, %v3425_v6, -inf  ;;  %v3571_v11 = vsel %vm669_vm2, %v3471_v60, -inf }
0x1590   :  { %3569 = vmax.xlane.f32.xlu0 %v3568_v10  ;;  %v3427_v12 = vpop.f32.mrf.mxu1  ;;  %3572 = vmax.xlane.f32.xlu1 %v3571_v11  ;;  %v3473_v18 = vpop.f32.mrf.mxu0 }
0x1592   :  { %v7614_v13 = vpop.f32.mrf.mxu1  ;;  %v7620_v14 = vpop.f32.mrf.mxu0 }
0x1594   :  { %v3516_v8 = vpop.f32.mrf.mxu1  ;;  %v3562_v15 = vpop.f32.mrf.mxu0 }
0x1595   :  { %v3517_v17 = vadd.f32 %v3516_v8, %v8424_v19  ;;  %v3563_v22 = vadd.f32 %v3562_v15, %v8424_v19 }
0x1596   :  { %v7625_v20 = vpop.f32.mrf.mxu1  ;;  %v7631_v21 = vpop.f32.mrf.mxu0 }
0x1597   :  { %v3574_v26 = vsel %vm669_vm2, %v3517_v17, -inf  ;;  %v3577_v36 = vsel %vm669_vm2, %v3563_v22, -inf }
0x1598   :  { %3575 = vmax.xlane.f32.xlu0 %v3574_v26  ;;  %v3519_v32 = vpop.f32.mrf.mxu1  ;;  %v3565_v0 = vpop.f32.mrf.mxu0 }
0x159a   :  { %v7626_v31 = vpop.f32.mrf.mxu1  ;;  %v7632_v34 = vpop.f32.mrf.mxu0 }
0x159c   :  { %3578 = vmax.xlane.f32.xlu0 %v3577_v36 }
0x15a1   :  { %3228 = vrot.lane.b32.xlu1 %v8854_v2, %s8193_s14 }
0x1619   :  { %v3570_v16 = vpop.xlane.xlu0 %3569  ;;  %v3573_v37 = vpop.xlane.xlu1 %3572 }
0x161a   :  { %v3580_v40 = vsub.f32 %v3425_v6, %v3570_v16  ;;  %v3581_v42 = vsub.f32 %v3471_v60, %v3573_v37 }
0x161c   :  { %v3584_v43 = vmul.f32 1.442695, %v3580_v40  ;;  %v3586_v44 = vmul.f32 1.442695, %v3581_v42 }
0x161e   :  { %7979 = vpow2.f32 %v3584_v43 }
0x161f   :  { %7981 = vpow2.f32 %v3586_v44 }
0x1621   :  { %v3576_v2 = vpop.xlane.xlu0 %3575 }
0x1622   :  { %v3582_v52 = vsub.f32 %v3517_v17, %v3576_v2 }
0x1624   :  { %v3588_v54 = vmul.f32 1.442695, %v3582_v52 }
0x1625   :  { %v3579_v53 = vpop.xlane.xlu0 %3578 }
0x1626   :  { %v3583_v35 = vsub.f32 %v3563_v22, %v3579_v53  ;;  %7983 = vpow2.f32 %v3588_v54 }
0x1628   :  { %v3590_v55 = vmul.f32 1.442695, %v3583_v35 }
0x162a   :  { %7985 = vpow2.f32 %v3590_v55 }
0x162b   :  { %v8946_v45 = vpop.eup %7979 }
0x162c   :  { %v8948_v46 = vpop.eup %7981  ;;  %v3592_v47 = vsel %vm669_vm2, %v8946_v45, 0.0 }
0x162d   :  { %3593 = vadd.xlane.f32.xlu1 %v3592_v47  ;;  %v3595_v48 = vsel %vm669_vm2, %v8948_v46, 0.0 }
0x162e   :  { %3596 = vadd.xlane.f32.xlu0 %v3595_v48 }
0x1633   :  { %v8960_v58 = vpop.eup %7983 }
0x1637   :  { %v8962_v59 = vpop.eup %7985 }
0x163e   :  { %3232 = vrot.lane.b32.xlu1 %v8864_v3, %s8193_s14  ;;  %v3598_v3 = vsel %vm669_vm2, %v8960_v58, 0.0 }
0x1642   :  { %3234 = vrot.lane.b32.xlu1 %v8872_v25, %s8193_s14  ;;  %v3601_v25 = vsel %vm669_vm2, %v8962_v59, 0.0 }
0x1644   :  { %3230 = vrot.lane.b32.xlu0 %v8866_v23, %s8193_s14  ;;  %v3229_v23 = vpop.permute.xlu1 %3228 }
0x1663   :  { %3599 = vadd.xlane.f32.xlu0 %v3598_v3 }
0x1666   :  { %3602 = vadd.xlane.f32.xlu1 %v3601_v25 }
0x16b6   :  { %v3594_v24 = vpop.xlane.xlu1 %3593 }
0x16b7   :  { %v3597_v61 = vpop.xlane.xlu0 %3596  ;;  %7987 = vrcp.f32 %v3594_v24 }
0x16b8   :  { %7989 = vrcp.f32 %v3597_v61 }
0x16ba   :  { %v3233_v49 = vpop.permute.xlu1 %3232 }
0x16bb   :  { %v3240_v50 = vcombine.low %v3229_v23, %v3233_v49  ;;  %v3241_v39 = vcombine.high %v3229_v23, %v3233_v49  ;;  %v3231_v62 = vpop.permute.xlu0 %3230 }
0x16bd   :  { %v3248_v30 = vrot.slane %v3240_v50, %v8361_v41  ;;  %v3255_v28 = vrot.slane %v3241_v39, %v8361_v41 }
0x16be   :  { %v3235_v63 = vpop.permute.xlu1 %3234 }
0x16bf   :  { %v3256_v1 = vcombine.low %v3231_v62, %v3235_v63  ;;  %v3257_v29 = vcombine.high %v3231_v62, %v3235_v63 }
0x16c1   :  { %v3264_v56 = vrot.slane %v3256_v1, %v8361_v41  ;;  %v3271_v57 = vrot.slane %v3257_v29, %v8361_v41 }
0x16c3   :  { %v3272_v4 = vcombine.low %v3248_v30, %v3264_v56  ;;  %v3273_v6 = vcombine.high %v3248_v30, %v3264_v56  ;;  %v3288_v60 = vcombine.low %v3255_v28, %v3271_v57  ;;  %v3289_v7 = vcombine.high %v3255_v28, %v3271_v57 }
0x16c4   :  { %v7988_v31 = vpop.eup %7987 }
0x16c5   :  { %v3280_v9 = vrot.slane %v3272_v4, %v8372_v51  ;;  %v3287_v10 = vrot.slane %v3273_v6, %v8372_v51  ;;  %v3296_v11 = vrot.slane %v3288_v60, %v8372_v51  ;;  %v3303_v12 = vrot.slane %v3289_v7, %v8372_v51  ;;  %v7990_v34 = vpop.eup %7989 }
0x16c6   :  { %v3608_v52 = vmul.f32 %v7988_v31, %v8946_v45  ;;  %v3609_v53 = vmul.f32 %v7990_v34, %v8948_v46  ;;  %v7903_v31 = vld [vmem:[%s9611_s3 + $0x28] sm:$0xff]  }
0x16c7   :  { %v3308_v18 = vcombine.low %v3280_v9, %v3287_v10  ;;  %v7126_v13 = vcombine.high %v3280_v9, %v3287_v10  ;;  %v3324_v14 = vcombine.low %v3296_v11, %v3303_v12  ;;  %v7127_v8 = vcombine.high %v3296_v11, %v3303_v12 }
0x16c8   :  { %v3612_v25 = vpack.c.bf16 %v3608_v52, %v3608_v52  ;;  %v3613_v23 = vpack.c.bf16 %v3609_v53, %v3609_v53 }
0x16c9   :  { %v3315_v15 = vrot.slane %v3308_v18, %v8361_v41  ;;  %v3323_v17 = vrot.slane %v7126_v13, %v8361_v41  ;;  %v3331_v20 = vrot.slane %v3324_v14, %v8361_v41  ;;  %v3339_v21 = vrot.slane %v7127_v8, %v8361_v41 }
0x16cb   :  { %v3340_v22 = vcombine.low %v3315_v15, %v3323_v17  ;;  %v3356_v26 = vcombine.low %v3331_v20, %v3339_v21  ;;  %v3341_v32 = vcombine.high %v3315_v15, %v3323_v17  ;;  %v3357_v0 = vcombine.high %v3331_v20, %v3339_v21 }
0x16cd   :  { %v3348_v36 = vrot.slane %v3340_v22, %v8372_v51  ;;  %v3364_v16 = vrot.slane %v3356_v26, %v8372_v51  ;;  %v3355_v37 = vrot.slane %v3341_v32, %v8372_v51  ;;  %v3371_v40 = vrot.slane %v3357_v0, %v8372_v51 }
0x16cf   :  { %v3372_v42 = vcombine.low %v3348_v36, %v3364_v16  ;;  %v3373_v43 = vcombine.high %v3348_v36, %v3364_v16  ;;  %v3374_v44 = vcombine.low %v3355_v37, %v3371_v40  ;;  %v3375_v47 = vcombine.high %v3355_v37, %v3371_v40 }
0x16d1   :  { %v3616_v48 = vpack.c.bf16 %v3372_v42, %v3372_v42  ;;  %v3617_v2 = vpack.c.bf16 %v3373_v43, %v3373_v43  ;;  %v3618_v55 = vpack.c.bf16 %v3374_v44, %v3374_v44  ;;  %v3619_v3 = vpack.c.bf16 %v3375_v47, %v3375_v47 }
0x16d3   :  { %v3624_v35 = vsel %vm909_vm4, %v3616_v48, 0  ;;  %v3670_v54 = vsel %vm909_vm4, %v3617_v2, 0  ;;  %v3716_v45 = vsel %vm909_vm4, %v3618_v55, 0  ;;  %v3762_v46 = vsel %vm909_vm4, %v3619_v3, 0  ;;  %v7904_v48 = vld [vmem:[%s9611_s3 + $0x20] sm:$0xff]  }
0x16d4   :  { %7634 = vmatpush3.bf16.msra.mxu1 %v3624_v35  ;;  %7640 = vmatpush3.bf16.msra.mxu0 %v3670_v54 }
0x16d5   :  { %7645 = vmatprep.subr.bf16.mxu1 %v8184_v5  ;;  %7651 = vmatprep.subr.bf16.mxu0 %v8184_v5 }
0x16d7   :  { %7636 = vmatmul.mubr.msk.bf16.vlgmr.msra.gmra.mxu1 %vm669_vm2, %v3612_v25  ;;  %7642 = vmatmul.mubr.msk.bf16.vlgmr.msra.gmra.mxu0 %vm669_vm2, %v3613_v23 }
0x16d8   :  { %7646 = vmatpush3.bf16.msra.mxu1 %v3716_v45  ;;  %7652 = vmatpush3.bf16.msra.mxu0 %v3762_v46 }
0x16d9   :  { %7647 = vmatprep.mubr.msk.bf16.mxu1 %vm8185_vm1, %v8184_v5  ;;  %7653 = vmatprep.mubr.msk.bf16.mxu0 %vm8185_vm1, %v8184_v5 }
0x16da   :  { %7657 = vmatprep.subr.bf16.mxu1 %v8184_v5  ;;  %7665 = vmatprep.subr.bf16.mxu0 %v8184_v5 }
0x16ec   :  { %v3600_v24 = vpop.xlane.xlu0 %3599 }
0x16ed   :  { %7991 = vrcp.f32 %v3600_v24 }
0x16ef   :  { %v3603_v61 = vpop.xlane.xlu1 %3602 }
0x16f0   :  { %7993 = vrcp.f32 %v3603_v61 }
0x16fa   :  { %v7992_v49 = vpop.eup %7991 }
0x16fb   :  { %v3610_v50 = vmul.f32 %v7992_v49, %v8960_v58 }
0x16fd   :  { %v7994_v39 = vpop.eup %7993  ;;  %v3614_v62 = vpack.c.bf16 %v3610_v50, %v3610_v50 }
0x16fe   :  { %v3611_v63 = vmul.f32 %v7994_v39, %v8962_v59 }
0x16ff   :  { %7648 = vmatmul.mubr.msk.bf16.vlgmr.msra.gmra.mxu1 %vm669_vm2, %v3614_v62 }
0x1700   :  { %v3615_v1 = vpack.c.bf16 %v3611_v63, %v3611_v63  ;;  %7661 = vmatprep.mubr.msk.bf16.mxu1 %vm8185_vm1, %v8184_v5  ;;  %7658 = vmatpush3.bf16.msra.mxu1 %v7903_v31 }
0x1701   :  { %7659 = vmatprep.subr.bf16.mxu1 %v8184_v5 }
0x1702   :  { %7654 = vmatmul.mubr.msk.bf16.vlgmr.msra.gmra.mxu0 %vm669_vm2, %v3615_v1 }
0x1703   :  { %7669 = vmatprep.mubr.msk.bf16.mxu0 %vm8185_vm1, %v8184_v5 }
0x1704   :  { %7660 = vmatpush3.bf16.msra.mxu1 %v7904_v48 }
0x1705   :  { %7673 = vmatprep.subr.bf16.mxu1 %v8184_v5 }
0x1797   :  { %v3660_v29 = vpop.f32.mrf.mxu1  ;;  %v3706_v30 = vpop.f32.mrf.mxu0 }
0x1799   :  { %v7637_v28 = vpop.f32.mrf.mxu1  ;;  %v7643_v56 = vpop.f32.mrf.mxu0 }
0x179b   :  { %v3663_v58 = vpop.f32.mrf.mxu1  ;;  %v3709_v57 = vpop.f32.mrf.mxu0 }
0x179c   :  { %v7142_v58 = vld [vmem:[#allocation7 + $0x2] ss:$0 sm:$0xff] }
0x179d   :  { %v7638_v4 = vpop.f32.mrf.mxu1  ;;  %v7644_v6 = vpop.f32.mrf.mxu0 }
0x17bf   :  { %v3752_v59 = vpop.f32.mrf.mxu1 }
0x17c0   :  { %v3804_v60 = vcombine.low %v3660_v29, %v3752_v59  ;;  %v3805_v7 = vcombine.high %v3660_v29, %v3752_v59 }
0x17c1   :  { %v7649_v9 = vpop.f32.mrf.mxu1 }
0x17c2   :  { %v3798_v10 = vpop.f32.mrf.mxu0  ;;  %v3812_v14 = vrot.slane %v3804_v60, %v8361_v41  ;;  %v3819_v8 = vrot.slane %v3805_v7, %v8361_v41 }
0x17c3   :  { %v3755_v11 = vpop.f32.mrf.mxu1  ;;  %v3820_v12 = vcombine.low %v3706_v30, %v3798_v10  ;;  %v3821_v18 = vcombine.high %v3706_v30, %v3798_v10 }
0x17c4   :  { %v7655_v13 = vpop.f32.mrf.mxu0 }
0x17c5   :  { %v3828_v15 = vrot.slane %v3820_v12, %v8361_v41  ;;  %v3835_v17 = vrot.slane %v3821_v18, %v8361_v41  ;;  %v7650_v20 = vpop.f32.mrf.mxu1  ;;  %v7905_v12 = vld [vmem:[%s9613_s5 + $0x28] sm:$0xff]  }
0x17c6   :  { %v3801_v21 = vpop.f32.mrf.mxu0  ;;  %7666 = vmatpush3.bf16.msra.mxu0 %v7905_v12 }
0x17c7   :  { %v3836_v22 = vcombine.low %v3812_v14, %v3828_v15  ;;  %v3837_v26 = vcombine.high %v3812_v14, %v3828_v15  ;;  %v3852_v32 = vcombine.low %v3819_v8, %v3835_v17  ;;  %v3853_v0 = vcombine.high %v3819_v8, %v3835_v17  ;;  %7667 = vmatprep.subr.bf16.mxu0 %v8184_v5 }
0x17c8   :  { %v7656_v34 = vpop.f32.mrf.mxu0 }
0x17c9   :  { %v3844_v36 = vrot.slane %v3836_v22, %v8372_v51  ;;  %v3851_v16 = vrot.slane %v3837_v26, %v8372_v51  ;;  %v3860_v37 = vrot.slane %v3852_v32, %v8372_v51  ;;  %v3867_v40 = vrot.slane %v3853_v0, %v8372_v51  ;;  %v7907_v34 = vld [vmem:[%s9615_s7 + $0x58] sm:$0xff]  }
0x17cb   :  { %v3872_v42 = vcombine.low %v3844_v36, %v3851_v16  ;;  %v7136_v43 = vcombine.high %v3844_v36, %v3851_v16  ;;  %v3888_v44 = vcombine.low %v3860_v37, %v3867_v40  ;;  %v7137_v47 = vcombine.high %v3860_v37, %v3867_v40  ;;  %v7908_v36 = vld [vmem:[%s9615_s7 + $0x50] sm:$0xff]   ;;  %v7909_v16 = vld [vmem:[%s9615_s7 + $0x48] sm:$0xff]   ;;  %v7910_v37 = vld [vmem:[%s9615_s7 + $0x40] sm:$0xff]  }
0x17cc   :  { %v7150_v40 = vld [vmem:[#allocation8 + $0x2] ss:$0 sm:$0xff] }
0x17cd   :  { %v3879_v2 = vrot.slane %v3872_v42, %v8361_v41  ;;  %v3887_v52 = vrot.slane %v7136_v43, %v8361_v41  ;;  %v3895_v53 = vrot.slane %v3888_v44, %v8361_v41  ;;  %v3903_v35 = vrot.slane %v7137_v47, %v8361_v41 }
0x17cf   :  { %v3905_v54 = vcombine.high %v3879_v2, %v3887_v52  ;;  %v3921_v55 = vcombine.high %v3895_v53, %v3903_v35  ;;  %v3904_v3 = vcombine.low %v3879_v2, %v3887_v52  ;;  %v3920_v25 = vcombine.low %v3895_v53, %v3903_v35 }
0x17d1   :  { %v3919_v23 = vrot.slane %v3905_v54, %v8372_v51  ;;  %v3935_v45 = vrot.slane %v3921_v55, %v8372_v51  ;;  %v3912_v46 = vrot.slane %v3904_v3, %v8372_v51  ;;  %v3928_v24 = vrot.slane %v3920_v25, %v8372_v51 }
0x17d3   :  { %v3938_v61 = vcombine.low %v3919_v23, %v3935_v45  ;;  %v3937_v49 = vcombine.high %v3912_v46, %v3928_v24  ;;  %v3936_v50 = vcombine.low %v3912_v46, %v3928_v24  ;;  %v3939_v39 = vcombine.high %v3919_v23, %v3935_v45  ;;  %v7162_v46 = vld [vmem:[#allocation10 + $0x2] ss:$0 sm:$0xff] }
0x17d5   :  { %3945 = vrot.lane.b32.xlu1 %v3938_v61, %s8178_s29  ;;  %3941 = vrot.lane.b32.xlu0 %v3937_v49, %s8194_s0 }
0x17d9   :  { %3949 = vrot.lane.b32.xlu0 %v3939_v39, %s8195_s18 }
0x1847   :  { %v3942_v62 = vpop.permute.xlu0 %3941  ;;  %v3946_v63 = vpop.permute.xlu1 %3945 }
0x1848   :  { %v3952_v1 = vsel %vm669_vm2, %v3936_v50, %v3942_v62 }
0x1849   :  { %v3953_v30 = vsel %vm1240_vm5, %v3952_v1, %v3946_v63 }
0x184b   :  { %v3950_v29 = vpop.permute.xlu0 %3949 }
0x184c   :  { %v3954_v28 = vsel %vm1242_vm6, %v3953_v30, %v3950_v29  ;;  %v7911_v30 = vld [vmem:[%s9609_s1 + $0x38] sm:$0xff]  }
0x184d   :  { %v3955_v56 = vpack.c.bf16 %v3954_v28, %v3954_v28  ;;  %v7912_v28 = vld [vmem:[%s9609_s1 + $0x30] sm:$0xff]  }
0x184f   :  { %7662 = vmatmul.mubr.msk.bf16.vlgmr.msra.gmra.mxu1 %vm121_vm0, %v3955_v56 }
0x1850   :  { %7681 = vmatprep.mubr.msk.bf16.mxu1 %vm8185_vm1, %v8184_v5  ;;  %7674 = vmatpush3.bf16.msra.mxu1 %v7907_v34 }
0x1851   :  { %7675 = vmatprep.subr.bf16.mxu1 %v8184_v5 }
0x1854   :  { %7676 = vmatpush3.bf16.msra.mxu1 %v7908_v36 }
0x1855   :  { %7677 = vmatprep.subr.bf16.mxu1 %v8184_v5 }
0x1858   :  { %7678 = vmatpush3.bf16.msra.mxu1 %v7909_v16 }
0x1859   :  { %7679 = vmatprep.subr.bf16.mxu1 %v8184_v5 }
0x185c   :  { %7680 = vmatpush3.bf16.msra.mxu1 %v7910_v37 }
0x185d   :  { %7699 = vmatprep.subr.bf16.mxu1 %v8184_v5 }
0x190f   :  { %v4018_v57 = vpop.f32.mrf.mxu1 }
0x1910   :  { %v4019_v4 = vadd.f32 %v7142_v58, %v4018_v57 }
0x1911   :  { %v7663_v6 = vpop.f32.mrf.mxu1 }
0x1912   :  { %v9042_v59 = vadd.f32 %v4019_v4, %v8833_v38  ;;  %v7906_v38 = vld [vmem:[%s9613_s5 + $0x20] sm:$0xff]  }
0x1913   :  { %v4021_v60 = vpop.f32.mrf.mxu1  ;;  %7668 = vmatpush3.bf16.msra.mxu0 %v7906_v38 }
0x1914   :  { %v4025_v7 = vsel %vm121_vm0, %v9042_v59, 0.0  ;;  %v4029_v9 = vmul.f32 %v9042_v59, %v9042_v59  ;;  %7685 = vmatprep.subr.bf16.mxu0 %v8184_v5 }
0x1915   :  { %4026 = vadd.xlane.f32.xlu1 %v4025_v7  ;;  %v7664_v10 = vpop.f32.mrf.mxu1 }
0x1916   :  { %v4030_v11 = vsel %vm121_vm0, %v4029_v9, 0.0 }
0x1917   :  { %4031 = vadd.xlane.f32.xlu0 %v4030_v11 }
0x199e   :  { %v4027_v18 = vpop.xlane.xlu1 %4026 }
0x199f   :  { %v4028_v13 = vmul.f32 0.03125, %v4027_v18  ;;  %v7172_v18 = vld [vmem:[#allocation5 + $0x3] ss:$0 sm:$0xff] }
0x19a0   :  { %v4032_v14 = vpop.xlane.xlu0 %4031 }
0x19a1   :  { %v4034_v8 = vmul.f32 %v4028_v13, %v4028_v13  ;;  %v4033_v15 = vmul.f32 0.03125, %v4032_v14  ;;  %v4036_v21 = vsub.f32 %v9042_v59, %v4028_v13 }
0x19a3   :  { %v4035_v17 = vsub.f32 %v4033_v15, %v4034_v8 }
0x19a5   :  { %v4037_v20 = vadd.f32 1e-05, %v4035_v17 }
0x19a7   :  { %7995 = vrsqrt.f32 %v4037_v20 }
0x19b4   :  { %v7996_v22 = vpop.eup %7995 }
0x19b5   :  { %v4039_v26 = vmul.f32 %v7996_v22, %v4036_v21 }
0x19b7   :  { %v4040_v32 = vmul.f32 %v8801_v27, %v4039_v26 }
0x19b9   :  { %v4041_v0 = vadd.f32 %v8807_v33, %v4040_v32 }
0x19bb   :  { %v4042_v31 = vpack.c.bf16 %v4041_v0, %v4041_v0 }
0x19bd   :  { %7670 = vmatmul.mubr.msk.bf16.vlgmr.msra.gmra.mxu0 %vm121_vm0, %v4042_v31 }
0x19be   :  { %7689 = vmatprep.mubr.msk.bf16.mxu0 %vm8185_vm1, %v8184_v5  ;;  %7686 = vmatpush3.bf16.msra.mxu0 %v7911_v30 }
0x19bf   :  { %7687 = vmatprep.subr.bf16.mxu0 %v8184_v5 }
0x19c2   :  { %7688 = vmatpush3.bf16.msra.mxu0 %v7912_v28 }
0x19c3   :  { %7693 = vmatprep.subr.bf16.mxu0 %v8184_v5 }
0x1a7d   :  { %v4105_v42 = vpop.f32.mrf.mxu0 }
0x1a7e   :  { %v4106_v43 = vadd.f32 %v7150_v40, %v4105_v42 }
0x1a7f   :  { %v7671_v44 = vpop.f32.mrf.mxu0 }
0x1a80   :  { %v4112_v47 = vmul.f32 0.044715, %v4106_v43  ;;  %v4111_v3 = vmul.f32 0.5, %v4106_v43 }
0x1a81   :  { %v4108_v48 = vpop.f32.mrf.mxu0 }
0x1a82   :  { %v4113_v2 = vmul.f32 %v4112_v47, %v4106_v43 }
0x1a83   :  { %v7672_v52 = vpop.f32.mrf.mxu0 }
0x1a84   :  { %v4114_v53 = vmul.f32 %v4113_v2, %v4106_v43 }
0x1a86   :  { %v4115_v35 = vadd.f32 %v4114_v53, %v4106_v43 }
0x1a88   :  { %v4116_v54 = vmul.f32 0.7978846, %v4115_v35 }
0x1a8a   :  { %7997 = vtanh.f32 %v4116_v54 }
0x1a97   :  { %v7998_v55 = vpop.eup %7997 }
0x1a98   :  { %v4118_v25 = vadd.f32 1.0, %v7998_v55 }
0x1a9a   :  { %v4119_v23 = vmul.f32 %v4118_v25, %v4111_v3 }
0x1a9c   :  { %v4120_v45 = vpack.c.bf16 %v4119_v23, %v4119_v23 }
0x1a9e   :  { %7682 = vmatmul.mubr.msk.bf16.vlgmr.msra.gmra.mxu1 %vm1445_vm7, %v4120_v45 }
0x1a9f   :  { %7701 = vmatprep.mubr.msk.bf16.mxu1 %vm8185_vm1, %v8184_v5 }
0x1b5e   :  { %v4199_v24 = vpop.f32.mrf.mxu1 }
0x1b5f   :  { %v4200_v61 = vadd.f32 %v7162_v46, %v4199_v24 }
0x1b60   :  { %v7683_v49 = vpop.f32.mrf.mxu1 }
0x1b61   :  { %v9083_v50 = vadd.f32 %v4200_v61, %v9042_v59 }
0x1b62   :  { %v4202_v39 = vpop.f32.mrf.mxu1 }
0x1b63   :  { %v4206_v62 = vsel %vm121_vm0, %v9083_v50, 0.0  ;;  %v4210_v63 = vmul.f32 %v9083_v50, %v9083_v50 }
0x1b64   :  { %4207 = vadd.xlane.f32.xlu0 %v4206_v62  ;;  %v7684_v1 = vpop.f32.mrf.mxu1 }
0x1b65   :  { %v4211_v29 = vsel %vm121_vm0, %v4210_v63, 0.0 }
0x1b66   :  { %4212 = vadd.xlane.f32.xlu1 %v4211_v29 }
0x1bed   :  { %v4208_v56 = vpop.xlane.xlu0 %4207 }
0x1bee   :  { %v4209_v58 = vmul.f32 0.03125, %v4208_v56 }
0x1bef   :  { %v4213_v57 = vpop.xlane.xlu1 %4212 }
0x1bf0   :  { %v4215_v4 = vmul.f32 %v4209_v58, %v4209_v58  ;;  %v4214_v6 = vmul.f32 0.03125, %v4213_v57  ;;  %v4217_v7 = vsub.f32 %v9083_v50, %v4209_v58 }
0x1bf2   :  { %v4216_v59 = vsub.f32 %v4214_v6, %v4215_v4 }
0x1bf4   :  { %v4218_v60 = vadd.f32 1e-05, %v4216_v59 }
0x1bf6   :  { %7999 = vrsqrt.f32 %v4218_v60 }
0x1c03   :  { %v8000_v9 = vpop.eup %7999 }
0x1c04   :  { %v4220_v10 = vmul.f32 %v8000_v9, %v4217_v7 }
0x1c06   :  { %v4221_v11 = vmul.f32 %v8801_v27, %v4220_v10 }
0x1c08   :  { %v4222_v12 = vadd.f32 %v8807_v33, %v4221_v11 }
0x1c0a   :  { %v4223_v38 = vpack.c.bf16 %v4222_v12, %v4222_v12 }
0x1c0c   :  { %7690 = vmatmul.mubr.msk.bf16.vlgmr.msra.gmra.mxu0 %vm121_vm0, %v4223_v38 }
0x1c0d   :  { %7695 = vmatprep.mubr.msk.bf16.mxu0 %vm8185_vm1, %v8184_v5 }
0x1ccc   :  { %v4286_v13 = vpop.f32.mrf.mxu0 }
0x1ccd   :  { %v9104_v14 = vadd.f32 %v7172_v18, %v4286_v13 }
0x1cce   :  { %v7691_v8 = vpop.f32.mrf.mxu0 }
0x1ccf   :  { %4296 = vrot.lane.b32.xlu1 %v9104_v14, %s8188_s27  ;;  %4293 = vrot.lane.b32.xlu0 %v9104_v14, %s8187_s26 }
0x1cd0   :  { %v4289_v27 = vpop.f32.mrf.mxu0 }
0x1cd2   :  { %v7692_v15 = vpop.f32.mrf.mxu0 }
0x1cd3   :  { %4299 = vrot.lane.b32.xlu1 %v9104_v14, %s8186_s25  ;;  %4438 = vrot.lane.b32.xlu0 %v9104_v14, %s8189_s28 }
0x1d41   :  { %v9114_v33 = vpop.permute.xlu1 %4296  ;;  %v9116_v17 = vpop.permute.xlu0 %4293 }
0x1d42   :  { %4442 = vrot.lane.b32.xlu0 %v9114_v33, %s8189_s28  ;;  %4440 = vrot.lane.b32.xlu1 %v9116_v17, %s8189_s28  ;;  %v4302_v26 = vcombine.low %v9104_v14, %v9114_v33  ;;  %v4303_v32 = vcombine.high %v9104_v14, %v9114_v33 }
0x1d44   :  { %v4310_v36 = vrot.slane %v4302_v26, %v8361_v41  ;;  %v4317_v16 = vrot.slane %v4303_v32, %v8361_v41 }
0x1d45   :  { %v9122_v20 = vpop.permute.xlu1 %4299  ;;  %v4439_v0 = vpop.permute.xlu0 %4438 }
0x1d46   :  { %4444 = vrot.lane.b32.xlu1 %v9122_v20, %s8189_s28  ;;  %v4318_v21 = vcombine.low %v9116_v17, %v9122_v20  ;;  %v4319_v22 = vcombine.high %v9116_v17, %v9122_v20 }
0x1d48   :  { %v4326_v31 = vrot.slane %v4318_v21, %v8361_v41  ;;  %v4333_v34 = vrot.slane %v4319_v22, %v8361_v41 }
0x1d4a   :  { %v4334_v42 = vcombine.low %v4310_v36, %v4326_v31  ;;  %v4335_v43 = vcombine.high %v4310_v36, %v4326_v31  ;;  %v4350_v44 = vcombine.low %v4317_v16, %v4333_v34  ;;  %v4351_v47 = vcombine.high %v4317_v16, %v4333_v34 }
0x1d4c   :  { %v4342_v54 = vrot.slane %v4334_v42, %v8372_v51  ;;  %v4349_v55 = vrot.slane %v4335_v43, %v8372_v51  ;;  %v4358_v3 = vrot.slane %v4350_v44, %v8372_v51  ;;  %v4365_v25 = vrot.slane %v4351_v47, %v8372_v51 }
0x1d4e   :  { %v4370_v63 = vcombine.low %v4342_v54, %v4349_v55  ;;  %v7176_v1 = vcombine.high %v4342_v54, %v4349_v55  ;;  %v4386_v29 = vcombine.low %v4358_v3, %v4365_v25  ;;  %v7177_v30 = vcombine.high %v4358_v3, %v4365_v25 }
0x1d50   :  { %v4377_v7 = vrot.slane %v4370_v63, %v8361_v41  ;;  %v4385_v9 = vrot.slane %v7176_v1, %v8361_v41  ;;  %v4393_v10 = vrot.slane %v4386_v29, %v8361_v41  ;;  %v4401_v11 = vrot.slane %v7177_v30, %v8361_v41 }
0x1d52   :  { %v4402_v32 = vcombine.low %v4377_v7, %v4385_v9  ;;  %v4419_v54 = vcombine.high %v4393_v10, %v4401_v11 }
0x1d54   :  { %v4410_v42 = vrot.slane %v4402_v32, %v8372_v51 }
0x1db4   :  { %v4441_v37 = vpop.permute.xlu1 %4440  ;;  %v4443_v40 = vpop.permute.xlu0 %4442 }
0x1db5   :  { %v4450_v48 = vcombine.low %v4439_v0, %v4443_v40  ;;  %v4451_v2 = vcombine.high %v4439_v0, %v4443_v40  ;;  %v4418_v0 = vcombine.low %v4393_v10, %v4401_v11 }
0x1db7   :  { %v4458_v23 = vrot.slane %v4450_v48, %v8361_v41  ;;  %v4465_v45 = vrot.slane %v4451_v2, %v8361_v41  ;;  %v4426_v43 = vrot.slane %v4418_v0, %v8372_v51 }
0x1db8   :  { %v4445_v52 = vpop.permute.xlu1 %4444 }
0x1db9   :  { %v4466_v53 = vcombine.low %v4441_v37, %v4445_v52  ;;  %v4467_v35 = vcombine.high %v4441_v37, %v4445_v52  ;;  %v4403_v52 = vcombine.high %v4377_v7, %v4385_v9 }
0x1dbb   :  { %v4474_v46 = vrot.slane %v4466_v53, %v8361_v41  ;;  %v4481_v24 = vrot.slane %v4467_v35, %v8361_v41  ;;  %v4434_v53 = vcombine.low %v4410_v42, %v4426_v43  ;;  %v4435_v35 = vcombine.high %v4410_v42, %v4426_v43 }
0x1dbd   :  { %v4482_v61 = vcombine.low %v4458_v23, %v4474_v46  ;;  %v4483_v49 = vcombine.high %v4458_v23, %v4474_v46  ;;  %v4498_v39 = vcombine.low %v4465_v45, %v4481_v24  ;;  %v4499_v62 = vcombine.high %v4465_v45, %v4481_v24 }
0x1dbe   :  { %v4734_v25 = vpack.c.bf16 %v4434_v53, %v4434_v53  ;;  %v4735_v23 = vpack.c.bf16 %v4435_v35, %v4435_v35  ;;  %v4417_v45 = vrot.slane %v4403_v52, %v8372_v51  ;;  %v4433_v46 = vrot.slane %v4419_v54, %v8372_v51 }
0x1dbf   :  { %v4490_v28 = vrot.slane %v4482_v61, %v8372_v51  ;;  %v4497_v56 = vrot.slane %v4483_v49, %v8372_v51  ;;  %v4506_v58 = vrot.slane %v4498_v39, %v8372_v51  ;;  %v4513_v57 = vrot.slane %v4499_v62, %v8372_v51 }
0x1dc0   :  { %v4436_v49 = vcombine.low %v4417_v45, %v4433_v46  ;;  %v4437_v39 = vcombine.high %v4417_v45, %v4433_v46 }
0x1dc1   :  { %v4518_v4 = vcombine.low %v4490_v28, %v4497_v56  ;;  %v7178_v6 = vcombine.high %v4490_v28, %v4497_v56  ;;  %v4534_v59 = vcombine.low %v4506_v58, %v4513_v57  ;;  %v7179_v60 = vcombine.high %v4506_v58, %v4513_v57 }
0x1dc2   :  { %v4736_v62 = vpack.c.bf16 %v4436_v49, %v4436_v49  ;;  %v4737_v63 = vpack.c.bf16 %v4437_v39, %v4437_v39 }
0x1dc3   :  { %v4525_v12 = vrot.slane %v4518_v4, %v8361_v41  ;;  %v4533_v38 = vrot.slane %v7178_v6, %v8361_v41  ;;  %v4541_v18 = vrot.slane %v4534_v59, %v8361_v41  ;;  %v4549_v13 = vrot.slane %v7179_v60, %v8361_v41 }
0x1dc5   :  { %v4550_v8 = vcombine.low %v4525_v12, %v4533_v38  ;;  %v4566_v27 = vcombine.low %v4541_v18, %v4549_v13  ;;  %v4551_v15 = vcombine.high %v4525_v12, %v4533_v38  ;;  %v4567_v21 = vcombine.high %v4541_v18, %v4549_v13 }
0x1dc7   :  { %v4558_v22 = vrot.slane %v4550_v8, %v8372_v51  ;;  %v4574_v26 = vrot.slane %v4566_v27, %v8372_v51  ;;  %v4565_v36 = vrot.slane %v4551_v15, %v8372_v51  ;;  %v4581_v16 = vrot.slane %v4567_v21, %v8372_v51 }
0x1dc9   :  { %v4582_v31 = vcombine.low %v4558_v22, %v4574_v26  ;;  %v4583_v34 = vcombine.high %v4558_v22, %v4574_v26  ;;  %v4584_v48 = vcombine.low %v4565_v36, %v4581_v16  ;;  %v4585_v2 = vcombine.high %v4565_v36, %v4581_v16 }
0x1dcb   :  { %v4738_v37 = vpack.c.bf16 %v4582_v31, %v4582_v31  ;;  %v4739_v40 = vpack.c.bf16 %v4583_v34, %v4583_v34  ;;  %v4740_v55 = vpack.c.bf16 %v4584_v48, %v4584_v48  ;;  %v4741_v3 = vpack.c.bf16 %v4585_v2, %v4585_v2 }
0x1dcd   :  { %v4746_v44 = vsel %vm669_vm2, %v4738_v37, 0  ;;  %v4792_v47 = vsel %vm669_vm2, %v4739_v40, 0  ;;  %v4838_v24 = vsel %vm669_vm2, %v4740_v55, 0  ;;  %v4884_v61 = vsel %vm669_vm2, %v4741_v3, 0 }
0x1dce   :  { %7694 = vmatpush3.bf16.xpose.msra.mxu0 %v4746_v44  ;;  %7700 = vmatpush3.bf16.xpose.msra.mxu1 %v4792_v47 }
0x1dcf   :  { %7705 = vmatprep.subr.bf16.mxu0 %v8184_v5  ;;  %7711 = vmatprep.subr.bf16.mxu1 %v8184_v5 }
0x1dd5   :  { %7696 = vmatmul.mubr.msk.bf16.vlgmr.msra.gmra.mxu0 %vm669_vm2, %v4734_v25  ;;  %7702 = vmatmul.mubr.msk.bf16.vlgmr.msra.gmra.mxu1 %vm669_vm2, %v4735_v23 }
0x1dd6   :  { %7706 = vmatpush3.bf16.xpose.msra.mxu0 %v4838_v24  ;;  %7712 = vmatpush3.bf16.xpose.msra.mxu1 %v4884_v61 }
0x1dd7   :  { %7707 = vmatprep.mubr.msk.bf16.mxu0 %vm8185_vm1, %v8184_v5  ;;  %7713 = vmatprep.mubr.msk.bf16.mxu1 %vm8185_vm1, %v8184_v5 }
0x1dd8   :  { %7717 = vmatprep.subr.bf16.mxu0 %v8184_v5  ;;  %7723 = vmatprep.subr.bf16.mxu1 %v8184_v5 }
0x1ddd   :  { %7708 = vmatmul.mubr.msk.bf16.vlgmr.msra.gmra.mxu0 %vm669_vm2, %v4736_v62  ;;  %7714 = vmatmul.mubr.msk.bf16.vlgmr.msra.gmra.mxu1 %vm669_vm2, %v4737_v63 }
0x1dde   :  { %7719 = vmatprep.mubr.msk.bf16.mxu0 %vm8185_vm1, %v8184_v5  ;;  %7725 = vmatprep.mubr.msk.bf16.mxu1 %vm8185_vm1, %v8184_v5 }
0x1e95   :  { %v4782_v1 = vpop.f32.mrf.mxu0  ;;  %v4828_v29 = vpop.f32.mrf.mxu1 }
0x1e96   :  { %v4783_v30 = vadd.f32 %v4782_v1, %v8424_v19  ;;  %v4829_v28 = vadd.f32 %v4828_v29, %v8424_v19 }
0x1e97   :  { %v7697_v56 = vpop.f32.mrf.mxu0  ;;  %v7703_v58 = vpop.f32.mrf.mxu1 }
0x1e98   :  { %v4929_v57 = vsel %vm669_vm2, %v4829_v28, -inf  ;;  %v4926_v4 = vsel %vm669_vm2, %v4783_v30, -inf }
0x1e99   :  { %4930 = vmax.xlane.f32.xlu1 %v4929_v57  ;;  %v4831_v6 = vpop.f32.mrf.mxu1  ;;  %4927 = vmax.xlane.f32.xlu0 %v4926_v4  ;;  %v4785_v59 = vpop.f32.mrf.mxu0 }
0x1e9b   :  { %v7698_v60 = vpop.f32.mrf.mxu0  ;;  %v7704_v7 = vpop.f32.mrf.mxu1 }
0x1e9d   :  { %v4874_v9 = vpop.f32.mrf.mxu0  ;;  %v4920_v10 = vpop.f32.mrf.mxu1 }
0x1e9e   :  { %v4875_v11 = vadd.f32 %v4874_v9, %v8424_v19  ;;  %v4921_v18 = vadd.f32 %v4920_v10, %v8424_v19 }
0x1e9f   :  { %v7709_v12 = vpop.f32.mrf.mxu0  ;;  %v7715_v38 = vpop.f32.mrf.mxu1 }
0x1ea0   :  { %v4932_v13 = vsel %vm669_vm2, %v4875_v11, -inf  ;;  %v4935_v22 = vsel %vm669_vm2, %v4921_v18, -inf }
0x1ea1   :  { %v4923_v8 = vpop.f32.mrf.mxu1  ;;  %4933 = vmax.xlane.f32.xlu0 %v4932_v13  ;;  %v4877_v27 = vpop.f32.mrf.mxu0 }
0x1ea3   :  { %v7710_v15 = vpop.f32.mrf.mxu0  ;;  %v7716_v21 = vpop.f32.mrf.mxu1 }
0x1ea5   :  { %4936 = vmax.xlane.f32.xlu0 %v4935_v22 }
0x1eaa   :  { %4586 = vrot.lane.b32.xlu1 %v9104_v14, %s8193_s14 }
0x1f22   :  { %v4931_v26 = vpop.xlane.xlu1 %4930  ;;  %v4928_v32 = vpop.xlane.xlu0 %4927 }
0x1f23   :  { %v4939_v0 = vsub.f32 %v4829_v28, %v4931_v26  ;;  %v4938_v31 = vsub.f32 %v4783_v30, %v4928_v32 }
0x1f25   :  { %v4944_v34 = vmul.f32 1.442695, %v4939_v0  ;;  %v4942_v36 = vmul.f32 1.442695, %v4938_v31 }
0x1f27   :  { %8001 = vpow2.f32 %v4944_v34 }
0x1f28   :  { %8003 = vpow2.f32 %v4942_v36 }
0x1f2a   :  { %v4934_v14 = vpop.xlane.xlu0 %4933 }
0x1f2b   :  { %v4940_v43 = vsub.f32 %v4875_v11, %v4934_v14 }
0x1f2d   :  { %v4946_v47 = vmul.f32 1.442695, %v4940_v43 }
0x1f2e   :  { %v4937_v44 = vpop.xlane.xlu0 %4936 }
0x1f2f   :  { %v4941_v48 = vsub.f32 %v4921_v18, %v4937_v44  ;;  %8005 = vpow2.f32 %v4946_v47 }
0x1f31   :  { %v4948_v2 = vmul.f32 1.442695, %v4941_v48 }
0x1f33   :  { %8007 = vpow2.f32 %v4948_v2 }
0x1f34   :  { %v9196_v16 = vpop.eup %8001 }
0x1f35   :  { %v9198_v37 = vpop.eup %8003  ;;  %v4953_v40 = vsel %vm669_vm2, %v9196_v16, 0.0 }
0x1f36   :  { %v4950_v42 = vsel %vm669_vm2, %v9198_v37, 0.0  ;;  %4954 = vadd.xlane.f32.xlu0 %v4953_v40 }
0x1f37   :  { %4951 = vadd.xlane.f32.xlu1 %v4950_v42 }
0x1f3c   :  { %v9210_v52 = vpop.eup %8005 }
0x1f3d   :  { %v4956_v53 = vsel %vm669_vm2, %v9210_v52, 0.0 }
0x1f48   :  { %4590 = vrot.lane.b32.xlu1 %v9114_v33, %s8193_s14  ;;  %v9214_v33 = vpop.eup %8007 }
0x1f4c   :  { %4592 = vrot.lane.b32.xlu1 %v9122_v20, %s8193_s14  ;;  %4588 = vrot.lane.b32.xlu0 %v9116_v17, %s8193_s14  ;;  %v4959_v20 = vsel %vm669_vm2, %v9214_v33, 0.0  ;;  %v4587_v17 = vpop.permute.xlu1 %4586 }
0x1f6b   :  { %4957 = vadd.xlane.f32.xlu0 %v4956_v53 }
0x1f70   :  { %4960 = vadd.xlane.f32.xlu1 %v4959_v20 }
0x1fbf   :  { %v4955_v54 = vpop.xlane.xlu0 %4954 }
0x1fc0   :  { %v4952_v35 = vpop.xlane.xlu1 %4951  ;;  %8009 = vrcp.f32 %v4955_v54 }
0x1fc1   :  { %8011 = vrcp.f32 %v4952_v35 }
0x1fc3   :  { %v4589_v23 = vpop.permute.xlu0 %4588 }
0x1fc4   :  { %v4591_v55 = vpop.permute.xlu1 %4590 }
0x1fc5   :  { %v4598_v3 = vcombine.low %v4587_v17, %v4591_v55  ;;  %v4599_v25 = vcombine.high %v4587_v17, %v4591_v55 }
0x1fc7   :  { %v4606_v61 = vrot.slane %v4598_v3, %v8361_v41  ;;  %v4613_v49 = vrot.slane %v4599_v25, %v8361_v41 }
0x1fc8   :  { %v4593_v45 = vpop.permute.xlu1 %4592 }
0x1fc9   :  { %v4614_v46 = vcombine.low %v4589_v23, %v4593_v45  ;;  %v4615_v24 = vcombine.high %v4589_v23, %v4593_v45 }
0x1fcb   :  { %v4622_v39 = vrot.slane %v4614_v46, %v8361_v41  ;;  %v4629_v62 = vrot.slane %v4615_v24, %v8361_v41 }
0x1fcd   :  { %v4630_v63 = vcombine.low %v4606_v61, %v4622_v39  ;;  %v4631_v1 = vcombine.high %v4606_v61, %v4622_v39  ;;  %v4646_v29 = vcombine.low %v4613_v49, %v4629_v62  ;;  %v4647_v30 = vcombine.high %v4613_v49, %v4629_v62  ;;  %v8010_v8 = vpop.eup %8009 }
0x1fce   :  { %v8012_v27 = vpop.eup %8011  ;;  %v4967_v14 = vmul.f32 %v8010_v8, %v9196_v16 }
0x1fcf   :  { %v4638_v28 = vrot.slane %v4630_v63, %v8372_v51  ;;  %v4645_v56 = vrot.slane %v4631_v1, %v8372_v51  ;;  %v4654_v58 = vrot.slane %v4646_v29, %v8372_v51  ;;  %v4661_v57 = vrot.slane %v4647_v30, %v8372_v51 }
0x1fd0   :  { %v4966_v42 = vmul.f32 %v8012_v27, %v9198_v37  ;;  %v4971_v53 = vpack.c.bf16 %v4967_v14, %v4967_v14 }
0x1fd1   :  { %v4666_v4 = vcombine.low %v4638_v28, %v4645_v56  ;;  %v7180_v6 = vcombine.high %v4638_v28, %v4645_v56  ;;  %v4682_v59 = vcombine.low %v4654_v58, %v4661_v57  ;;  %v7181_v60 = vcombine.high %v4654_v58, %v4661_v57 }
0x1fd2   :  { %v4970_v2 = vpack.c.bf16 %v4966_v42, %v4966_v42 }
0x1fd3   :  { %v4673_v7 = vrot.slane %v4666_v4, %v8361_v41  ;;  %v4681_v9 = vrot.slane %v7180_v6, %v8361_v41  ;;  %v4689_v10 = vrot.slane %v4682_v59, %v8361_v41  ;;  %v4697_v11 = vrot.slane %v7181_v60, %v8361_v41 }
0x1fd5   :  { %v4698_v12 = vcombine.low %v4673_v7, %v4681_v9  ;;  %v4714_v38 = vcombine.low %v4689_v10, %v4697_v11  ;;  %v4699_v18 = vcombine.high %v4673_v7, %v4681_v9  ;;  %v4715_v13 = vcombine.high %v4689_v10, %v4697_v11 }
0x1fd7   :  { %v4706_v15 = vrot.slane %v4698_v12, %v8372_v51  ;;  %v4722_v21 = vrot.slane %v4714_v38, %v8372_v51  ;;  %v4713_v22 = vrot.slane %v4699_v18, %v8372_v51  ;;  %v4729_v26 = vrot.slane %v4715_v13, %v8372_v51  ;;  %v7913_v18 = vld [vmem:[%s9611_s3 + $0x38] sm:$0xff]  }
0x1fd9   :  { %v4730_v32 = vcombine.low %v4706_v15, %v4722_v21  ;;  %v4731_v0 = vcombine.high %v4706_v15, %v4722_v21  ;;  %v4732_v31 = vcombine.low %v4713_v22, %v4729_v26  ;;  %v4733_v34 = vcombine.high %v4713_v22, %v4729_v26 }
0x1fdb   :  { %v4974_v36 = vpack.c.bf16 %v4730_v32, %v4730_v32  ;;  %v4975_v40 = vpack.c.bf16 %v4731_v0, %v4731_v0  ;;  %v4976_v47 = vpack.c.bf16 %v4732_v31, %v4732_v31  ;;  %v4977_v48 = vpack.c.bf16 %v4733_v34, %v4733_v34  ;;  %v7914_v31 = vld [vmem:[%s9611_s3 + $0x30] sm:$0xff]  }
0x1fdd   :  { %v4982_v43 = vsel %vm909_vm4, %v4974_v36, 0  ;;  %v5028_v44 = vsel %vm909_vm4, %v4975_v40, 0  ;;  %v5074_v16 = vsel %vm909_vm4, %v4976_v47, 0  ;;  %v5120_v37 = vsel %vm909_vm4, %v4977_v48, 0 }
0x1fde   :  { %7718 = vmatpush3.bf16.msra.mxu0 %v4982_v43  ;;  %7724 = vmatpush3.bf16.msra.mxu1 %v5028_v44 }
0x1fdf   :  { %7729 = vmatprep.subr.bf16.mxu0 %v8184_v5  ;;  %7735 = vmatprep.subr.bf16.mxu1 %v8184_v5 }
0x1fe1   :  { %7720 = vmatmul.mubr.msk.bf16.vlgmr.msra.gmra.mxu0 %vm669_vm2, %v4970_v2  ;;  %7726 = vmatmul.mubr.msk.bf16.vlgmr.msra.gmra.mxu1 %vm669_vm2, %v4971_v53 }
0x1fe2   :  { %7730 = vmatpush3.bf16.msra.mxu0 %v5074_v16  ;;  %7736 = vmatpush3.bf16.msra.mxu1 %v5120_v37 }
0x1fe3   :  { %7731 = vmatprep.mubr.msk.bf16.mxu0 %vm8185_vm1, %v8184_v5  ;;  %7737 = vmatprep.mubr.msk.bf16.mxu1 %vm8185_vm1, %v8184_v5 }
0x1fe4   :  { %7741 = vmatprep.subr.bf16.mxu0 %v8184_v5  ;;  %7749 = vmatprep.subr.bf16.mxu1 %v8184_v5 }
0x1ff4   :  { %v4958_v20 = vpop.xlane.xlu0 %4957 }
0x1ff5   :  { %8013 = vrcp.f32 %v4958_v20 }
0x1ff9   :  { %v4961_v17 = vpop.xlane.xlu1 %4960 }
0x1ffa   :  { %8015 = vrcp.f32 %v4961_v17 }
0x2002   :  { %v8014_v35 = vpop.eup %8013 }
0x2003   :  { %v4968_v54 = vmul.f32 %v8014_v35, %v9210_v52 }
0x2005   :  { %v4972_v55 = vpack.c.bf16 %v4968_v54, %v4968_v54 }
0x2007   :  { %v8016_v3 = vpop.eup %8015  ;;  %7732 = vmatmul.mubr.msk.bf16.vlgmr.msra.gmra.mxu0 %vm669_vm2, %v4972_v55 }
0x2008   :  { %v4969_v25 = vmul.f32 %v8016_v3, %v9214_v33  ;;  %7745 = vmatprep.mubr.msk.bf16.mxu0 %vm8185_vm1, %v8184_v5  ;;  %7742 = vmatpush3.bf16.msra.mxu0 %v7913_v18 }
0x2009   :  { %7743 = vmatprep.subr.bf16.mxu0 %v8184_v5 }
0x200a   :  { %v4973_v23 = vpack.c.bf16 %v4969_v25, %v4969_v25 }
0x200c   :  { %7738 = vmatmul.mubr.msk.bf16.vlgmr.msra.gmra.mxu1 %vm669_vm2, %v4973_v23  ;;  %7744 = vmatpush3.bf16.msra.mxu0 %v7914_v31 }
0x200d   :  { %7753 = vmatprep.mubr.msk.bf16.mxu1 %vm8185_vm1, %v8184_v5  ;;  %7757 = vmatprep.subr.bf16.mxu0 %v8184_v5 }
0x20a1   :  { %v5018_v45 = vpop.f32.mrf.mxu0  ;;  %v5064_v46 = vpop.f32.mrf.mxu1 }
0x20a3   :  { %v7721_v24 = vpop.f32.mrf.mxu0  ;;  %v7727_v61 = vpop.f32.mrf.mxu1 }
0x20a4   :  { %v7196_v24 = vld [vmem:[#allocation7 + $0x3] ss:$0 sm:$0xff] }
0x20a5   :  { %v5021_v52 = vpop.f32.mrf.mxu0  ;;  %v5067_v49 = vpop.f32.mrf.mxu1 }
0x20a7   :  { %v7722_v39 = vpop.f32.mrf.mxu0  ;;  %v7728_v62 = vpop.f32.mrf.mxu1 }
0x20c7   :  { %v5110_v63 = vpop.f32.mrf.mxu0 }
0x20c8   :  { %v5162_v33 = vcombine.low %v5018_v45, %v5110_v63  ;;  %v5163_v29 = vcombine.high %v5018_v45, %v5110_v63 }
0x20c9   :  { %v7733_v1 = vpop.f32.mrf.mxu0 }
0x20ca   :  { %v5170_v6 = vrot.slane %v5162_v33, %v8361_v41  ;;  %v5177_v59 = vrot.slane %v5163_v29, %v8361_v41 }
0x20cb   :  { %v5113_v30 = vpop.f32.mrf.mxu0 }
0x20cc   :  { %v5156_v28 = vpop.f32.mrf.mxu1  ;;  %v7915_v30 = vld [vmem:[%s9613_s5 + $0x38] sm:$0xff]  }
0x20cd   :  { %v5178_v56 = vcombine.low %v5064_v46, %v5156_v28  ;;  %v5179_v58 = vcombine.high %v5064_v46, %v5156_v28  ;;  %v7734_v57 = vpop.f32.mrf.mxu0  ;;  %7750 = vmatpush3.bf16.msra.mxu1 %v7915_v30 }
0x20ce   :  { %v7739_v4 = vpop.f32.mrf.mxu1  ;;  %7751 = vmatprep.subr.bf16.mxu1 %v8184_v5 }
0x20cf   :  { %v5186_v60 = vrot.slane %v5178_v56, %v8361_v41  ;;  %v5193_v7 = vrot.slane %v5179_v58, %v8361_v41 }
0x20d0   :  { %v5159_v9 = vpop.f32.mrf.mxu1 }
0x20d1   :  { %v5194_v10 = vcombine.low %v5170_v6, %v5186_v60  ;;  %v5195_v11 = vcombine.high %v5170_v6, %v5186_v60  ;;  %v5210_v12 = vcombine.low %v5177_v59, %v5193_v7  ;;  %v5211_v38 = vcombine.high %v5177_v59, %v5193_v7 }
0x20d2   :  { %v7740_v13 = vpop.f32.mrf.mxu1 }
0x20d3   :  { %v5202_v8 = vrot.slane %v5194_v10, %v8372_v51  ;;  %v5209_v27 = vrot.slane %v5195_v11, %v8372_v51  ;;  %v5218_v15 = vrot.slane %v5210_v12, %v8372_v51  ;;  %v5225_v21 = vrot.slane %v5211_v38, %v8372_v51  ;;  %v9311_v10 = vld [vmem:[%s9617_s9] ss:$0 sm:$0xff]  ;;  %v7917_v13 = vld [vmem:[%s9615_s7 + $0x78] sm:$0xff]  }
0x20d4   :  { %v9317_v12 = vld [vmem:[%s9618_s10] ss:$0 sm:$0xff] }
0x20d5   :  { %v5230_v22 = vcombine.low %v5202_v8, %v5209_v27  ;;  %v7190_v26 = vcombine.high %v5202_v8, %v5209_v27  ;;  %v5246_v32 = vcombine.low %v5218_v15, %v5225_v21  ;;  %v7191_v0 = vcombine.high %v5218_v15, %v5225_v21  ;;  %v7918_v8 = vld [vmem:[%s9615_s7 + $0x70] sm:$0xff]   ;;  %v7919_v27 = vld [vmem:[%s9615_s7 + $0x68] sm:$0xff]   ;;  %v7920_v15 = vld [vmem:[%s9615_s7 + $0x60] sm:$0xff]  }
0x20d6   :  { %v7204_v21 = vld [vmem:[#allocation8 + $0x3] ss:$0 sm:$0xff] }
0x20d7   :  { %v5237_v34 = vrot.slane %v5230_v22, %v8361_v41  ;;  %v5245_v36 = vrot.slane %v7190_v26, %v8361_v41  ;;  %v5253_v40 = vrot.slane %v5246_v32, %v8361_v41  ;;  %v5261_v42 = vrot.slane %v7191_v0, %v8361_v41 }
0x20d9   :  { %v5263_v14 = vcombine.high %v5237_v34, %v5245_v36  ;;  %v5279_v43 = vcombine.high %v5253_v40, %v5261_v42  ;;  %v5262_v44 = vcombine.low %v5237_v34, %v5245_v36  ;;  %v5278_v47 = vcombine.low %v5253_v40, %v5261_v42 }
0x20db   :  { %v5277_v48 = vrot.slane %v5263_v14, %v8372_v51  ;;  %v5293_v2 = vrot.slane %v5279_v43, %v8372_v51  ;;  %v5270_v53 = vrot.slane %v5262_v44, %v8372_v51  ;;  %v5286_v16 = vrot.slane %v5278_v47, %v8372_v51 }
0x20dd   :  { %v5296_v37 = vcombine.low %v5277_v48, %v5293_v2  ;;  %v5295_v20 = vcombine.high %v5270_v53, %v5286_v16  ;;  %v5294_v17 = vcombine.low %v5270_v53, %v5286_v16  ;;  %v5297_v35 = vcombine.high %v5277_v48, %v5293_v2  ;;  %v7216_v53 = vld [vmem:[#allocation10 + $0x3] ss:$0 sm:$0xff] }
0x20df   :  { %5303 = vrot.lane.b32.xlu1 %v5296_v37, %s8178_s29  ;;  %5299 = vrot.lane.b32.xlu0 %v5295_v20, %s8194_s0 }
0x20e3   :  { %5307 = vrot.lane.b32.xlu0 %v5297_v35, %s8195_s18 }
0x2151   :  { %v5300_v54 = vpop.permute.xlu0 %5299  ;;  %v5304_v55 = vpop.permute.xlu1 %5303 }
0x2152   :  { %v5310_v3 = vsel %vm669_vm2, %v5294_v17, %v5300_v54 }
0x2153   :  { %v5311_v23 = vsel %vm1240_vm5, %v5310_v3, %v5304_v55 }
0x2155   :  { %v5308_v25 = vpop.permute.xlu0 %5307 }
0x2156   :  { %v5312_v45 = vsel %vm1242_vm6, %v5311_v23, %v5308_v25  ;;  %v7921_v23 = vld [vmem:[%s9609_s1 + $0x48] sm:$0xff]  }
0x2157   :  { %v5313_v46 = vpack.c.bf16 %v5312_v45, %v5312_v45  ;;  %v7922_v45 = vld [vmem:[%s9609_s1 + $0x40] sm:$0xff]  }
0x2159   :  { %7746 = vmatmul.mubr.msk.bf16.vlgmr.msra.gmra.mxu0 %vm121_vm0, %v5313_v46 }
0x215a   :  { %7765 = vmatprep.mubr.msk.bf16.mxu0 %vm8185_vm1, %v8184_v5  ;;  %7758 = vmatpush3.bf16.msra.mxu0 %v7917_v13 }
0x215b   :  { %7759 = vmatprep.subr.bf16.mxu0 %v8184_v5 }
0x215e   :  { %7760 = vmatpush3.bf16.msra.mxu0 %v7918_v8 }
0x215f   :  { %7761 = vmatprep.subr.bf16.mxu0 %v8184_v5 }
0x2162   :  { %7762 = vmatpush3.bf16.msra.mxu0 %v7919_v27 }
0x2163   :  { %7763 = vmatprep.subr.bf16.mxu0 %v8184_v5 }
0x2166   :  { %7764 = vmatpush3.bf16.msra.mxu0 %v7920_v15 }
0x2167   :  { %7783 = vmatprep.subr.bf16.mxu0 %v8184_v5 }
0x2219   :  { %v5376_v61 = vpop.f32.mrf.mxu0 }
0x221a   :  { %v5377_v52 = vadd.f32 %v7196_v24, %v5376_v61 }
0x221b   :  { %v7747_v49 = vpop.f32.mrf.mxu0 }
0x221c   :  { %v9292_v39 = vadd.f32 %v5377_v52, %v9083_v50  ;;  %v7916_v50 = vld [vmem:[%s9613_s5 + $0x30] sm:$0xff]  }
0x221d   :  { %v5379_v62 = vpop.f32.mrf.mxu0  ;;  %7752 = vmatpush3.bf16.msra.mxu1 %v7916_v50 }
0x221e   :  { %v5383_v63 = vsel %vm121_vm0, %v9292_v39, 0.0  ;;  %v5387_v1 = vmul.f32 %v9292_v39, %v9292_v39  ;;  %7769 = vmatprep.subr.bf16.mxu1 %v8184_v5 }
0x221f   :  { %5384 = vadd.xlane.f32.xlu1 %v5383_v63  ;;  %v7748_v33 = vpop.f32.mrf.mxu0 }
0x2220   :  { %v5388_v29 = vsel %vm121_vm0, %v5387_v1, 0.0 }
0x2221   :  { %5389 = vadd.xlane.f32.xlu0 %v5388_v29 }
0x22a8   :  { %v5385_v28 = vpop.xlane.xlu1 %5384 }
0x22a9   :  { %v5386_v56 = vmul.f32 0.03125, %v5385_v28  ;;  %v7226_v28 = vld [vmem:[#allocation5 + $0x4] ss:$0 sm:$0xff] }
0x22aa   :  { %v5390_v58 = vpop.xlane.xlu0 %5389 }
0x22ab   :  { %v5392_v57 = vmul.f32 %v5386_v56, %v5386_v56  ;;  %v5391_v4 = vmul.f32 0.03125, %v5390_v58  ;;  %v5394_v60 = vsub.f32 %v9292_v39, %v5386_v56 }
0x22ad   :  { %v5393_v6 = vsub.f32 %v5391_v4, %v5392_v57 }
0x22af   :  { %v5395_v59 = vadd.f32 1e-05, %v5393_v6 }
0x22b1   :  { %8017 = vrsqrt.f32 %v5395_v59 }
0x22be   :  { %v8018_v7 = vpop.eup %8017 }
0x22bf   :  { %v5397_v9 = vmul.f32 %v8018_v7, %v5394_v60 }
0x22c1   :  { %v5398_v11 = vmul.f32 %v9311_v10, %v5397_v9 }
0x22c3   :  { %v5399_v38 = vadd.f32 %v9317_v12, %v5398_v11 }
0x22c5   :  { %v5400_v18 = vpack.c.bf16 %v5399_v38, %v5399_v38 }
0x22c7   :  { %7754 = vmatmul.mubr.msk.bf16.vlgmr.msra.gmra.mxu1 %vm121_vm0, %v5400_v18 }
0x22c8   :  { %7773 = vmatprep.mubr.msk.bf16.mxu1 %vm8185_vm1, %v8184_v5  ;;  %7770 = vmatpush3.bf16.msra.mxu1 %v7921_v23 }
0x22c9   :  { %7771 = vmatprep.subr.bf16.mxu1 %v8184_v5 }
0x22cc   :  { %7772 = vmatpush3.bf16.msra.mxu1 %v7922_v45 }
0x22cd   :  { %7777 = vmatprep.subr.bf16.mxu1 %v8184_v5 }
0x2387   :  { %v5463_v22 = vpop.f32.mrf.mxu1 }
0x2388   :  { %v5464_v26 = vadd.f32 %v7204_v21, %v5463_v22 }
0x2389   :  { %v7755_v32 = vpop.f32.mrf.mxu1 }
0x238a   :  { %v5470_v0 = vmul.f32 0.044715, %v5464_v26  ;;  %v5469_v44 = vmul.f32 0.5, %v5464_v26 }
0x238b   :  { %v5466_v31 = vpop.f32.mrf.mxu1 }
0x238c   :  { %v5471_v34 = vmul.f32 %v5470_v0, %v5464_v26 }
0x238d   :  { %v7756_v36 = vpop.f32.mrf.mxu1 }
0x238e   :  { %v5472_v40 = vmul.f32 %v5471_v34, %v5464_v26 }
0x2390   :  { %v5473_v42 = vadd.f32 %v5472_v40, %v5464_v26 }
0x2392   :  { %v5474_v14 = vmul.f32 0.7978846, %v5473_v42 }
0x2394   :  { %8019 = vtanh.f32 %v5474_v14 }
0x23a1   :  { %v8020_v43 = vpop.eup %8019 }
0x23a2   :  { %v5476_v47 = vadd.f32 1.0, %v8020_v43 }
0x23a4   :  { %v5477_v48 = vmul.f32 %v5476_v47, %v5469_v44 }
0x23a6   :  { %v5478_v2 = vpack.c.bf16 %v5477_v48, %v5477_v48 }
0x23a8   :  { %7766 = vmatmul.mubr.msk.bf16.vlgmr.msra.gmra.mxu0 %vm1445_vm7, %v5478_v2 }
0x23a9   :  { %7785 = vmatprep.mubr.msk.bf16.mxu0 %vm8185_vm1, %v8184_v5 }
0x2468   :  { %v5557_v16 = vpop.f32.mrf.mxu0 }
0x2469   :  { %v5558_v37 = vadd.f32 %v7216_v53, %v5557_v16 }
0x246a   :  { %v7767_v20 = vpop.f32.mrf.mxu0 }
0x246b   :  { %v9343_v17 = vadd.f32 %v5558_v37, %v9292_v39 }
0x246c   :  { %v5560_v35 = vpop.f32.mrf.mxu0 }
0x246d   :  { %v5564_v54 = vsel %vm121_vm0, %v9343_v17, 0.0  ;;  %v5568_v55 = vmul.f32 %v9343_v17, %v9343_v17 }
0x246e   :  { %5565 = vadd.xlane.f32.xlu0 %v5564_v54  ;;  %v7768_v3 = vpop.f32.mrf.mxu0 }
0x246f   :  { %v5569_v25 = vsel %vm121_vm0, %v5568_v55, 0.0 }
0x2470   :  { %5570 = vadd.xlane.f32.xlu1 %v5569_v25 }
0x24f7   :  { %v5566_v46 = vpop.xlane.xlu0 %5565 }
0x24f8   :  { %v5567_v24 = vmul.f32 0.03125, %v5566_v46 }
0x24f9   :  { %v5571_v61 = vpop.xlane.xlu1 %5570 }
0x24fa   :  { %v5573_v52 = vmul.f32 %v5567_v24, %v5567_v24  ;;  %v5572_v49 = vmul.f32 0.03125, %v5571_v61  ;;  %v5575_v63 = vsub.f32 %v9343_v17, %v5567_v24 }
0x24fc   :  { %v5574_v39 = vsub.f32 %v5572_v49, %v5573_v52 }
0x24fe   :  { %v5576_v62 = vadd.f32 1e-05, %v5574_v39 }
0x2500   :  { %8021 = vrsqrt.f32 %v5576_v62 }
0x250d   :  { %v8022_v1 = vpop.eup %8021 }
0x250e   :  { %v5578_v33 = vmul.f32 %v8022_v1, %v5575_v63 }
0x2510   :  { %v5579_v29 = vmul.f32 %v9311_v10, %v5578_v33 }
0x2512   :  { %v5580_v30 = vadd.f32 %v9317_v12, %v5579_v29 }
0x2514   :  { %v5581_v50 = vpack.c.bf16 %v5580_v30, %v5580_v30 }
0x2516   :  { %7774 = vmatmul.mubr.msk.bf16.vlgmr.msra.gmra.mxu1 %vm121_vm0, %v5581_v50 }
0x2517   :  { %7779 = vmatprep.mubr.msk.bf16.mxu1 %vm8185_vm1, %v8184_v5 }
0x25d6   :  { %v5644_v56 = vpop.f32.mrf.mxu1 }
0x25d7   :  { %v9364_v58 = vadd.f32 %v7226_v28, %v5644_v56 }
0x25d8   :  { %v7775_v57 = vpop.f32.mrf.mxu1 }
0x25d9   :  { %5654 = vrot.lane.b32.xlu1 %v9364_v58, %s8188_s27  ;;  %5651 = vrot.lane.b32.xlu0 %v9364_v58, %s8187_s26 }
0x25da   :  { %v5647_v4 = vpop.f32.mrf.mxu1 }
0x25dc   :  { %v7776_v6 = vpop.f32.mrf.mxu1 }
0x25dd   :  { %5657 = vrot.lane.b32.xlu1 %v9364_v58, %s8186_s25  ;;  %5796 = vrot.lane.b32.xlu0 %v9364_v58, %s8189_s28 }
0x264b   :  { %v9374_v59 = vpop.permute.xlu1 %5654  ;;  %v9376_v60 = vpop.permute.xlu0 %5651 }
0x264c   :  { %5800 = vrot.lane.b32.xlu0 %v9374_v59, %s8189_s28  ;;  %5798 = vrot.lane.b32.xlu1 %v9376_v60, %s8189_s28  ;;  %v5660_v38 = vcombine.low %v9364_v58, %v9374_v59  ;;  %v5661_v18 = vcombine.high %v9364_v58, %v9374_v59 }
0x264e   :  { %v5668_v15 = vrot.slane %v5660_v38, %v8361_v41  ;;  %v5675_v21 = vrot.slane %v5661_v18, %v8361_v41 }
0x264f   :  { %v9382_v7 = vpop.permute.xlu1 %5657  ;;  %v5797_v13 = vpop.permute.xlu0 %5796 }
0x2650   :  { %5802 = vrot.lane.b32.xlu1 %v9382_v7, %s8189_s28  ;;  %v5676_v9 = vcombine.low %v9376_v60, %v9382_v7  ;;  %v5677_v11 = vcombine.high %v9376_v60, %v9382_v7 }
0x2652   :  { %v5684_v8 = vrot.slane %v5676_v9, %v8361_v41  ;;  %v5691_v27 = vrot.slane %v5677_v11, %v8361_v41 }
0x2654   :  { %v5692_v32 = vcombine.low %v5668_v15, %v5684_v8  ;;  %v5693_v0 = vcombine.high %v5668_v15, %v5684_v8  ;;  %v5708_v31 = vcombine.low %v5675_v21, %v5691_v27  ;;  %v5709_v34 = vcombine.high %v5675_v21, %v5691_v27 }
0x2656   :  { %v5700_v44 = vrot.slane %v5692_v32, %v8372_v51  ;;  %v5707_v47 = vrot.slane %v5693_v0, %v8372_v51  ;;  %v5716_v48 = vrot.slane %v5708_v31, %v8372_v51  ;;  %v5723_v2 = vrot.slane %v5709_v34, %v8372_v51 }
0x2658   :  { %v5728_v25 = vcombine.low %v5700_v44, %v5707_v47  ;;  %v7230_v23 = vcombine.high %v5700_v44, %v5707_v47  ;;  %v5744_v45 = vcombine.low %v5716_v48, %v5723_v2  ;;  %v7231_v46 = vcombine.high %v5716_v48, %v5723_v2 }
0x265a   :  { %v5735_v33 = vrot.slane %v5728_v25, %v8361_v41  ;;  %v5743_v29 = vrot.slane %v7230_v23, %v8361_v41  ;;  %v5751_v30 = vrot.slane %v5744_v45, %v8361_v41  ;;  %v5759_v50 = vrot.slane %v7231_v46, %v8361_v41 }
0x265c   :  { %v5760_v8 = vcombine.low %v5735_v33, %v5743_v29  ;;  %v5776_v27 = vcombine.low %v5751_v30, %v5759_v50  ;;  %v5777_v48 = vcombine.high %v5751_v30, %v5759_v50 }
0x265e   :  { %v5768_v31 = vrot.slane %v5760_v8, %v8372_v51  ;;  %v5784_v34 = vrot.slane %v5776_v27, %v8372_v51 }
0x2660   :  { %v5792_v44 = vcombine.low %v5768_v31, %v5784_v34  ;;  %v5793_v47 = vcombine.high %v5768_v31, %v5784_v34 }
0x26be   :  { %v5799_v22 = vpop.permute.xlu1 %5798  ;;  %v5801_v26 = vpop.permute.xlu0 %5800 }
0x26bf   :  { %v5808_v36 = vcombine.low %v5797_v13, %v5801_v26  ;;  %v5809_v40 = vcombine.high %v5797_v13, %v5801_v26 }
0x26c1   :  { %v5816_v53 = vrot.slane %v5808_v36, %v8361_v41  ;;  %v5823_v16 = vrot.slane %v5809_v40, %v8361_v41 }
0x26c2   :  { %v5803_v42 = vpop.permute.xlu1 %5802 }
0x26c3   :  { %v5824_v14 = vcombine.low %v5799_v22, %v5803_v42  ;;  %v5825_v43 = vcombine.high %v5799_v22, %v5803_v42 }
0x26c5   :  { %v5832_v37 = vrot.slane %v5824_v14, %v8361_v41  ;;  %v5839_v20 = vrot.slane %v5825_v43, %v8361_v41  ;;  %v5761_v43 = vcombine.high %v5735_v33, %v5743_v29 }
0x26c7   :  { %v5840_v35 = vcombine.low %v5816_v53, %v5832_v37  ;;  %v5841_v54 = vcombine.high %v5816_v53, %v5832_v37  ;;  %v5856_v55 = vcombine.low %v5823_v16, %v5839_v20  ;;  %v5857_v3 = vcombine.high %v5823_v16, %v5839_v20 }
0x26c8   :  { %v6092_v16 = vpack.c.bf16 %v5792_v44, %v5792_v44  ;;  %v6093_v37 = vpack.c.bf16 %v5793_v47, %v5793_v47  ;;  %v5775_v20 = vrot.slane %v5761_v43, %v8372_v51 }
0x26c9   :  { %v5848_v24 = vrot.slane %v5840_v35, %v8372_v51  ;;  %v5855_v61 = vrot.slane %v5841_v54, %v8372_v51  ;;  %v5864_v52 = vrot.slane %v5856_v55, %v8372_v51  ;;  %v5871_v49 = vrot.slane %v5857_v3, %v8372_v51 }
0x26ca   :  { %v5791_v35 = vrot.slane %v5777_v48, %v8372_v51 }
0x26cb   :  { %v5876_v39 = vcombine.low %v5848_v24, %v5855_v61  ;;  %v7232_v62 = vcombine.high %v5848_v24, %v5855_v61  ;;  %v5892_v63 = vcombine.low %v5864_v52, %v5871_v49  ;;  %v7233_v1 = vcombine.high %v5864_v52, %v5871_v49 }
0x26cc   :  { %v5794_v3 = vcombine.low %v5775_v20, %v5791_v35  ;;  %v5795_v25 = vcombine.high %v5775_v20, %v5791_v35 }
0x26cd   :  { %v5883_v28 = vrot.slane %v5876_v39, %v8361_v41  ;;  %v5891_v56 = vrot.slane %v7232_v62, %v8361_v41  ;;  %v5899_v57 = vrot.slane %v5892_v63, %v8361_v41  ;;  %v5907_v4 = vrot.slane %v7233_v1, %v8361_v41 }
0x26ce   :  { %v6094_v23 = vpack.c.bf16 %v5794_v3, %v5794_v3  ;;  %v6095_v45 = vpack.c.bf16 %v5795_v25, %v5795_v25 }
0x26cf   :  { %v5908_v6 = vcombine.low %v5883_v28, %v5891_v56  ;;  %v5924_v9 = vcombine.low %v5899_v57, %v5907_v4  ;;  %v5909_v11 = vcombine.high %v5883_v28, %v5891_v56  ;;  %v5925_v38 = vcombine.high %v5899_v57, %v5907_v4 }
0x26d1   :  { %v5916_v18 = vrot.slane %v5908_v6, %v8372_v51  ;;  %v5932_v13 = vrot.slane %v5924_v9, %v8372_v51  ;;  %v5923_v22 = vrot.slane %v5909_v11, %v8372_v51  ;;  %v5939_v26 = vrot.slane %v5925_v38, %v8372_v51 }
0x26d3   :  { %v5940_v15 = vcombine.low %v5916_v18, %v5932_v13  ;;  %v5941_v21 = vcombine.high %v5916_v18, %v5932_v13  ;;  %v5942_v42 = vcombine.low %v5923_v22, %v5939_v26  ;;  %v5943_v14 = vcombine.high %v5923_v22, %v5939_v26 }
0x26d5   :  { %v6096_v32 = vpack.c.bf16 %v5940_v15, %v5940_v15  ;;  %v6097_v0 = vpack.c.bf16 %v5941_v21, %v5941_v21  ;;  %v6098_v2 = vpack.c.bf16 %v5942_v42, %v5942_v42  ;;  %v6099_v53 = vpack.c.bf16 %v5943_v14, %v5943_v14 }
0x26d7   :  { %v6104_v36 = vsel %vm669_vm2, %v6096_v32, 0  ;;  %v6150_v40 = vsel %vm669_vm2, %v6097_v0, 0  ;;  %v6196_v54 = vsel %vm669_vm2, %v6098_v2, 0  ;;  %v6242_v55 = vsel %vm669_vm2, %v6099_v53, 0 }
0x26d8   :  { %7778 = vmatpush3.bf16.xpose.msra.mxu1 %v6104_v36  ;;  %7784 = vmatpush3.bf16.xpose.msra.mxu0 %v6150_v40 }
0x26d9   :  { %7789 = vmatprep.subr.bf16.mxu1 %v8184_v5  ;;  %7795 = vmatprep.subr.bf16.mxu0 %v8184_v5 }
0x26df   :  { %7780 = vmatmul.mubr.msk.bf16.vlgmr.msra.gmra.mxu1 %vm669_vm2, %v6092_v16  ;;  %7786 = vmatmul.mubr.msk.bf16.vlgmr.msra.gmra.mxu0 %vm669_vm2, %v6093_v37 }
0x26e0   :  { %7790 = vmatpush3.bf16.xpose.msra.mxu1 %v6196_v54  ;;  %7796 = vmatpush3.bf16.xpose.msra.mxu0 %v6242_v55 }
0x26e1   :  { %7791 = vmatprep.mubr.msk.bf16.mxu1 %vm8185_vm1, %v8184_v5  ;;  %7797 = vmatprep.mubr.msk.bf16.mxu0 %vm8185_vm1, %v8184_v5 }
0x26e2   :  { %7801 = vmatprep.subr.bf16.mxu1 %v8184_v5  ;;  %7807 = vmatprep.subr.bf16.mxu0 %v8184_v5 }
0x26e7   :  { %7792 = vmatmul.mubr.msk.bf16.vlgmr.msra.gmra.mxu1 %vm669_vm2, %v6094_v23  ;;  %7798 = vmatmul.mubr.msk.bf16.vlgmr.msra.gmra.mxu0 %vm669_vm2, %v6095_v45 }
0x26e8   :  { %7803 = vmatprep.mubr.msk.bf16.mxu1 %vm8185_vm1, %v8184_v5  ;;  %7809 = vmatprep.mubr.msk.bf16.mxu0 %vm8185_vm1, %v8184_v5 }
0x279f   :  { %v6140_v46 = vpop.f32.mrf.mxu1  ;;  %v6186_v24 = vpop.f32.mrf.mxu0 }
0x27a0   :  { %v6141_v61 = vadd.f32 %v6140_v46, %v8424_v19  ;;  %v6187_v52 = vadd.f32 %v6186_v24, %v8424_v19 }
0x27a1   :  { %v7781_v49 = vpop.f32.mrf.mxu1  ;;  %v7787_v39 = vpop.f32.mrf.mxu0 }
0x27a2   :  { %v6284_v62 = vsel %vm669_vm2, %v6141_v61, -inf  ;;  %v6287_v63 = vsel %vm669_vm2, %v6187_v52, -inf }
0x27a3   :  { %6285 = vmax.xlane.f32.xlu0 %v6284_v62  ;;  %v6143_v1 = vpop.f32.mrf.mxu1  ;;  %6288 = vmax.xlane.f32.xlu1 %v6287_v63  ;;  %v6189_v33 = vpop.f32.mrf.mxu0 }
0x27a5   :  { %v7782_v29 = vpop.f32.mrf.mxu1  ;;  %v7788_v30 = vpop.f32.mrf.mxu0 }
0x27a7   :  { %v6232_v50 = vpop.f32.mrf.mxu1  ;;  %v6278_v28 = vpop.f32.mrf.mxu0 }
0x27a8   :  { %v6233_v56 = vadd.f32 %v6232_v50, %v8424_v19  ;;  %v6279_v6 = vadd.f32 %v6278_v28, %v8424_v19 }
0x27a9   :  { %v7793_v57 = vpop.f32.mrf.mxu1  ;;  %v7799_v4 = vpop.f32.mrf.mxu0 }
0x27aa   :  { %v6290_v9 = vsel %vm669_vm2, %v6233_v56, -inf  ;;  %v6293_v8 = vsel %vm669_vm2, %v6279_v6, -inf }
0x27ab   :  { %6291 = vmax.xlane.f32.xlu0 %v6290_v9  ;;  %v6235_v11 = vpop.f32.mrf.mxu1  ;;  %v6281_v38 = vpop.f32.mrf.mxu0 }
0x27ad   :  { %v7794_v18 = vpop.f32.mrf.mxu1  ;;  %v7800_v13 = vpop.f32.mrf.mxu0 }
0x27af   :  { %6294 = vmax.xlane.f32.xlu0 %v6293_v8 }
0x27b4   :  { %5944 = vrot.lane.b32.xlu1 %v9364_v58, %s8193_s14 }
0x282c   :  { %v6286_v27 = vpop.xlane.xlu0 %6285  ;;  %v6289_v15 = vpop.xlane.xlu1 %6288 }
0x282d   :  { %v6296_v21 = vsub.f32 %v6141_v61, %v6286_v27  ;;  %v6297_v22 = vsub.f32 %v6187_v52, %v6289_v15 }
0x282f   :  { %v6300_v26 = vmul.f32 1.442695, %v6296_v21  ;;  %v6302_v32 = vmul.f32 1.442695, %v6297_v22 }
0x2831   :  { %8023 = vpow2.f32 %v6300_v26 }
0x2832   :  { %8025 = vpow2.f32 %v6302_v32 }
0x2834   :  { %v6292_v58 = vpop.xlane.xlu0 %6291 }
0x2835   :  { %v6298_v36 = vsub.f32 %v6233_v56, %v6292_v58 }
0x2837   :  { %v6304_v14 = vmul.f32 1.442695, %v6298_v36 }
0x2838   :  { %v6295_v40 = vpop.xlane.xlu0 %6294 }
0x2839   :  { %v6299_v42 = vsub.f32 %v6279_v6, %v6295_v40  ;;  %8027 = vpow2.f32 %v6304_v14 }
0x283b   :  { %v6306_v43 = vmul.f32 1.442695, %v6299_v42 }
0x283d   :  { %8029 = vpow2.f32 %v6306_v43 }
0x283e   :  { %v9456_v19 = vpop.eup %8023 }
0x283f   :  { %v9458_v0 = vpop.eup %8025  ;;  %v6308_v31 = vsel %vm669_vm2, %v9456_v19, 0.0 }
0x2840   :  { %6309 = vadd.xlane.f32.xlu1 %v6308_v31  ;;  %v6311_v34 = vsel %vm669_vm2, %v9458_v0, 0.0 }
0x2841   :  { %6312 = vadd.xlane.f32.xlu0 %v6311_v34 }
0x2846   :  { %v9470_v44 = vpop.eup %8027 }
0x284a   :  { %v9472_v47 = vpop.eup %8029 }
0x2851   :  { %5948 = vrot.lane.b32.xlu1 %v9374_v59, %s8193_s14  ;;  %v6314_v59 = vsel %vm669_vm2, %v9470_v44, 0.0 }
0x2855   :  { %5950 = vrot.lane.b32.xlu1 %v9382_v7, %s8193_s14  ;;  %v6317_v7 = vsel %vm669_vm2, %v9472_v47, 0.0 }
0x2857   :  { %5946 = vrot.lane.b32.xlu0 %v9376_v60, %s8193_s14  ;;  %v5945_v60 = vpop.permute.xlu1 %5944 }
0x2876   :  { %6315 = vadd.xlane.f32.xlu0 %v6314_v59 }
0x2879   :  { %6318 = vadd.xlane.f32.xlu1 %v6317_v7 }
0x28c9   :  { %v6310_v48 = vpop.xlane.xlu1 %6309 }
0x28ca   :  { %v6313_v2 = vpop.xlane.xlu0 %6312  ;;  %8031 = vrcp.f32 %v6310_v48 }
0x28cb   :  { %8033 = vrcp.f32 %v6313_v2 }
0x28cd   :  { %v5949_v53 = vpop.permute.xlu1 %5948 }
0x28ce   :  { %v5956_v16 = vcombine.low %v5945_v60, %v5949_v53  ;;  %v5957_v37 = vcombine.high %v5945_v60, %v5949_v53  ;;  %v5947_v20 = vpop.permute.xlu0 %5946 }
0x28d0   :  { %v5964_v3 = vrot.slane %v5956_v16, %v8361_v41  ;;  %v5971_v25 = vrot.slane %v5957_v37, %v8361_v41 }
0x28d1   :  { %v5951_v35 = vpop.permute.xlu1 %5950 }
0x28d2   :  { %v5972_v54 = vcombine.low %v5947_v20, %v5951_v35  ;;  %v5973_v55 = vcombine.high %v5947_v20, %v5951_v35 }
0x28d4   :  { %v5980_v23 = vrot.slane %v5972_v54, %v8361_v41  ;;  %v5987_v45 = vrot.slane %v5973_v55, %v8361_v41 }
0x28d6   :  { %v5988_v46 = vcombine.low %v5964_v3, %v5980_v23  ;;  %v5989_v24 = vcombine.high %v5964_v3, %v5980_v23  ;;  %v6004_v61 = vcombine.low %v5971_v25, %v5987_v45  ;;  %v6005_v52 = vcombine.high %v5971_v25, %v5987_v45 }
0x28d7   :  { %v8032_v38 = vpop.eup %8031 }
0x28d8   :  { %v5996_v49 = vrot.slane %v5988_v46, %v8372_v51  ;;  %v6003_v39 = vrot.slane %v5989_v24, %v8372_v51  ;;  %v6012_v62 = vrot.slane %v6004_v61, %v8372_v51  ;;  %v6019_v63 = vrot.slane %v6005_v52, %v8372_v51  ;;  %v8034_v18 = vpop.eup %8033 }
0x28d9   :  { %v6324_v58 = vmul.f32 %v8032_v38, %v9456_v19  ;;  %v6325_v36 = vmul.f32 %v8034_v18, %v9458_v0 }
0x28da   :  { %v6024_v1 = vcombine.low %v5996_v49, %v6003_v39  ;;  %v7234_v33 = vcombine.high %v5996_v49, %v6003_v39  ;;  %v6040_v29 = vcombine.low %v6012_v62, %v6019_v63  ;;  %v7235_v30 = vcombine.high %v6012_v62, %v6019_v63 }
0x28db   :  { %v6328_v59 = vpack.c.bf16 %v6324_v58, %v6324_v58  ;;  %v6329_v7 = vpack.c.bf16 %v6325_v36, %v6325_v36 }
0x28dc   :  { %v6031_v50 = vrot.slane %v6024_v1, %v8361_v41  ;;  %v6039_v28 = vrot.slane %v7234_v33, %v8361_v41  ;;  %v6047_v56 = vrot.slane %v6040_v29, %v8361_v41  ;;  %v6055_v57 = vrot.slane %v7235_v30, %v8361_v41 }
0x28de   :  { %v6056_v4 = vcombine.low %v6031_v50, %v6039_v28  ;;  %v6072_v6 = vcombine.low %v6047_v56, %v6055_v57  ;;  %v6057_v9 = vcombine.high %v6031_v50, %v6039_v28  ;;  %v6073_v11 = vcombine.high %v6047_v56, %v6055_v57 }
0x28e0   :  { %v6064_v13 = vrot.slane %v6056_v4, %v8372_v51  ;;  %v6080_v8 = vrot.slane %v6072_v6, %v8372_v51  ;;  %v6071_v27 = vrot.slane %v6057_v9, %v8372_v51  ;;  %v6087_v15 = vrot.slane %v6073_v11, %v8372_v51  ;;  %v7923_v11 = vld [vmem:[%s9611_s3 + $0x48] sm:$0xff]  }
0x28e2   :  { %v6088_v21 = vcombine.low %v6064_v13, %v6080_v8  ;;  %v6089_v22 = vcombine.high %v6064_v13, %v6080_v8  ;;  %v6090_v26 = vcombine.low %v6071_v27, %v6087_v15  ;;  %v6091_v32 = vcombine.high %v6071_v27, %v6087_v15 }
0x28e4   :  { %v6332_v31 = vpack.c.bf16 %v6088_v21, %v6088_v21  ;;  %v6333_v34 = vpack.c.bf16 %v6089_v22, %v6089_v22  ;;  %v6334_v14 = vpack.c.bf16 %v6090_v26, %v6090_v26  ;;  %v6335_v43 = vpack.c.bf16 %v6091_v32, %v6091_v32  ;;  %v7924_v32 = vld [vmem:[%s9611_s3 + $0x40] sm:$0xff]  }
0x28e6   :  { %v6340_v40 = vsel %vm909_vm4, %v6332_v31, 0  ;;  %v6386_v42 = vsel %vm909_vm4, %v6333_v34, 0  ;;  %v6432_v19 = vsel %vm909_vm4, %v6334_v14, 0  ;;  %v6478_v0 = vsel %vm909_vm4, %v6335_v43, 0 }
0x28e7   :  { %7802 = vmatpush3.bf16.msra.mxu1 %v6340_v40  ;;  %7808 = vmatpush3.bf16.msra.mxu0 %v6386_v42 }
0x28e8   :  { %7813 = vmatprep.subr.bf16.mxu1 %v8184_v5  ;;  %7819 = vmatprep.subr.bf16.mxu0 %v8184_v5 }
0x28ea   :  { %7804 = vmatmul.mubr.msk.bf16.vlgmr.msra.gmra.mxu1 %vm669_vm2, %v6328_v59  ;;  %7810 = vmatmul.mubr.msk.bf16.vlgmr.msra.gmra.mxu0 %vm669_vm2, %v6329_v7 }
0x28eb   :  { %7814 = vmatpush3.bf16.msra.mxu1 %v6432_v19  ;;  %7820 = vmatpush3.bf16.msra.mxu0 %v6478_v0 }
0x28ec   :  { %7815 = vmatprep.mubr.msk.bf16.mxu1 %vm8185_vm1, %v8184_v5  ;;  %7821 = vmatprep.mubr.msk.bf16.mxu0 %vm8185_vm1, %v8184_v5 }
0x28ed   :  { %7825 = vmatprep.subr.bf16.mxu1 %v8184_v5  ;;  %7833 = vmatprep.subr.bf16.mxu0 %v8184_v5 }
0x28ff   :  { %v6316_v60 = vpop.xlane.xlu0 %6315 }
0x2900   :  { %8035 = vrcp.f32 %v6316_v60 }
0x2902   :  { %v6319_v48 = vpop.xlane.xlu1 %6318 }
0x2903   :  { %8037 = vrcp.f32 %v6319_v48 }
0x290d   :  { %v8036_v2 = vpop.eup %8035 }
0x290e   :  { %v6326_v53 = vmul.f32 %v8036_v2, %v9470_v44 }
0x2910   :  { %v8038_v16 = vpop.eup %8037  ;;  %v6330_v37 = vpack.c.bf16 %v6326_v53, %v6326_v53 }
0x2911   :  { %v6327_v20 = vmul.f32 %v8038_v16, %v9472_v47 }
0x2912   :  { %7816 = vmatmul.mubr.msk.bf16.vlgmr.msra.gmra.mxu1 %vm669_vm2, %v6330_v37 }
0x2913   :  { %v6331_v35 = vpack.c.bf16 %v6327_v20, %v6327_v20  ;;  %7829 = vmatprep.mubr.msk.bf16.mxu1 %vm8185_vm1, %v8184_v5  ;;  %7826 = vmatpush3.bf16.msra.mxu1 %v7923_v11  ;;  %v7929_v11 = vld [vmem:[%s9615_s7 + $0x88] sm:$0xff]  }
0x2914   :  { %7827 = vmatprep.subr.bf16.mxu1 %v8184_v5 }
0x2915   :  { %7822 = vmatmul.mubr.msk.bf16.vlgmr.msra.gmra.mxu0 %vm669_vm2, %v6331_v35 }
0x2916   :  { %7837 = vmatprep.mubr.msk.bf16.mxu0 %vm8185_vm1, %v8184_v5 }
0x2917   :  { %7828 = vmatpush3.bf16.msra.mxu1 %v7924_v32 }
0x2918   :  { %7841 = vmatprep.subr.bf16.mxu1 %v8184_v5 }
0x29aa   :  { %v6376_v54 = vpop.f32.mrf.mxu1  ;;  %v6422_v55 = vpop.f32.mrf.mxu0 }
0x29ac   :  { %v7805_v3 = vpop.f32.mrf.mxu1  ;;  %v7811_v25 = vpop.f32.mrf.mxu0 }
0x29ae   :  { %v6379_v44 = vpop.f32.mrf.mxu1  ;;  %v6425_v23 = vpop.f32.mrf.mxu0 }
0x29b0   :  { %v7806_v45 = vpop.f32.mrf.mxu1  ;;  %v7812_v46 = vpop.f32.mrf.mxu0 }
0x29d2   :  { %v6468_v47 = vpop.f32.mrf.mxu1 }
0x29d3   :  { %v6520_v24 = vcombine.low %v6376_v54, %v6468_v47  ;;  %v6521_v61 = vcombine.high %v6376_v54, %v6468_v47 }
0x29d4   :  { %v7817_v52 = vpop.f32.mrf.mxu1 }
0x29d5   :  { %v6514_v49 = vpop.f32.mrf.mxu0  ;;  %v6528_v33 = vrot.slane %v6520_v24, %v8361_v41  ;;  %v6535_v29 = vrot.slane %v6521_v61, %v8361_v41  ;;  %v7925_v52 = vld [vmem:[%s9613_s5 + $0x48] sm:$0xff]  }
0x29d6   :  { %v6471_v39 = vpop.f32.mrf.mxu1  ;;  %v6536_v62 = vcombine.low %v6422_v55, %v6514_v49  ;;  %v6537_v63 = vcombine.high %v6422_v55, %v6514_v49  ;;  %v7250_v55 = vld [vmem:[#allocation7 + $0x4] ss:$0 sm:$0xff]  ;;  %7834 = vmatpush3.bf16.msra.mxu0 %v7925_v52 }
0x29d7   :  { %v7823_v1 = vpop.f32.mrf.mxu0  ;;  %7835 = vmatprep.subr.bf16.mxu0 %v8184_v5 }
0x29d8   :  { %v6544_v30 = vrot.slane %v6536_v62, %v8361_v41  ;;  %v6551_v50 = vrot.slane %v6537_v63, %v8361_v41  ;;  %v7818_v28 = vpop.f32.mrf.mxu1 }
0x29d9   :  { %v6517_v56 = vpop.f32.mrf.mxu0 }
0x29da   :  { %v6552_v57 = vcombine.low %v6528_v33, %v6544_v30  ;;  %v6553_v4 = vcombine.high %v6528_v33, %v6544_v30  ;;  %v6568_v6 = vcombine.low %v6535_v29, %v6551_v50  ;;  %v6569_v9 = vcombine.high %v6535_v29, %v6551_v50 }
0x29db   :  { %v7824_v38 = vpop.f32.mrf.mxu0 }
0x29dc   :  { %v6560_v18 = vrot.slane %v6552_v57, %v8372_v51  ;;  %v6567_v13 = vrot.slane %v6553_v4, %v8372_v51  ;;  %v6576_v8 = vrot.slane %v6568_v6, %v8372_v51  ;;  %v6583_v27 = vrot.slane %v6569_v9, %v8372_v51  ;;  %v7927_v6 = vld [vmem:[%s9615_s7 + $0x98] sm:$0xff]   ;;  %v7928_v9 = vld [vmem:[%s9615_s7 + $0x90] sm:$0xff]   ;;  %v7930_v38 = vld [vmem:[%s9615_s7 + $0x80] sm:$0xff]  }
0x29de   :  { %v6588_v15 = vcombine.low %v6560_v18, %v6567_v13  ;;  %v7244_v21 = vcombine.high %v6560_v18, %v6567_v13  ;;  %v6604_v22 = vcombine.low %v6576_v8, %v6583_v27  ;;  %v7245_v26 = vcombine.high %v6576_v8, %v6583_v27  ;;  %v7258_v18 = vld [vmem:[#allocation8 + $0x4] ss:$0 sm:$0xff] }
0x29e0   :  { %v6595_v31 = vrot.slane %v6588_v15, %v8361_v41  ;;  %v6603_v34 = vrot.slane %v7244_v21, %v8361_v41  ;;  %v6611_v58 = vrot.slane %v6604_v22, %v8361_v41  ;;  %v6619_v36 = vrot.slane %v7245_v26, %v8361_v41 }
0x29e2   :  { %v6621_v40 = vcombine.high %v6595_v31, %v6603_v34  ;;  %v6637_v42 = vcombine.high %v6611_v58, %v6619_v36  ;;  %v6620_v14 = vcombine.low %v6595_v31, %v6603_v34  ;;  %v6636_v43 = vcombine.low %v6611_v58, %v6619_v36 }
0x29e4   :  { %v6635_v59 = vrot.slane %v6621_v40, %v8372_v51  ;;  %v6651_v7 = vrot.slane %v6637_v42, %v8372_v51  ;;  %v6628_v19 = vrot.slane %v6620_v14, %v8372_v51  ;;  %v6644_v0 = vrot.slane %v6636_v43, %v8372_v51  ;;  %v7270_v43 = vld [vmem:[#allocation10 + $0x4] ss:$0 sm:$0xff] }
0x29e6   :  { %v6654_v60 = vcombine.low %v6635_v59, %v6651_v7  ;;  %v6653_v48 = vcombine.high %v6628_v19, %v6644_v0  ;;  %v6652_v2 = vcombine.low %v6628_v19, %v6644_v0  ;;  %v6655_v41 = vcombine.high %v6635_v59, %v6651_v7 }
0x29e8   :  { %6661 = vrot.lane.b32.xlu1 %v6654_v60, %s8178_s29  ;;  %6657 = vrot.lane.b32.xlu0 %v6653_v48, %s8194_s0 }
0x29ec   :  { %6665 = vrot.lane.b32.xlu0 %v6655_v41, %s8195_s18 }
0x2a5a   :  { %v6658_v53 = vpop.permute.xlu0 %6657  ;;  %v6662_v16 = vpop.permute.xlu1 %6661 }
0x2a5b   :  { %v6668_v37 = vsel %vm669_vm2, %v6652_v2, %v6658_v53 }
0x2a5c   :  { %v6669_v35 = vsel %vm1240_vm5, %v6668_v37, %v6662_v16  ;;  %v7931_v16 = vld [vmem:[%s9619_s11 + $0x8] sm:$0xff]   ;;  %v7932_v37 = vld [vmem:[%s9619_s11] sm:$0xff]  }
0x2a5e   :  { %v6666_v20 = vpop.permute.xlu0 %6665 }
0x2a5f   :  { %v6670_v54 = vsel %vm1242_vm6, %v6669_v35, %v6666_v20 }
0x2a60   :  { %v6671_v51 = vpack.c.bf16 %v6670_v54, %v6670_v54 }
0x2a62   :  { %7830 = vmatmul.mubr.msk.bf16.vlgmr.msra.gmra.mxu1 %vm121_vm0, %v6671_v51 }
0x2a63   :  { %7849 = vmatprep.mubr.msk.bf16.mxu1 %vm8185_vm1, %v8184_v5  ;;  %7842 = vmatpush3.bf16.msra.mxu1 %v7927_v6 }
0x2a64   :  { %7843 = vmatprep.subr.bf16.mxu1 %v8184_v5 }
0x2a67   :  { %7844 = vmatpush3.bf16.msra.mxu1 %v7928_v9 }
0x2a68   :  { %7845 = vmatprep.subr.bf16.mxu1 %v8184_v5 }
0x2a6b   :  { %7846 = vmatpush3.bf16.msra.mxu1 %v7929_v11 }
0x2a6c   :  { %7847 = vmatprep.subr.bf16.mxu1 %v8184_v5 }
0x2a6f   :  { %7848 = vmatpush3.bf16.msra.mxu1 %v7930_v38 }
0x2b22   :  { %v6734_v3 = vpop.f32.mrf.mxu1 }
0x2b23   :  { %v6735_v25 = vadd.f32 %v7250_v55, %v6734_v3 }
0x2b24   :  { %v7831_v44 = vpop.f32.mrf.mxu1 }
0x2b25   :  { %v9552_v23 = vadd.f32 %v6735_v25, %v9343_v17  ;;  %v7926_v17 = vld [vmem:[%s9613_s5 + $0x40] sm:$0xff]  }
0x2b26   :  { %v6737_v45 = vpop.f32.mrf.mxu1  ;;  %7836 = vmatpush3.bf16.msra.mxu0 %v7926_v17 }
0x2b27   :  { %v6741_v46 = vsel %vm121_vm0, %v9552_v23, 0.0  ;;  %v6745_v47 = vmul.f32 %v9552_v23, %v9552_v23  ;;  %7853 = vmatprep.subr.bf16.mxu0 %v8184_v5 }
0x2b28   :  { %6742 = vadd.xlane.f32.xlu1 %v6741_v46  ;;  %v7832_v24 = vpop.f32.mrf.mxu1 }
0x2b29   :  { %v6746_v61 = vsel %vm121_vm0, %v6745_v47, 0.0 }
0x2b2a   :  { %6747 = vadd.xlane.f32.xlu0 %v6746_v61 }
0x2bb1   :  { %v6743_v49 = vpop.xlane.xlu1 %6742 }
0x2bb2   :  { %v6744_v39 = vmul.f32 0.03125, %v6743_v49 }
0x2bb3   :  { %v6748_v62 = vpop.xlane.xlu0 %6747 }
0x2bb4   :  { %v6750_v63 = vmul.f32 %v6744_v39, %v6744_v39  ;;  %v6749_v1 = vmul.f32 0.03125, %v6748_v62  ;;  %v6752_v30 = vsub.f32 %v9552_v23, %v6744_v39 }
0x2bb6   :  { %v6751_v33 = vsub.f32 %v6749_v1, %v6750_v63 }
0x2bb8   :  { %v6753_v29 = vadd.f32 1e-05, %v6751_v33 }
0x2bba   :  { %8039 = vrsqrt.f32 %v6753_v29 }
0x2bc7   :  { %v8040_v50 = vpop.eup %8039 }
0x2bc8   :  { %v6755_v28 = vmul.f32 %v8040_v50, %v6752_v30 }
0x2bca   :  { %v6756_v56 = vmul.f32 %v9311_v10, %v6755_v28 }
0x2bcc   :  { %v6757_v57 = vadd.f32 %v9317_v12, %v6756_v56 }
0x2bce   :  { %v6758_v4 = vpack.c.bf16 %v6757_v57, %v6757_v57 }
0x2bd0   :  { %7838 = vmatmul.mubr.msk.bf16.vlgmr.msra.gmra.mxu0 %vm121_vm0, %v6758_v4 }
0x2bd1   :  { %7857 = vmatprep.mubr.msk.bf16.mxu0 %vm8185_vm1, %v8184_v5  ;;  %7854 = vmatpush3.bf16.msra.mxu0 %v7931_v16 }
0x2bd2   :  { %7855 = vmatprep.subr.bf16.mxu0 %v8184_v5  ;;  %v7276_v5 = vld [vmem:[%s9620_s12] ss:$0 sm:$0xff] }
0x2bd5   :  { %7856 = vmatpush3.bf16.msra.mxu0 %v7932_v37 }
0x2c90   :  { %v6821_v13 = vpop.f32.mrf.mxu0 }
0x2c91   :  { %v6822_v8 = vadd.f32 %v7258_v18, %v6821_v13 }
0x2c92   :  { %v7839_v27 = vpop.f32.mrf.mxu0 }
0x2c93   :  { %v6828_v15 = vmul.f32 0.044715, %v6822_v8  ;;  %v6827_v36 = vmul.f32 0.5, %v6822_v8 }
0x2c94   :  { %v6824_v21 = vpop.f32.mrf.mxu0 }
0x2c95   :  { %v6829_v22 = vmul.f32 %v6828_v15, %v6822_v8 }
0x2c96   :  { %v7840_v26 = vpop.f32.mrf.mxu0 }
0x2c97   :  { %v6830_v32 = vmul.f32 %v6829_v22, %v6822_v8 }
0x2c99   :  { %v6831_v31 = vadd.f32 %v6830_v32, %v6822_v8 }
0x2c9b   :  { %v6832_v34 = vmul.f32 0.7978846, %v6831_v31 }
0x2c9d   :  { %8041 = vtanh.f32 %v6832_v34 }
0x2caa   :  { %v8042_v58 = vpop.eup %8041 }
0x2cab   :  { %v6834_v40 = vadd.f32 1.0, %v8042_v58 }
0x2cad   :  { %v6835_v42 = vmul.f32 %v6834_v40, %v6827_v36 }
0x2caf   :  { %v6836_v14 = vpack.c.bf16 %v6835_v42, %v6835_v42 }
0x2cb1   :  { %7850 = vmatmul.mubr.msk.bf16.vlgmr.msra.gmra.mxu1 %vm1445_vm7, %v6836_v14 }
0x2d71   :  { %v6915_v59 = vpop.f32.mrf.mxu1 }
0x2d72   :  { %v6916_v7 = vadd.f32 %v7270_v43, %v6915_v59 }
0x2d73   :  { %v7851_v19 = vpop.f32.mrf.mxu1 }
0x2d74   :  { %v6921_v0 = vadd.f32 %v6916_v7, %v9552_v23 }
0x2d75   :  { %v6918_v60 = vpop.f32.mrf.mxu1 }
0x2d76   :  { %v6922_v48 = vsel %vm121_vm0, %v6921_v0, 0.0  ;;  %v6926_v2 = vmul.f32 %v6921_v0, %v6921_v0 }
0x2d77   :  { %6923 = vadd.xlane.f32.xlu0 %v6922_v48  ;;  %v7852_v41 = vpop.f32.mrf.mxu1 }
0x2d78   :  { %v6927_v53 = vsel %vm121_vm0, %v6926_v2, 0.0 }
0x2d79   :  { %6928 = vadd.xlane.f32.xlu1 %v6927_v53 }
0x2e00   :  { %v6924_v20 = vpop.xlane.xlu0 %6923 }
0x2e01   :  { %v6925_v35 = vmul.f32 0.03125, %v6924_v20 }
0x2e02   :  { %v6929_v54 = vpop.xlane.xlu1 %6928 }
0x2e03   :  { %v6931_v51 = vmul.f32 %v6925_v35, %v6925_v35  ;;  %v6930_v55 = vmul.f32 0.03125, %v6929_v54  ;;  %v6933_v44 = vsub.f32 %v6921_v0, %v6925_v35 }
0x2e05   :  { %v6932_v3 = vsub.f32 %v6930_v55, %v6931_v51 }
0x2e07   :  { %v6934_v25 = vadd.f32 1e-05, %v6932_v3 }
0x2e09   :  { %8043 = vrsqrt.f32 %v6934_v25 }
0x2e16   :  { %v8044_v23 = vpop.eup %8043 }
0x2e17   :  { %v6936_v45 = vmul.f32 %v8044_v23, %v6933_v44 }
0x2e19   :  { %v6937_v46 = vmul.f32 %v9311_v10, %v6936_v45 }
0x2e1b   :  { %v6938_v47 = vadd.f32 %v9317_v12, %v6937_v46 }
0x2e1d   :  { %v6939_v24 = vpack.c.bf16 %v6938_v47, %v6938_v47 }
0x2e1f   :  { %7858 = vmatmul.mubr.msk.bf16.vlgmr.msra.gmra.mxu0 %vm121_vm0, %v6939_v24 }
0x2edf   :  { %v7000_v61 = vpop.f32.mrf.mxu0 }
0x2ee0   :  { %v7001_v52 = vadd.f32 %v7276_v5, %v7000_v61 }
0x2ee1   :  { %v7859_v17 = vpop.f32.mrf.mxu0 }
0x2ee2   :  { %7006 = vst [vmem:[#allocation11] sm:$0xff] %v7001_v52 }
0x2ee3   :  { %v7003_v49 = vpop.f32.mrf.mxu0 }
0x2ee4   :  { %8160 = shalt.err (!%p8157_p1)
}
0x2ee5   :  { %7016 = dma.vmem_to_hbm [thread:$0]  %s7014_s22, 128, %s9621_s13, [#allocation4]   ;;  %v7860_v10 = vpop.f32.mrf.mxu0 }
0x2ee6   :  { %8175 = dma.done.wait [#allocation4], 128  }
0x2ee7   :  { %8176 = vsyncadd [#allocation4], 4294967168 }
0x2ee8   :  { %7020 = vsyncpa [#allocation3], 1 }
0x2ee9   :  { %7021 = vsyncpa [#allocation6], 1 }
0x2eea   :  { %7022 = vsyncpa [#allocation9], 1 }
0x2eeb   :  { %7023 = vsyncpa [#allocation4], 1 }

</bundles_post_ra>
